<compile_context>
chip_gen: v6e
topology: v6e:2x2x1
jax: 0.10.0
libtpu: 0.0.40
codegen_flags: <defaults>
</compile_context>

<pallas_src>
import functools
import math

import numpy as np

import jax
import jax.numpy as jnp
from jax.experimental import pallas as pl
from jax.experimental.pallas import tpu as pltpu

# ----------------------------- configuration -------------------------------
BATCH = 2
C_IN = 3
IMG = 16
PATCH = 8
GRID_HW = IMG // PATCH                 # 2
N_PATCHES = GRID_HW * GRID_HW          # 4
SEQ = N_PATCHES + 1                    # 5 (cls token + patches)
K_PATCH = C_IN * PATCH * PATCH         # 192
HIDDEN = 64
NUM_HEADS = 2
HEAD_DIM = HIDDEN // NUM_HEADS         # 32
MLP = 128
LAYERS = 2
BACKBONE_OUT = 1000                    # ViT default num_classes (input of self.fc)
BACKBONE_PAD = 1024                    # zero-padded, lane-dense
FC_OUT = 500
FC_PAD = 512                           # zero-padded, lane-dense
EMBED = 64                             # embedding_size
LN_EPS = 1e-6                          # torchvision ViT uses LayerNorm(eps=1e-6)
W_DTYPE = jnp.bfloat16                 # weight storage / MXU operand dtype


# ----------------------------- in-kernel helpers ---------------------------
def _layernorm(x, w, b, eps=LN_EPS):
    mu = jnp.mean(x, axis=-1, keepdims=True)
    xc = x - mu
    var = jnp.mean(xc * xc, axis=-1, keepdims=True)
    return xc * jax.lax.rsqrt(var + eps) * w + b


def _gelu(x):
    # TODO(synk): torch nn.GELU() defaults to the exact erf form; the tanh
    # approximation is used because erf lowering is not guaranteed in Mosaic.
    c = math.sqrt(2.0 / math.pi)
    return 0.5 * x * (1.0 + jnp.tanh(c * (x + 0.044715 * x * x * x)))


def _mm(a_f32, w):
    """MXU matmul: cast the f32 activation to the weight dtype, accumulate f32."""
    return jnp.dot(a_f32.astype(w.dtype), w, preferred_element_type=jnp.float32)


# ------------------------------- fused kernel -------------------------------
def fused_triplet_kernel(
    xtok_ref, tokadd_ref, bias_ref, sel_ref, pw_ref,
    wqkv_ref, bqkv_ref, wo_ref, w1_ref, b1_ref, w2_ref,
    v64_ref, hbias_ref,
    hw_hbm, fw_hbm, ew_hbm,
    o_ref,
    hw_vmem, fw_vmem, ew_vmem, dma_sem,
    *, num_layers, num_heads, head_dim,
):
    # ---- kick off the classifier-head weight DMAs (HBM -> VMEM scratch);
    #      they overlap with the whole encoder and are waited on only right
    #      before each head matmul. ----
    cp_head = pltpu.make_async_copy(hw_hbm, hw_vmem, dma_sem.at[0])
    cp_fc = pltpu.make_async_copy(fw_hbm, fw_vmem, dma_sem.at[1])
    cp_emb = pltpu.make_async_copy(ew_hbm, ew_vmem, dma_sem.at[2])
    cp_head.start()
    cp_fc.start()
    cp_emb.start()

    # ---- patch embedding; cls token / positional embedding / patch bias were
    #      pre-folded into `tokadd` -> token slab (B*T, D), f32 ----
    x = _mm(xtok_ref[...], pw_ref[...]) + tokadd_ref[...]

    bias = bias_ref[...]                              # (B*T, B*T) block-diag mask

    # ---- encoder blocks: static Python loop, everything stays in VMEM/vregs ----
    for l in range(num_layers):
        base = 6 * l
        ln1w = v64_ref[base]
        ln1b = v64_ref[base + 1]
        ln2w = v64_ref[base + 2]
        ln2b = v64_ref[base + 3]
        bo = v64_ref[base + 4]
        b2 = v64_ref[base + 5]

        # -- multi-head self-attention: x = x + Wo·MHA(LN1(x)) + bo --
        h = _layernorm(x, ln1w, ln1b)
        h_lo = h.astype(W_DTYPE)
        wo_l = wo_ref[l]                              # (D, D) bf16
        attn = None
        for hd in range(num_heads):
            # per-head Q/K/V matmuls: outputs start at lane 0, no lane-offset
            # slicing of a fused (B*T, 3D) tensor -> no relayouts.
            qi = (l * 3 + 0) * num_heads + hd
            ki = (l * 3 + 1) * num_heads + hd
            vi = (l * 3 + 2) * num_heads + hd
            q = jnp.dot(h_lo, wqkv_ref[qi],
                        preferred_element_type=jnp.float32) + bqkv_ref[qi]
            k = jnp.dot(h_lo, wqkv_ref[ki],
                        preferred_element_type=jnp.float32) + bqkv_ref[ki]
            v = jnp.dot(h_lo, wqkv_ref[vi],
                        preferred_element_type=jnp.float32) + bqkv_ref[vi]
            # 1/sqrt(head_dim) is pre-folded into the Q weights/bias at init.
            s = jax.lax.dot_general(
                q.astype(W_DTYPE), k.astype(W_DTYPE),
                (((1,), (1,)), ((), ())),
                preferred_element_type=jnp.float32)
            s = s + bias                              # no cross-sample attention
            s = s - jnp.max(s, axis=-1, keepdims=True)
            e = jnp.exp(s)
            p = e * pl.reciprocal(jnp.sum(e, axis=-1, keepdims=True), approx=True)
            hv = jnp.dot(p.astype(W_DTYPE), v.astype(W_DTYPE),
                         preferred_element_type=jnp.float32)        # (B*T, hd)
            # fold the head merge into the output projection: row-sliced Wo
            # (sublane slice), identical math to concat(heads) @ Wo.
            contrib = jnp.dot(hv.astype(W_DTYPE),
                              wo_l[hd * head_dim:(hd + 1) * head_dim, :],
                              preferred_element_type=jnp.float32)
            attn = contrib if attn is None else attn + contrib
        x = x + attn + bo

        # -- MLP block: x = x + W2·GELU(W1·LN2(x) + b1) + b2 --
        h2 = _layernorm(x, ln2w, ln2b)
        m = _gelu(_mm(h2, w1_ref[l]) + b1_ref[l])
        x = x + _mm(m, w2_ref[l]) + b2

    # ---- pick the cls token of each sample via a tiny selection matmul
    #      (one-hot built in the wrapper; avoids strided sublane gathers) ----
    off = 6 * num_layers
    lnfw = v64_ref[off]
    lnfb = v64_ref[off + 1]
    eb = v64_ref[off + 2]

    cls = jnp.dot(sel_ref[...].astype(W_DTYPE), x.astype(W_DTYPE),
                  preferred_element_type=jnp.float32)                # (B, D)

    # ---- final encoder LN + ViT classifier head + fc -> ReLU -> fc_embedding;
    #      wait on each weight DMA only right before its matmul ----
    hfin = _layernorm(cls, lnfw, lnfb)

    cp_head.wait()
    hfin = _mm(hfin, hw_vmem[...]) + hbias_ref[0]     # (B, 1024): 1000 zero-padded
    cp_fc.wait()
    hfin = _mm(hfin, fw_vmem[...]) + hbias_ref[1][:, :FC_PAD]   # (B, 512): 500 pad
    hfin = jnp.maximum(hfin, 0.0)                     # ReLU
    cp_emb.wait()
    emb = _mm(hfin, ew_vmem[...]) + eb                # (B, EMBED)
    o_ref[...] = emb.astype(o_ref.dtype)


# ------------------------------ wrappers -------------------------------------
def patchify(x):
    # NCHW -> (B, N_patches, C*P*P) flattened in (c, ph, pw) order, matching the
    # stride-P conv_proj of torchvision's ViT stem.
    bsz, c, hgt, wid = x.shape
    gh, gw = hgt // PATCH, wid // PATCH
    x = x.reshape(bsz, c, gh, PATCH, gw, PATCH)
    x = jnp.transpose(x, (0, 2, 4, 1, 3, 5))          # (B, gh, gw, C, P, P)
    return x.reshape(bsz, gh * gw, c * PATCH * PATCH)


def _attn_bias_np(n_samples):
    # Additive block-diagonal bias: 0 within a sample, -1e30 across samples.
    n = n_samples * SEQ
    ids = np.arange(n) // SEQ
    same = ids[:, None] == ids[None, :]
    return np.where(same, 0.0, -1e30).astype(np.float32)


def _cls_sel_np(n_samples):
    # One-hot selector that picks token 0 (cls) of every sample.
    sel = np.zeros((n_samples, n_samples * SEQ), np.float32)
    sel[np.arange(n_samples), np.arange(n_samples) * SEQ] = 1.0
    return sel


def forward_batch(params, x):
    """Backbone + fc/relu/fc_embedding for a stacked batch in ONE pallas_call."""
    n = x.shape[0]
    patches = patchify(x)                                          # (n, N, K)
    # Token-aligned patch matrix: cls rows are zero (the cls token itself comes
    # in through tok_add, so it does not pick up the patch-projection bias).
    xtok = jnp.concatenate(
        [jnp.zeros((n, 1, K_PATCH), patches.dtype), patches], axis=1)
    xtok = xtok.reshape(n * SEQ, K_PATCH)                          # (n*T, K)
    # Additive per-token term: t=0 -> cls + pos[0]; t>0 -> patch_b + pos[t].
    tok_add = jnp.concatenate(
        [params["cls"] + params["pos"][:1],
         params["patch_b"] + params["pos"][1:]], axis=0)           # (T, D)
    tok_add = jnp.tile(tok_add, (n, 1))                            # (n*T, D)
    bias = jnp.asarray(_attn_bias_np(n))                           # constant
    sel = jnp.asarray(_cls_sel_np(n))                              # constant

    kernel = functools.partial(
        fused_triplet_kernel,
        num_layers=LAYERS, num_heads=NUM_HEADS, head_dim=HEAD_DIM,
    )
    n_vmem_in = 13
    in_specs = (
        [pl.BlockSpec(memory_space=pltpu.MemorySpace.VMEM)
         for _ in range(n_vmem_in)]
        + [pl.BlockSpec(memory_space=pl.ANY) for _ in range(3)]    # head/fc/emb w
    )
    return pl.pallas_call(
        kernel,
        out_shape=jax.ShapeDtypeStruct((n, EMBED), jnp.float32),
        in_specs=in_specs,
        out_specs=pl.BlockSpec(memory_space=pltpu.MemorySpace.VMEM),
        scratch_shapes=[
            pltpu.VMEM((HIDDEN, BACKBONE_PAD), W_DTYPE),           # head_w buffer
            pltpu.VMEM((BACKBONE_PAD, FC_PAD), W_DTYPE),           # fc_w buffer
            pltpu.VMEM((FC_PAD, EMBED), W_DTYPE),                  # emb_w buffer
            pltpu.SemaphoreType.DMA((3,)),
        ],
    )(
        xtok, tok_add, bias, sel, params["patch_w"],
        params["wqkv"], params["bqkv"], params["wo"],
        params["w1"], params["b1"], params["w2"],
        params["v64"], params["hbias"],
        params["head_w"], params["fc_w"], params["emb_w"],
    )


def triplet_forward(params, x1, x2, x3):
    # Weights are shared between siblings -> stack into one batch and run the
    # fused kernel once (weights read from HBM once instead of three times).
    b = x1.shape[0]
    x = jnp.concatenate([x1, x2, x3], axis=0)
    emb = forward_batch(params, x)
    return emb[:b], emb[b:2 * b], emb[2 * b:3 * b]


# --------------------------- parameter init ----------------------------------
def init_params(key):
    def dense(k, fan_in, fan_out, pad_in=None, pad_out=None):
        w = 0.02 * jax.random.normal(k, (fan_in, fan_out), jnp.float32)
        b = jnp.zeros((1, fan_out), jnp.float32)
        if pad_in or pad_out:
            ti, to = (pad_in or fan_in), (pad_out or fan_out)
            w = jnp.pad(w, ((0, ti - fan_in), (0, to - fan_out)))   # zero pad: exact
            b = jnp.pad(b, ((0, 0), (0, to - fan_out)))
        return w.astype(W_DTYPE), b

    ks = jax.random.split(key, 8 + LAYERS)
    p = {}
    p["patch_w"], p["patch_b"] = dense(ks[0], K_PATCH, HIDDEN)
    p["cls"] = 0.02 * jax.random.normal(ks[1], (1, HIDDEN), jnp.float32)
    p["pos"] = 0.02 * jax.random.normal(ks[2], (SEQ, HIDDEN), jnp.float32)
    ln_f_w = jnp.ones((1, HIDDEN), jnp.float32)
    ln_f_b = jnp.zeros((1, HIDDEN), jnp.float32)
    # Lane-dense zero-padded head weights (padding is numerically exact).
    # TODO(synk): on v5e, int8 storage + per-column scales would halve this
    # HBM traffic further; kept bf16 since the DMA is now fully overlapped.
    p["head_w"], head_b = dense(ks[3], HIDDEN, BACKBONE_OUT, pad_out=BACKBONE_PAD)
    p["fc_w"], fc_b = dense(ks[4], BACKBONE_OUT, FC_OUT,
                            pad_in=BACKBONE_PAD, pad_out=FC_PAD)
    p["emb_w"], emb_b = dense(ks[5], FC_OUT, EMBED, pad_in=FC_PAD)

    # Pack the two wide head biases into one array (fewer DMA descriptors).
    fc_b_pad = jnp.pad(fc_b, ((0, 0), (0, BACKBONE_PAD - FC_PAD)))
    p["hbias"] = jnp.stack([head_b, fc_b_pad])                      # (2,1,1024)

    att_scale = 1.0 / math.sqrt(HEAD_DIM)

    wqkv_blocks, bqkv_blocks = [], []
    wo_list, w1_list, b1_list, w2_list = [], [], [], []
    v64_rows = []
    for l in range(LAYERS):
        lk = jax.random.split(ks[8 + l], 4)
        # Fused-QKV-equivalent weights, column order [Q_h0 Q_h1 | K_h0 K_h1 | V_h0 V_h1];
        # the 1/sqrt(head_dim) attention scale is folded into the Q columns/bias.
        wqkv_full = 0.02 * jax.random.normal(lk[0], (HIDDEN, 3 * HIDDEN), jnp.float32)
        wqkv_full = wqkv_full.at[:, :HIDDEN].multiply(att_scale)
        bqkv_full = jnp.zeros((1, 3 * HIDDEN), jnp.float32)
        bqkv_full = bqkv_full.at[:, :HIDDEN].multiply(att_scale)
        for j in range(3):                       # 0=Q, 1=K, 2=V
            for hd in range(NUM_HEADS):
                c0 = j * HIDDEN + hd * HEAD_DIM
                wqkv_blocks.append(
                    wqkv_full[:, c0:c0 + HEAD_DIM].astype(W_DTYPE))
                bqkv_blocks.append(bqkv_full[:, c0:c0 + HEAD_DIM])
        wo_list.append(
            (0.02 * jax.random.normal(lk[1], (HIDDEN, HIDDEN), jnp.float32)
             ).astype(W_DTYPE))
        w1_list.append(
            (0.02 * jax.random.normal(lk[2], (HIDDEN, MLP), jnp.float32)
             ).astype(W_DTYPE))
        b1_list.append(jnp.zeros((1, MLP), jnp.float32))
        w2_list.append(
            (0.02 * jax.random.normal(lk[3], (MLP, HIDDEN), jnp.float32)
             ).astype(W_DTYPE))
        # Packed per-layer (1, HIDDEN) vectors: ln1w, ln1b, ln2w, ln2b, bo, b2.
        v64_rows += [jnp.ones((1, HIDDEN), jnp.float32),
                     jnp.zeros((1, HIDDEN), jnp.float32),
                     jnp.ones((1, HIDDEN), jnp.float32),
                     jnp.zeros((1, HIDDEN), jnp.float32),
                     jnp.zeros((1, HIDDEN), jnp.float32),
                     jnp.zeros((1, HIDDEN), jnp.float32)]
    # Trailing rows: final-LN weight/bias and embedding bias.
    v64_rows += [ln_f_w, ln_f_b, emb_b]

    p["wqkv"] = jnp.stack(wqkv_blocks)           # (L*3*H, HIDDEN, HEAD_DIM) bf16
    p["bqkv"] = jnp.stack(bqkv_blocks)           # (L*3*H, 1, HEAD_DIM) f32
    p["wo"] = jnp.stack(wo_list)                 # (L, HIDDEN, HIDDEN) bf16
    p["w1"] = jnp.stack(w1_list)                 # (L, HIDDEN, MLP) bf16
    p["b1"] = jnp.stack(b1_list)                 # (L, 1, MLP) f32
    p["w2"] = jnp.stack(w2_list)                 # (L, MLP, HIDDEN) bf16
    p["v64"] = jnp.stack(v64_rows)               # (6L+3, 1, HIDDEN) f32
    return p


# --------------------------------- main ---------------------------------------
if __name__ == "__main__":
    key = jax.random.PRNGKey(0)
    pkey, k1, k2, k3 = jax.random.split(key, 4)
    params = init_params(pkey)

    x1 = jax.random.normal(k1, (BATCH, C_IN, IMG, IMG), jnp.float32)
    x2 = jax.random.normal(k2, (BATCH, C_IN, IMG, IMG), jnp.float32)
    x3 = jax.random.normal(k3, (BATCH, C_IN, IMG, IMG), jnp.float32)

    fwd = jax.jit(triplet_forward)
    e1, e2, e3 = fwd(params, x1, x2, x3)
    jax.block_until_ready((e1, e2, e3))

    assert e1.shape == (BATCH, EMBED)
    assert e2.shape == (BATCH, EMBED)
    assert e3.shape == (BATCH, EMBED)
    print("KERNEL_OK")
</pallas_src>

<mosaic_0001>
module attributes {stable_mosaic.version = 11 : i64} {
  func.func @fused_triplet_kernel(%arg0: memref<30x192xf32, #tpu.memory_space<vmem>>, %arg1: memref<30x64xf32, #tpu.memory_space<vmem>>, %arg2: memref<30x30xf32, #tpu.memory_space<vmem>>, %arg3: memref<6x30xf32, #tpu.memory_space<vmem>>, %arg4: memref<192x64xbf16, #tpu.memory_space<vmem>>, %arg5: memref<12x64x32xbf16, #tpu.memory_space<vmem>>, %arg6: memref<12x1x32xf32, #tpu.memory_space<vmem>>, %arg7: memref<2x64x64xbf16, #tpu.memory_space<vmem>>, %arg8: memref<2x64x128xbf16, #tpu.memory_space<vmem>>, %arg9: memref<2x1x128xf32, #tpu.memory_space<vmem>>, %arg10: memref<2x128x64xbf16, #tpu.memory_space<vmem>>, %arg11: memref<15x1x64xf32, #tpu.memory_space<vmem>>, %arg12: memref<2x1x1024xf32, #tpu.memory_space<vmem>>, %arg13: memref<64x1024xbf16, #tpu.memory_space<any>>, %arg14: memref<1024x512xbf16, #tpu.memory_space<any>>, %arg15: memref<512x64xbf16, #tpu.memory_space<any>>, %arg16: memref<6x64xf32, #tpu.memory_space<vmem>>, %arg17: memref<64x1024xbf16, #tpu.memory_space<vmem>>, %arg18: memref<1024x512xbf16, #tpu.memory_space<vmem>>, %arg19: memref<512x64xbf16, #tpu.memory_space<vmem>>, %arg20: memref<3x!tpu.dma_semaphore, #tpu.memory_space<semaphore_mem>>) attributes {dimension_semantics = [], scalar_prefetch = 0 : i64, scratch_operands = 4 : i64, tpu.core_type = #tpu.core_type<tc>} {
    %c0_i32 = arith.constant 0 : i32
    %0 = tpu.memref_slice %arg20[%c0_i32] : memref<3x!tpu.dma_semaphore, #tpu.memory_space<semaphore_mem>> -> memref<1x!tpu.dma_semaphore, #tpu.memory_space<semaphore_mem>>
    %1 = tpu.memref_squeeze %0 : memref<1x!tpu.dma_semaphore, #tpu.memory_space<semaphore_mem>> -> memref<!tpu.dma_semaphore, #tpu.memory_space<semaphore_mem>>
    tpu.enqueue_dma source(%arg13 : memref<64x1024xbf16, #tpu.memory_space<any>>) target(%arg17 : memref<64x1024xbf16, #tpu.memory_space<vmem>>) target_semaphore(%1 : memref<!tpu.dma_semaphore, #tpu.memory_space<semaphore_mem>>)
    %c1_i32 = arith.constant 1 : i32
    %2 = tpu.memref_slice %arg20[%c1_i32] : memref<3x!tpu.dma_semaphore, #tpu.memory_space<semaphore_mem>> -> memref<1x!tpu.dma_semaphore, #tpu.memory_space<semaphore_mem>>
    %3 = tpu.memref_squeeze %2 : memref<1x!tpu.dma_semaphore, #tpu.memory_space<semaphore_mem>> -> memref<!tpu.dma_semaphore, #tpu.memory_space<semaphore_mem>>
    tpu.enqueue_dma source(%arg14 : memref<1024x512xbf16, #tpu.memory_space<any>>) target(%arg18 : memref<1024x512xbf16, #tpu.memory_space<vmem>>) target_semaphore(%3 : memref<!tpu.dma_semaphore, #tpu.memory_space<semaphore_mem>>)
    %c2_i32 = arith.constant 2 : i32
    %4 = tpu.memref_slice %arg20[%c2_i32] : memref<3x!tpu.dma_semaphore, #tpu.memory_space<semaphore_mem>> -> memref<1x!tpu.dma_semaphore, #tpu.memory_space<semaphore_mem>>
    %5 = tpu.memref_squeeze %4 : memref<1x!tpu.dma_semaphore, #tpu.memory_space<semaphore_mem>> -> memref<!tpu.dma_semaphore, #tpu.memory_space<semaphore_mem>>
    tpu.enqueue_dma source(%arg15 : memref<512x64xbf16, #tpu.memory_space<any>>) target(%arg19 : memref<512x64xbf16, #tpu.memory_space<vmem>>) target_semaphore(%5 : memref<!tpu.dma_semaphore, #tpu.memory_space<semaphore_mem>>)
    %c0 = arith.constant 0 : index
    %c0_0 = arith.constant 0 : index
    %6 = vector.load %arg0[%c0, %c0_0] : memref<30x192xf32, #tpu.memory_space<vmem>>, vector<30x192xf32>
    %c0_1 = arith.constant 0 : index
    %c0_2 = arith.constant 0 : index
    %7 = vector.load %arg4[%c0_1, %c0_2] : memref<192x64xbf16, #tpu.memory_space<vmem>>, vector<192x64xbf16>
    %8 = arith.truncf %6 : vector<30x192xf32> to vector<30x192xbf16>
    %cst = arith.constant dense<0.000000e+00> : vector<30x64xf32>
    %9 = tpu.matmul %8, %7, %cst {dimension_numbers = #tpu.dot_dimension_numbers<[1], [0], [0], [1], [0, 0, 1, 1], [], []>} : vector<30x192xbf16>, vector<192x64xbf16>, vector<30x64xf32> -> vector<30x64xf32>
    %c0_3 = arith.constant 0 : index
    %c0_4 = arith.constant 0 : index
    %10 = vector.load %arg1[%c0_3, %c0_4] : memref<30x64xf32, #tpu.memory_space<vmem>>, vector<30x64xf32>
    %11 = arith.addf %9, %10 : vector<30x64xf32>
    %c0_5 = arith.constant 0 : index
    %c0_6 = arith.constant 0 : index
    %12 = vector.load %arg2[%c0_5, %c0_6] : memref<30x30xf32, #tpu.memory_space<vmem>>, vector<30x30xf32>
    %c0_7 = arith.constant 0 : index
    %c0_8 = arith.constant 0 : index
    %c0_9 = arith.constant 0 : index
    %13 = vector.load %arg11[%c0_7, %c0_8, %c0_9] : memref<15x1x64xf32, #tpu.memory_space<vmem>>, vector<1x1x64xf32>
    %14 = vector.shape_cast %13 : vector<1x1x64xf32> to vector<1x64xf32>
    %c1 = arith.constant 1 : index
    %c0_10 = arith.constant 0 : index
    %c0_11 = arith.constant 0 : index
    %15 = vector.load %arg11[%c1, %c0_10, %c0_11] : memref<15x1x64xf32, #tpu.memory_space<vmem>>, vector<1x1x64xf32>
    %16 = vector.shape_cast %15 : vector<1x1x64xf32> to vector<1x64xf32>
    %c2 = arith.constant 2 : index
    %c0_12 = arith.constant 0 : index
    %c0_13 = arith.constant 0 : index
    %17 = vector.load %arg11[%c2, %c0_12, %c0_13] : memref<15x1x64xf32, #tpu.memory_space<vmem>>, vector<1x1x64xf32>
    %18 = vector.shape_cast %17 : vector<1x1x64xf32> to vector<1x64xf32>
    %c3 = arith.constant 3 : index
    %c0_14 = arith.constant 0 : index
    %c0_15 = arith.constant 0 : index
    %19 = vector.load %arg11[%c3, %c0_14, %c0_15] : memref<15x1x64xf32, #tpu.memory_space<vmem>>, vector<1x1x64xf32>
    %20 = vector.shape_cast %19 : vector<1x1x64xf32> to vector<1x64xf32>
    %c4 = arith.constant 4 : index
    %c0_16 = arith.constant 0 : index
    %c0_17 = arith.constant 0 : index
    %21 = vector.load %arg11[%c4, %c0_16, %c0_17] : memref<15x1x64xf32, #tpu.memory_space<vmem>>, vector<1x1x64xf32>
    %22 = vector.shape_cast %21 : vector<1x1x64xf32> to vector<1x64xf32>
    %c5 = arith.constant 5 : index
    %c0_18 = arith.constant 0 : index
    %c0_19 = arith.constant 0 : index
    %23 = vector.load %arg11[%c5, %c0_18, %c0_19] : memref<15x1x64xf32, #tpu.memory_space<vmem>>, vector<1x1x64xf32>
    %24 = vector.shape_cast %23 : vector<1x1x64xf32> to vector<1x64xf32>
    %cst_20 = arith.constant dense<0.000000e+00> : vector<30xf32>
    %25 = vector.multi_reduction <add>, %11, %cst_20 [1] : vector<30x64xf32> to vector<30xf32>
    %26 = vector.shape_cast %25 : vector<30xf32> to vector<30x1xf32>
    %cst_21 = arith.constant 6.400000e+01 : f32
    %27 = vector.broadcast %cst_21 : f32 to vector<30x1xf32>
    %28 = arith.divf %26, %27 : vector<30x1xf32>
    %29 = vector.broadcast %28 : vector<30x1xf32> to vector<30x64xf32>
    %30 = arith.subf %11, %29 : vector<30x64xf32>
    %31 = arith.mulf %30, %30 : vector<30x64xf32>
    %cst_22 = arith.constant dense<0.000000e+00> : vector<30xf32>
    %32 = vector.multi_reduction <add>, %31, %cst_22 [1] : vector<30x64xf32> to vector<30xf32>
    %33 = vector.shape_cast %32 : vector<30xf32> to vector<30x1xf32>
    %cst_23 = arith.constant 6.400000e+01 : f32
    %34 = vector.broadcast %cst_23 : f32 to vector<30x1xf32>
    %35 = arith.divf %33, %34 : vector<30x1xf32>
    %cst_24 = arith.constant 9.99999997E-7 : f32
    %36 = vector.broadcast %cst_24 : f32 to vector<30x1xf32>
    %37 = arith.addf %35, %36 : vector<30x1xf32>
    %38 = math.rsqrt %37 : vector<30x1xf32>
    %39 = vector.broadcast %38 : vector<30x1xf32> to vector<30x64xf32>
    %40 = arith.mulf %30, %39 : vector<30x64xf32>
    %41 = vector.broadcast %14 : vector<1x64xf32> to vector<30x64xf32>
    %42 = arith.mulf %40, %41 : vector<30x64xf32>
    %43 = vector.broadcast %16 : vector<1x64xf32> to vector<30x64xf32>
    %44 = arith.addf %42, %43 : vector<30x64xf32>
    %45 = arith.truncf %44 : vector<30x64xf32> to vector<30x64xbf16>
    %c0_25 = arith.constant 0 : index
    %c0_26 = arith.constant 0 : index
    %c0_27 = arith.constant 0 : index
    %46 = vector.load %arg7[%c0_25, %c0_26, %c0_27] : memref<2x64x64xbf16, #tpu.memory_space<vmem>>, vector<1x64x64xbf16>
    %47 = vector.shape_cast %46 : vector<1x64x64xbf16> to vector<64x64xbf16>
    %c0_28 = arith.constant 0 : index
    %c0_29 = arith.constant 0 : index
    %c0_30 = arith.constant 0 : index
    %48 = vector.load %arg5[%c0_28, %c0_29, %c0_30] : memref<12x64x32xbf16, #tpu.memory_space<vmem>>, vector<1x64x32xbf16>
    %49 = vector.shape_cast %48 : vector<1x64x32xbf16> to vector<64x32xbf16>
    %cst_31 = arith.constant dense<0.000000e+00> : vector<30x32xf32>
    %50 = tpu.matmul %45, %49, %cst_31 {dimension_numbers = #tpu.dot_dimension_numbers<[1], [0], [0], [1], [0, 0, 1, 1], [], []>} : vector<30x64xbf16>, vector<64x32xbf16>, vector<30x32xf32> -> vector<30x32xf32>
    %c0_32 = arith.constant 0 : index
    %c0_33 = arith.constant 0 : index
    %c0_34 = arith.constant 0 : index
    %51 = vector.load %arg6[%c0_32, %c0_33, %c0_34] : memref<12x1x32xf32, #tpu.memory_space<vmem>>, vector<1x1x32xf32>
    %52 = vector.shape_cast %51 : vector<1x1x32xf32> to vector<1x32xf32>
    %53 = vector.broadcast %52 : vector<1x32xf32> to vector<30x32xf32>
    %54 = arith.addf %50, %53 : vector<30x32xf32>
    %c2_35 = arith.constant 2 : index
    %c0_36 = arith.constant 0 : index
    %c0_37 = arith.constant 0 : index
    %55 = vector.load %arg5[%c2_35, %c0_36, %c0_37] : memref<12x64x32xbf16, #tpu.memory_space<vmem>>, vector<1x64x32xbf16>
    %56 = vector.shape_cast %55 : vector<1x64x32xbf16> to vector<64x32xbf16>
    %cst_38 = arith.constant dense<0.000000e+00> : vector<30x32xf32>
    %57 = tpu.matmul %45, %56, %cst_38 {dimension_numbers = #tpu.dot_dimension_numbers<[1], [0], [0], [1], [0, 0, 1, 1], [], []>} : vector<30x64xbf16>, vector<64x32xbf16>, vector<30x32xf32> -> vector<30x32xf32>
    %c2_39 = arith.constant 2 : index
    %c0_40 = arith.constant 0 : index
    %c0_41 = arith.constant 0 : index
    %58 = vector.load %arg6[%c2_39, %c0_40, %c0_41] : memref<12x1x32xf32, #tpu.memory_space<vmem>>, vector<1x1x32xf32>
    %59 = vector.shape_cast %58 : vector<1x1x32xf32> to vector<1x32xf32>
    %60 = vector.broadcast %59 : vector<1x32xf32> to vector<30x32xf32>
    %61 = arith.addf %57, %60 : vector<30x32xf32>
    %c4_42 = arith.constant 4 : index
    %c0_43 = arith.constant 0 : index
    %c0_44 = arith.constant 0 : index
    %62 = vector.load %arg5[%c4_42, %c0_43, %c0_44] : memref<12x64x32xbf16, #tpu.memory_space<vmem>>, vector<1x64x32xbf16>
    %63 = vector.shape_cast %62 : vector<1x64x32xbf16> to vector<64x32xbf16>
    %cst_45 = arith.constant dense<0.000000e+00> : vector<30x32xf32>
    %64 = tpu.matmul %45, %63, %cst_45 {dimension_numbers = #tpu.dot_dimension_numbers<[1], [0], [0], [1], [0, 0, 1, 1], [], []>} : vector<30x64xbf16>, vector<64x32xbf16>, vector<30x32xf32> -> vector<30x32xf32>
    %c4_46 = arith.constant 4 : index
    %c0_47 = arith.constant 0 : index
    %c0_48 = arith.constant 0 : index
    %65 = vector.load %arg6[%c4_46, %c0_47, %c0_48] : memref<12x1x32xf32, #tpu.memory_space<vmem>>, vector<1x1x32xf32>
    %66 = vector.shape_cast %65 : vector<1x1x32xf32> to vector<1x32xf32>
    %67 = vector.broadcast %66 : vector<1x32xf32> to vector<30x32xf32>
    %68 = arith.addf %64, %67 : vector<30x32xf32>
    %69 = arith.truncf %54 : vector<30x32xf32> to vector<30x32xbf16>
    %70 = arith.truncf %61 : vector<30x32xf32> to vector<30x32xbf16>
    %cst_49 = arith.constant dense<0.000000e+00> : vector<30x30xf32>
    %71 = tpu.matmul %69, %70, %cst_49 {dimension_numbers = #tpu.dot_dimension_numbers<[1], [1], [0], [0], [0, 0, 1, 0], [], []>} : vector<30x32xbf16>, vector<30x32xbf16>, vector<30x30xf32> -> vector<30x30xf32>
    %72 = arith.addf %71, %12 : vector<30x30xf32>
    %cst_50 = arith.constant dense<0xFF800000> : vector<30xf32>
    %73 = vector.multi_reduction <maximumf>, %72, %cst_50 [1] : vector<30x30xf32> to vector<30xf32>
    %74 = vector.shape_cast %73 : vector<30xf32> to vector<30x1xf32>
    %75 = vector.broadcast %74 : vector<30x1xf32> to vector<30x30xf32>
    %76 = arith.subf %72, %75 : vector<30x30xf32>
    %77 = math.exp %76 : vector<30x30xf32>
    %cst_51 = arith.constant dense<0.000000e+00> : vector<30xf32>
    %78 = vector.multi_reduction <add>, %77, %cst_51 [1] : vector<30x30xf32> to vector<30xf32>
    %79 = vector.shape_cast %78 : vector<30xf32> to vector<30x1xf32>
    %80 = tpu.reciprocal %79 {approx = true} : vector<30x1xf32> -> vector<30x1xf32>
    %81 = vector.broadcast %80 : vector<30x1xf32> to vector<30x30xf32>
    %82 = arith.mulf %77, %81 : vector<30x30xf32>
    %83 = arith.truncf %82 : vector<30x30xf32> to vector<30x30xbf16>
    %84 = arith.truncf %68 : vector<30x32xf32> to vector<30x32xbf16>
    %cst_52 = arith.constant dense<0.000000e+00> : vector<30x32xf32>
    %85 = tpu.matmul %83, %84, %cst_52 {dimension_numbers = #tpu.dot_dimension_numbers<[1], [0], [0], [1], [0, 0, 1, 1], [], []>} : vector<30x30xbf16>, vector<30x32xbf16>, vector<30x32xf32> -> vector<30x32xf32>
    %86 = arith.truncf %85 : vector<30x32xf32> to vector<30x32xbf16>
    %87 = vector.extract_strided_slice %47 {offsets = [0, 0], sizes = [32, 64], strides = [1, 1]} : vector<64x64xbf16> to vector<32x64xbf16>
    %cst_53 = arith.constant dense<0.000000e+00> : vector<30x64xf32>
    %88 = tpu.matmul %86, %87, %cst_53 {dimension_numbers = #tpu.dot_dimension_numbers<[1], [0], [0], [1], [0, 0, 1, 1], [], []>} : vector<30x32xbf16>, vector<32x64xbf16>, vector<30x64xf32> -> vector<30x64xf32>
    %c1_54 = arith.constant 1 : index
    %c0_55 = arith.constant 0 : index
    %c0_56 = arith.constant 0 : index
    %89 = vector.load %arg5[%c1_54, %c0_55, %c0_56] : memref<12x64x32xbf16, #tpu.memory_space<vmem>>, vector<1x64x32xbf16>
    %90 = vector.shape_cast %89 : vector<1x64x32xbf16> to vector<64x32xbf16>
    %cst_57 = arith.constant dense<0.000000e+00> : vector<30x32xf32>
    %91 = tpu.matmul %45, %90, %cst_57 {dimension_numbers = #tpu.dot_dimension_numbers<[1], [0], [0], [1], [0, 0, 1, 1], [], []>} : vector<30x64xbf16>, vector<64x32xbf16>, vector<30x32xf32> -> vector<30x32xf32>
    %c1_58 = arith.constant 1 : index
    %c0_59 = arith.constant 0 : index
    %c0_60 = arith.constant 0 : index
    %92 = vector.load %arg6[%c1_58, %c0_59, %c0_60] : memref<12x1x32xf32, #tpu.memory_space<vmem>>, vector<1x1x32xf32>
    %93 = vector.shape_cast %92 : vector<1x1x32xf32> to vector<1x32xf32>
    %94 = vector.broadcast %93 : vector<1x32xf32> to vector<30x32xf32>
    %95 = arith.addf %91, %94 : vector<30x32xf32>
    %c3_61 = arith.constant 3 : index
    %c0_62 = arith.constant 0 : index
    %c0_63 = arith.constant 0 : index
    %96 = vector.load %arg5[%c3_61, %c0_62, %c0_63] : memref<12x64x32xbf16, #tpu.memory_space<vmem>>, vector<1x64x32xbf16>
    %97 = vector.shape_cast %96 : vector<1x64x32xbf16> to vector<64x32xbf16>
    %cst_64 = arith.constant dense<0.000000e+00> : vector<30x32xf32>
    %98 = tpu.matmul %45, %97, %cst_64 {dimension_numbers = #tpu.dot_dimension_numbers<[1], [0], [0], [1], [0, 0, 1, 1], [], []>} : vector<30x64xbf16>, vector<64x32xbf16>, vector<30x32xf32> -> vector<30x32xf32>
    %c3_65 = arith.constant 3 : index
    %c0_66 = arith.constant 0 : index
    %c0_67 = arith.constant 0 : index
    %99 = vector.load %arg6[%c3_65, %c0_66, %c0_67] : memref<12x1x32xf32, #tpu.memory_space<vmem>>, vector<1x1x32xf32>
    %100 = vector.shape_cast %99 : vector<1x1x32xf32> to vector<1x32xf32>
    %101 = vector.broadcast %100 : vector<1x32xf32> to vector<30x32xf32>
    %102 = arith.addf %98, %101 : vector<30x32xf32>
    %c5_68 = arith.constant 5 : index
    %c0_69 = arith.constant 0 : index
    %c0_70 = arith.constant 0 : index
    %103 = vector.load %arg5[%c5_68, %c0_69, %c0_70] : memref<12x64x32xbf16, #tpu.memory_space<vmem>>, vector<1x64x32xbf16>
    %104 = vector.shape_cast %103 : vector<1x64x32xbf16> to vector<64x32xbf16>
    %cst_71 = arith.constant dense<0.000000e+00> : vector<30x32xf32>
    %105 = tpu.matmul %45, %104, %cst_71 {dimension_numbers = #tpu.dot_dimension_numbers<[1], [0], [0], [1], [0, 0, 1, 1], [], []>} : vector<30x64xbf16>, vector<64x32xbf16>, vector<30x32xf32> -> vector<30x32xf32>
    %c5_72 = arith.constant 5 : index
    %c0_73 = arith.constant 0 : index
    %c0_74 = arith.constant 0 : index
    %106 = vector.load %arg6[%c5_72, %c0_73, %c0_74] : memref<12x1x32xf32, #tpu.memory_space<vmem>>, vector<1x1x32xf32>
    %107 = vector.shape_cast %106 : vector<1x1x32xf32> to vector<1x32xf32>
    %108 = vector.broadcast %107 : vector<1x32xf32> to vector<30x32xf32>
    %109 = arith.addf %105, %108 : vector<30x32xf32>
    %110 = arith.truncf %95 : vector<30x32xf32> to vector<30x32xbf16>
    %111 = arith.truncf %102 : vector<30x32xf32> to vector<30x32xbf16>
    %cst_75 = arith.constant dense<0.000000e+00> : vector<30x30xf32>
    %112 = tpu.matmul %110, %111, %cst_75 {dimension_numbers = #tpu.dot_dimension_numbers<[1], [1], [0], [0], [0, 0, 1, 0], [], []>} : vector<30x32xbf16>, vector<30x32xbf16>, vector<30x30xf32> -> vector<30x30xf32>
    %113 = arith.addf %112, %12 : vector<30x30xf32>
    %cst_76 = arith.constant dense<0xFF800000> : vector<30xf32>
    %114 = vector.multi_reduction <maximumf>, %113, %cst_76 [1] : vector<30x30xf32> to vector<30xf32>
    %115 = vector.shape_cast %114 : vector<30xf32> to vector<30x1xf32>
    %116 = vector.broadcast %115 : vector<30x1xf32> to vector<30x30xf32>
    %117 = arith.subf %113, %116 : vector<30x30xf32>
    %118 = math.exp %117 : vector<30x30xf32>
    %cst_77 = arith.constant dense<0.000000e+00> : vector<30xf32>
    %119 = vector.multi_reduction <add>, %118, %cst_77 [1] : vector<30x30xf32> to vector<30xf32>
    %120 = vector.shape_cast %119 : vector<30xf32> to vector<30x1xf32>
    %121 = tpu.reciprocal %120 {approx = true} : vector<30x1xf32> -> vector<30x1xf32>
    %122 = vector.broadcast %121 : vector<30x1xf32> to vector<30x30xf32>
    %123 = arith.mulf %118, %122 : vector<30x30xf32>
    %124 = arith.truncf %123 : vector<30x30xf32> to vector<30x30xbf16>
    %125 = arith.truncf %109 : vector<30x32xf32> to vector<30x32xbf16>
    %cst_78 = arith.constant dense<0.000000e+00> : vector<30x32xf32>
    %126 = tpu.matmul %124, %125, %cst_78 {dimension_numbers = #tpu.dot_dimension_numbers<[1], [0], [0], [1], [0, 0, 1, 1], [], []>} : vector<30x30xbf16>, vector<30x32xbf16>, vector<30x32xf32> -> vector<30x32xf32>
    %127 = arith.truncf %126 : vector<30x32xf32> to vector<30x32xbf16>
    %128 = vector.extract_strided_slice %47 {offsets = [32, 0], sizes = [32, 64], strides = [1, 1]} : vector<64x64xbf16> to vector<32x64xbf16>
    %cst_79 = arith.constant dense<0.000000e+00> : vector<30x64xf32>
    %129 = tpu.matmul %127, %128, %cst_79 {dimension_numbers = #tpu.dot_dimension_numbers<[1], [0], [0], [1], [0, 0, 1, 1], [], []>} : vector<30x32xbf16>, vector<32x64xbf16>, vector<30x64xf32> -> vector<30x64xf32>
    %130 = arith.addf %88, %129 : vector<30x64xf32>
    %131 = arith.addf %11, %130 : vector<30x64xf32>
    %132 = vector.broadcast %22 : vector<1x64xf32> to vector<30x64xf32>
    %133 = arith.addf %131, %132 : vector<30x64xf32>
    %cst_80 = arith.constant dense<0.000000e+00> : vector<30xf32>
    %134 = vector.multi_reduction <add>, %133, %cst_80 [1] : vector<30x64xf32> to vector<30xf32>
    %135 = vector.shape_cast %134 : vector<30xf32> to vector<30x1xf32>
    %cst_81 = arith.constant 6.400000e+01 : f32
    %136 = vector.broadcast %cst_81 : f32 to vector<30x1xf32>
    %137 = arith.divf %135, %136 : vector<30x1xf32>
    %138 = vector.broadcast %137 : vector<30x1xf32> to vector<30x64xf32>
    %139 = arith.subf %133, %138 : vector<30x64xf32>
    %140 = arith.mulf %139, %139 : vector<30x64xf32>
    %cst_82 = arith.constant dense<0.000000e+00> : vector<30xf32>
    %141 = vector.multi_reduction <add>, %140, %cst_82 [1] : vector<30x64xf32> to vector<30xf32>
    %142 = vector.shape_cast %141 : vector<30xf32> to vector<30x1xf32>
    %cst_83 = arith.constant 6.400000e+01 : f32
    %143 = vector.broadcast %cst_83 : f32 to vector<30x1xf32>
    %144 = arith.divf %142, %143 : vector<30x1xf32>
    %cst_84 = arith.constant 9.99999997E-7 : f32
    %145 = vector.broadcast %cst_84 : f32 to vector<30x1xf32>
    %146 = arith.addf %144, %145 : vector<30x1xf32>
    %147 = math.rsqrt %146 : vector<30x1xf32>
    %148 = vector.broadcast %147 : vector<30x1xf32> to vector<30x64xf32>
    %149 = arith.mulf %139, %148 : vector<30x64xf32>
    %150 = vector.broadcast %18 : vector<1x64xf32> to vector<30x64xf32>
    %151 = arith.mulf %149, %150 : vector<30x64xf32>
    %152 = vector.broadcast %20 : vector<1x64xf32> to vector<30x64xf32>
    %153 = arith.addf %151, %152 : vector<30x64xf32>
    %c0_85 = arith.constant 0 : index
    %c0_86 = arith.constant 0 : index
    %c0_87 = arith.constant 0 : index
    %154 = vector.load %arg8[%c0_85, %c0_86, %c0_87] : memref<2x64x128xbf16, #tpu.memory_space<vmem>>, vector<1x64x128xbf16>
    %155 = vector.shape_cast %154 : vector<1x64x128xbf16> to vector<64x128xbf16>
    %156 = arith.truncf %153 : vector<30x64xf32> to vector<30x64xbf16>
    %cst_88 = arith.constant dense<0.000000e+00> : vector<30x128xf32>
    %157 = tpu.matmul %156, %155, %cst_88 {dimension_numbers = #tpu.dot_dimension_numbers<[1], [0], [0], [1], [0, 0, 1, 1], [], []>} : vector<30x64xbf16>, vector<64x128xbf16>, vector<30x128xf32> -> vector<30x128xf32>
    %c0_89 = arith.constant 0 : index
    %c0_90 = arith.constant 0 : index
    %c0_91 = arith.constant 0 : index
    %158 = vector.load %arg9[%c0_89, %c0_90, %c0_91] : memref<2x1x128xf32, #tpu.memory_space<vmem>>, vector<1x1x128xf32>
    %159 = vector.shape_cast %158 : vector<1x1x128xf32> to vector<1x128xf32>
    %160 = vector.broadcast %159 : vector<1x128xf32> to vector<30x128xf32>
    %161 = arith.addf %157, %160 : vector<30x128xf32>
    %cst_92 = arith.constant 5.000000e-01 : f32
    %162 = vector.broadcast %cst_92 : f32 to vector<30x128xf32>
    %163 = arith.mulf %162, %161 : vector<30x128xf32>
    %cst_93 = arith.constant 4.471500e-02 : f32
    %164 = vector.broadcast %cst_93 : f32 to vector<30x128xf32>
    %165 = arith.mulf %164, %161 : vector<30x128xf32>
    %166 = arith.mulf %165, %161 : vector<30x128xf32>
    %167 = arith.mulf %166, %161 : vector<30x128xf32>
    %168 = arith.addf %161, %167 : vector<30x128xf32>
    %cst_94 = arith.constant 0.797884583 : f32
    %169 = vector.broadcast %cst_94 : f32 to vector<30x128xf32>
    %170 = arith.mulf %169, %168 : vector<30x128xf32>
    %171 = math.tanh %170 : vector<30x128xf32>
    %cst_95 = arith.constant 1.000000e+00 : f32
    %172 = vector.broadcast %cst_95 : f32 to vector<30x128xf32>
    %173 = arith.addf %172, %171 : vector<30x128xf32>
    %174 = arith.mulf %163, %173 : vector<30x128xf32>
    %c0_96 = arith.constant 0 : index
    %c0_97 = arith.constant 0 : index
    %c0_98 = arith.constant 0 : index
    %175 = vector.load %arg10[%c0_96, %c0_97, %c0_98] : memref<2x128x64xbf16, #tpu.memory_space<vmem>>, vector<1x128x64xbf16>
    %176 = vector.shape_cast %175 : vector<1x128x64xbf16> to vector<128x64xbf16>
    %177 = arith.truncf %174 : vector<30x128xf32> to vector<30x128xbf16>
    %cst_99 = arith.constant dense<0.000000e+00> : vector<30x64xf32>
    %178 = tpu.matmul %177, %176, %cst_99 {dimension_numbers = #tpu.dot_dimension_numbers<[1], [0], [0], [1], [0, 0, 1, 1], [], []>} : vector<30x128xbf16>, vector<128x64xbf16>, vector<30x64xf32> -> vector<30x64xf32>
    %179 = arith.addf %133, %178 : vector<30x64xf32>
    %180 = vector.broadcast %24 : vector<1x64xf32> to vector<30x64xf32>
    %181 = arith.addf %179, %180 : vector<30x64xf32>
    %c6 = arith.constant 6 : index
    %c0_100 = arith.constant 0 : index
    %c0_101 = arith.constant 0 : index
    %182 = vector.load %arg11[%c6, %c0_100, %c0_101] : memref<15x1x64xf32, #tpu.memory_space<vmem>>, vector<1x1x64xf32>
    %183 = vector.shape_cast %182 : vector<1x1x64xf32> to vector<1x64xf32>
    %c7 = arith.constant 7 : index
    %c0_102 = arith.constant 0 : index
    %c0_103 = arith.constant 0 : index
    %184 = vector.load %arg11[%c7, %c0_102, %c0_103] : memref<15x1x64xf32, #tpu.memory_space<vmem>>, vector<1x1x64xf32>
    %185 = vector.shape_cast %184 : vector<1x1x64xf32> to vector<1x64xf32>
    %c8 = arith.constant 8 : index
    %c0_104 = arith.constant 0 : index
    %c0_105 = arith.constant 0 : index
    %186 = vector.load %arg11[%c8, %c0_104, %c0_105] : memref<15x1x64xf32, #tpu.memory_space<vmem>>, vector<1x1x64xf32>
    %187 = vector.shape_cast %186 : vector<1x1x64xf32> to vector<1x64xf32>
    %c9 = arith.constant 9 : index
    %c0_106 = arith.constant 0 : index
    %c0_107 = arith.constant 0 : index
    %188 = vector.load %arg11[%c9, %c0_106, %c0_107] : memref<15x1x64xf32, #tpu.memory_space<vmem>>, vector<1x1x64xf32>
    %189 = vector.shape_cast %188 : vector<1x1x64xf32> to vector<1x64xf32>
    %c10 = arith.constant 10 : index
    %c0_108 = arith.constant 0 : index
    %c0_109 = arith.constant 0 : index
    %190 = vector.load %arg11[%c10, %c0_108, %c0_109] : memref<15x1x64xf32, #tpu.memory_space<vmem>>, vector<1x1x64xf32>
    %191 = vector.shape_cast %190 : vector<1x1x64xf32> to vector<1x64xf32>
    %c11 = arith.constant 11 : index
    %c0_110 = arith.constant 0 : index
    %c0_111 = arith.constant 0 : index
    %192 = vector.load %arg11[%c11, %c0_110, %c0_111] : memref<15x1x64xf32, #tpu.memory_space<vmem>>, vector<1x1x64xf32>
    %193 = vector.shape_cast %192 : vector<1x1x64xf32> to vector<1x64xf32>
    %cst_112 = arith.constant dense<0.000000e+00> : vector<30xf32>
    %194 = vector.multi_reduction <add>, %181, %cst_112 [1] : vector<30x64xf32> to vector<30xf32>
    %195 = vector.shape_cast %194 : vector<30xf32> to vector<30x1xf32>
    %cst_113 = arith.constant 6.400000e+01 : f32
    %196 = vector.broadcast %cst_113 : f32 to vector<30x1xf32>
    %197 = arith.divf %195, %196 : vector<30x1xf32>
    %198 = vector.broadcast %197 : vector<30x1xf32> to vector<30x64xf32>
    %199 = arith.subf %181, %198 : vector<30x64xf32>
    %200 = arith.mulf %199, %199 : vector<30x64xf32>
    %cst_114 = arith.constant dense<0.000000e+00> : vector<30xf32>
    %201 = vector.multi_reduction <add>, %200, %cst_114 [1] : vector<30x64xf32> to vector<30xf32>
    %202 = vector.shape_cast %201 : vector<30xf32> to vector<30x1xf32>
    %cst_115 = arith.constant 6.400000e+01 : f32
    %203 = vector.broadcast %cst_115 : f32 to vector<30x1xf32>
    %204 = arith.divf %202, %203 : vector<30x1xf32>
    %cst_116 = arith.constant 9.99999997E-7 : f32
    %205 = vector.broadcast %cst_116 : f32 to vector<30x1xf32>
    %206 = arith.addf %204, %205 : vector<30x1xf32>
    %207 = math.rsqrt %206 : vector<30x1xf32>
    %208 = vector.broadcast %207 : vector<30x1xf32> to vector<30x64xf32>
    %209 = arith.mulf %199, %208 : vector<30x64xf32>
    %210 = vector.broadcast %183 : vector<1x64xf32> to vector<30x64xf32>
    %211 = arith.mulf %209, %210 : vector<30x64xf32>
    %212 = vector.broadcast %185 : vector<1x64xf32> to vector<30x64xf32>
    %213 = arith.addf %211, %212 : vector<30x64xf32>
    %214 = arith.truncf %213 : vector<30x64xf32> to vector<30x64xbf16>
    %c1_117 = arith.constant 1 : index
    %c0_118 = arith.constant 0 : index
    %c0_119 = arith.constant 0 : index
    %215 = vector.load %arg7[%c1_117, %c0_118, %c0_119] : memref<2x64x64xbf16, #tpu.memory_space<vmem>>, vector<1x64x64xbf16>
    %216 = vector.shape_cast %215 : vector<1x64x64xbf16> to vector<64x64xbf16>
    %c6_120 = arith.constant 6 : index
    %c0_121 = arith.constant 0 : index
    %c0_122 = arith.constant 0 : index
    %217 = vector.load %arg5[%c6_120, %c0_121, %c0_122] : memref<12x64x32xbf16, #tpu.memory_space<vmem>>, vector<1x64x32xbf16>
    %218 = vector.shape_cast %217 : vector<1x64x32xbf16> to vector<64x32xbf16>
    %cst_123 = arith.constant dense<0.000000e+00> : vector<30x32xf32>
    %219 = tpu.matmul %214, %218, %cst_123 {dimension_numbers = #tpu.dot_dimension_numbers<[1], [0], [0], [1], [0, 0, 1, 1], [], []>} : vector<30x64xbf16>, vector<64x32xbf16>, vector<30x32xf32> -> vector<30x32xf32>
    %c6_124 = arith.constant 6 : index
    %c0_125 = arith.constant 0 : index
    %c0_126 = arith.constant 0 : index
    %220 = vector.load %arg6[%c6_124, %c0_125, %c0_126] : memref<12x1x32xf32, #tpu.memory_space<vmem>>, vector<1x1x32xf32>
    %221 = vector.shape_cast %220 : vector<1x1x32xf32> to vector<1x32xf32>
    %222 = vector.broadcast %221 : vector<1x32xf32> to vector<30x32xf32>
    %223 = arith.addf %219, %222 : vector<30x32xf32>
    %c8_127 = arith.constant 8 : index
    %c0_128 = arith.constant 0 : index
    %c0_129 = arith.constant 0 : index
    %224 = vector.load %arg5[%c8_127, %c0_128, %c0_129] : memref<12x64x32xbf16, #tpu.memory_space<vmem>>, vector<1x64x32xbf16>
    %225 = vector.shape_cast %224 : vector<1x64x32xbf16> to vector<64x32xbf16>
    %cst_130 = arith.constant dense<0.000000e+00> : vector<30x32xf32>
    %226 = tpu.matmul %214, %225, %cst_130 {dimension_numbers = #tpu.dot_dimension_numbers<[1], [0], [0], [1], [0, 0, 1, 1], [], []>} : vector<30x64xbf16>, vector<64x32xbf16>, vector<30x32xf32> -> vector<30x32xf32>
    %c8_131 = arith.constant 8 : index
    %c0_132 = arith.constant 0 : index
    %c0_133 = arith.constant 0 : index
    %227 = vector.load %arg6[%c8_131, %c0_132, %c0_133] : memref<12x1x32xf32, #tpu.memory_space<vmem>>, vector<1x1x32xf32>
    %228 = vector.shape_cast %227 : vector<1x1x32xf32> to vector<1x32xf32>
    %229 = vector.broadcast %228 : vector<1x32xf32> to vector<30x32xf32>
    %230 = arith.addf %226, %229 : vector<30x32xf32>
    %c10_134 = arith.constant 10 : index
    %c0_135 = arith.constant 0 : index
    %c0_136 = arith.constant 0 : index
    %231 = vector.load %arg5[%c10_134, %c0_135, %c0_136] : memref<12x64x32xbf16, #tpu.memory_space<vmem>>, vector<1x64x32xbf16>
    %232 = vector.shape_cast %231 : vector<1x64x32xbf16> to vector<64x32xbf16>
    %cst_137 = arith.constant dense<0.000000e+00> : vector<30x32xf32>
    %233 = tpu.matmul %214, %232, %cst_137 {dimension_numbers = #tpu.dot_dimension_numbers<[1], [0], [0], [1], [0, 0, 1, 1], [], []>} : vector<30x64xbf16>, vector<64x32xbf16>, vector<30x32xf32> -> vector<30x32xf32>
    %c10_138 = arith.constant 10 : index
    %c0_139 = arith.constant 0 : index
    %c0_140 = arith.constant 0 : index
    %234 = vector.load %arg6[%c10_138, %c0_139, %c0_140] : memref<12x1x32xf32, #tpu.memory_space<vmem>>, vector<1x1x32xf32>
    %235 = vector.shape_cast %234 : vector<1x1x32xf32> to vector<1x32xf32>
    %236 = vector.broadcast %235 : vector<1x32xf32> to vector<30x32xf32>
    %237 = arith.addf %233, %236 : vector<30x32xf32>
    %238 = arith.truncf %223 : vector<30x32xf32> to vector<30x32xbf16>
    %239 = arith.truncf %230 : vector<30x32xf32> to vector<30x32xbf16>
    %cst_141 = arith.constant dense<0.000000e+00> : vector<30x30xf32>
    %240 = tpu.matmul %238, %239, %cst_141 {dimension_numbers = #tpu.dot_dimension_numbers<[1], [1], [0], [0], [0, 0, 1, 0], [], []>} : vector<30x32xbf16>, vector<30x32xbf16>, vector<30x30xf32> -> vector<30x30xf32>
    %241 = arith.addf %240, %12 : vector<30x30xf32>
    %cst_142 = arith.constant dense<0xFF800000> : vector<30xf32>
    %242 = vector.multi_reduction <maximumf>, %241, %cst_142 [1] : vector<30x30xf32> to vector<30xf32>
    %243 = vector.shape_cast %242 : vector<30xf32> to vector<30x1xf32>
    %244 = vector.broadcast %243 : vector<30x1xf32> to vector<30x30xf32>
    %245 = arith.subf %241, %244 : vector<30x30xf32>
    %246 = math.exp %245 : vector<30x30xf32>
    %cst_143 = arith.constant dense<0.000000e+00> : vector<30xf32>
    %247 = vector.multi_reduction <add>, %246, %cst_143 [1] : vector<30x30xf32> to vector<30xf32>
    %248 = vector.shape_cast %247 : vector<30xf32> to vector<30x1xf32>
    %249 = tpu.reciprocal %248 {approx = true} : vector<30x1xf32> -> vector<30x1xf32>
    %250 = vector.broadcast %249 : vector<30x1xf32> to vector<30x30xf32>
    %251 = arith.mulf %246, %250 : vector<30x30xf32>
    %252 = arith.truncf %251 : vector<30x30xf32> to vector<30x30xbf16>
    %253 = arith.truncf %237 : vector<30x32xf32> to vector<30x32xbf16>
    %cst_144 = arith.constant dense<0.000000e+00> : vector<30x32xf32>
    %254 = tpu.matmul %252, %253, %cst_144 {dimension_numbers = #tpu.dot_dimension_numbers<[1], [0], [0], [1], [0, 0, 1, 1], [], []>} : vector<30x30xbf16>, vector<30x32xbf16>, vector<30x32xf32> -> vector<30x32xf32>
    %255 = arith.truncf %254 : vector<30x32xf32> to vector<30x32xbf16>
    %256 = vector.extract_strided_slice %216 {offsets = [0, 0], sizes = [32, 64], strides = [1, 1]} : vector<64x64xbf16> to vector<32x64xbf16>
    %cst_145 = arith.constant dense<0.000000e+00> : vector<30x64xf32>
    %257 = tpu.matmul %255, %256, %cst_145 {dimension_numbers = #tpu.dot_dimension_numbers<[1], [0], [0], [1], [0, 0, 1, 1], [], []>} : vector<30x32xbf16>, vector<32x64xbf16>, vector<30x64xf32> -> vector<30x64xf32>
    %c7_146 = arith.constant 7 : index
    %c0_147 = arith.constant 0 : index
    %c0_148 = arith.constant 0 : index
    %258 = vector.load %arg5[%c7_146, %c0_147, %c0_148] : memref<12x64x32xbf16, #tpu.memory_space<vmem>>, vector<1x64x32xbf16>
    %259 = vector.shape_cast %258 : vector<1x64x32xbf16> to vector<64x32xbf16>
    %cst_149 = arith.constant dense<0.000000e+00> : vector<30x32xf32>
    %260 = tpu.matmul %214, %259, %cst_149 {dimension_numbers = #tpu.dot_dimension_numbers<[1], [0], [0], [1], [0, 0, 1, 1], [], []>} : vector<30x64xbf16>, vector<64x32xbf16>, vector<30x32xf32> -> vector<30x32xf32>
    %c7_150 = arith.constant 7 : index
    %c0_151 = arith.constant 0 : index
    %c0_152 = arith.constant 0 : index
    %261 = vector.load %arg6[%c7_150, %c0_151, %c0_152] : memref<12x1x32xf32, #tpu.memory_space<vmem>>, vector<1x1x32xf32>
    %262 = vector.shape_cast %261 : vector<1x1x32xf32> to vector<1x32xf32>
    %263 = vector.broadcast %262 : vector<1x32xf32> to vector<30x32xf32>
    %264 = arith.addf %260, %263 : vector<30x32xf32>
    %c9_153 = arith.constant 9 : index
    %c0_154 = arith.constant 0 : index
    %c0_155 = arith.constant 0 : index
    %265 = vector.load %arg5[%c9_153, %c0_154, %c0_155] : memref<12x64x32xbf16, #tpu.memory_space<vmem>>, vector<1x64x32xbf16>
    %266 = vector.shape_cast %265 : vector<1x64x32xbf16> to vector<64x32xbf16>
    %cst_156 = arith.constant dense<0.000000e+00> : vector<30x32xf32>
    %267 = tpu.matmul %214, %266, %cst_156 {dimension_numbers = #tpu.dot_dimension_numbers<[1], [0], [0], [1], [0, 0, 1, 1], [], []>} : vector<30x64xbf16>, vector<64x32xbf16>, vector<30x32xf32> -> vector<30x32xf32>
    %c9_157 = arith.constant 9 : index
    %c0_158 = arith.constant 0 : index
    %c0_159 = arith.constant 0 : index
    %268 = vector.load %arg6[%c9_157, %c0_158, %c0_159] : memref<12x1x32xf32, #tpu.memory_space<vmem>>, vector<1x1x32xf32>
    %269 = vector.shape_cast %268 : vector<1x1x32xf32> to vector<1x32xf32>
    %270 = vector.broadcast %269 : vector<1x32xf32> to vector<30x32xf32>
    %271 = arith.addf %267, %270 : vector<30x32xf32>
    %c11_160 = arith.constant 11 : index
    %c0_161 = arith.constant 0 : index
    %c0_162 = arith.constant 0 : index
    %272 = vector.load %arg5[%c11_160, %c0_161, %c0_162] : memref<12x64x32xbf16, #tpu.memory_space<vmem>>, vector<1x64x32xbf16>
    %273 = vector.shape_cast %272 : vector<1x64x32xbf16> to vector<64x32xbf16>
    %cst_163 = arith.constant dense<0.000000e+00> : vector<30x32xf32>
    %274 = tpu.matmul %214, %273, %cst_163 {dimension_numbers = #tpu.dot_dimension_numbers<[1], [0], [0], [1], [0, 0, 1, 1], [], []>} : vector<30x64xbf16>, vector<64x32xbf16>, vector<30x32xf32> -> vector<30x32xf32>
    %c11_164 = arith.constant 11 : index
    %c0_165 = arith.constant 0 : index
    %c0_166 = arith.constant 0 : index
    %275 = vector.load %arg6[%c11_164, %c0_165, %c0_166] : memref<12x1x32xf32, #tpu.memory_space<vmem>>, vector<1x1x32xf32>
    %276 = vector.shape_cast %275 : vector<1x1x32xf32> to vector<1x32xf32>
    %277 = vector.broadcast %276 : vector<1x32xf32> to vector<30x32xf32>
    %278 = arith.addf %274, %277 : vector<30x32xf32>
    %279 = arith.truncf %264 : vector<30x32xf32> to vector<30x32xbf16>
    %280 = arith.truncf %271 : vector<30x32xf32> to vector<30x32xbf16>
    %cst_167 = arith.constant dense<0.000000e+00> : vector<30x30xf32>
    %281 = tpu.matmul %279, %280, %cst_167 {dimension_numbers = #tpu.dot_dimension_numbers<[1], [1], [0], [0], [0, 0, 1, 0], [], []>} : vector<30x32xbf16>, vector<30x32xbf16>, vector<30x30xf32> -> vector<30x30xf32>
    %282 = arith.addf %281, %12 : vector<30x30xf32>
    %cst_168 = arith.constant dense<0xFF800000> : vector<30xf32>
    %283 = vector.multi_reduction <maximumf>, %282, %cst_168 [1] : vector<30x30xf32> to vector<30xf32>
    %284 = vector.shape_cast %283 : vector<30xf32> to vector<30x1xf32>
    %285 = vector.broadcast %284 : vector<30x1xf32> to vector<30x30xf32>
    %286 = arith.subf %282, %285 : vector<30x30xf32>
    %287 = math.exp %286 : vector<30x30xf32>
    %cst_169 = arith.constant dense<0.000000e+00> : vector<30xf32>
    %288 = vector.multi_reduction <add>, %287, %cst_169 [1] : vector<30x30xf32> to vector<30xf32>
    %289 = vector.shape_cast %288 : vector<30xf32> to vector<30x1xf32>
    %290 = tpu.reciprocal %289 {approx = true} : vector<30x1xf32> -> vector<30x1xf32>
    %291 = vector.broadcast %290 : vector<30x1xf32> to vector<30x30xf32>
    %292 = arith.mulf %287, %291 : vector<30x30xf32>
    %293 = arith.truncf %292 : vector<30x30xf32> to vector<30x30xbf16>
    %294 = arith.truncf %278 : vector<30x32xf32> to vector<30x32xbf16>
    %cst_170 = arith.constant dense<0.000000e+00> : vector<30x32xf32>
    %295 = tpu.matmul %293, %294, %cst_170 {dimension_numbers = #tpu.dot_dimension_numbers<[1], [0], [0], [1], [0, 0, 1, 1], [], []>} : vector<30x30xbf16>, vector<30x32xbf16>, vector<30x32xf32> -> vector<30x32xf32>
    %296 = arith.truncf %295 : vector<30x32xf32> to vector<30x32xbf16>
    %297 = vector.extract_strided_slice %216 {offsets = [32, 0], sizes = [32, 64], strides = [1, 1]} : vector<64x64xbf16> to vector<32x64xbf16>
    %cst_171 = arith.constant dense<0.000000e+00> : vector<30x64xf32>
    %298 = tpu.matmul %296, %297, %cst_171 {dimension_numbers = #tpu.dot_dimension_numbers<[1], [0], [0], [1], [0, 0, 1, 1], [], []>} : vector<30x32xbf16>, vector<32x64xbf16>, vector<30x64xf32> -> vector<30x64xf32>
    %299 = arith.addf %257, %298 : vector<30x64xf32>
    %300 = arith.addf %181, %299 : vector<30x64xf32>
    %301 = vector.broadcast %191 : vector<1x64xf32> to vector<30x64xf32>
    %302 = arith.addf %300, %301 : vector<30x64xf32>
    %cst_172 = arith.constant dense<0.000000e+00> : vector<30xf32>
    %303 = vector.multi_reduction <add>, %302, %cst_172 [1] : vector<30x64xf32> to vector<30xf32>
    %304 = vector.shape_cast %303 : vector<30xf32> to vector<30x1xf32>
    %cst_173 = arith.constant 6.400000e+01 : f32
    %305 = vector.broadcast %cst_173 : f32 to vector<30x1xf32>
    %306 = arith.divf %304, %305 : vector<30x1xf32>
    %307 = vector.broadcast %306 : vector<30x1xf32> to vector<30x64xf32>
    %308 = arith.subf %302, %307 : vector<30x64xf32>
    %309 = arith.mulf %308, %308 : vector<30x64xf32>
    %cst_174 = arith.constant dense<0.000000e+00> : vector<30xf32>
    %310 = vector.multi_reduction <add>, %309, %cst_174 [1] : vector<30x64xf32> to vector<30xf32>
    %311 = vector.shape_cast %310 : vector<30xf32> to vector<30x1xf32>
    %cst_175 = arith.constant 6.400000e+01 : f32
    %312 = vector.broadcast %cst_175 : f32 to vector<30x1xf32>
    %313 = arith.divf %311, %312 : vector<30x1xf32>
    %cst_176 = arith.constant 9.99999997E-7 : f32
    %314 = vector.broadcast %cst_176 : f32 to vector<30x1xf32>
    %315 = arith.addf %313, %314 : vector<30x1xf32>
    %316 = math.rsqrt %315 : vector<30x1xf32>
    %317 = vector.broadcast %316 : vector<30x1xf32> to vector<30x64xf32>
    %318 = arith.mulf %308, %317 : vector<30x64xf32>
    %319 = vector.broadcast %187 : vector<1x64xf32> to vector<30x64xf32>
    %320 = arith.mulf %318, %319 : vector<30x64xf32>
    %321 = vector.broadcast %189 : vector<1x64xf32> to vector<30x64xf32>
    %322 = arith.addf %320, %321 : vector<30x64xf32>
    %c1_177 = arith.constant 1 : index
    %c0_178 = arith.constant 0 : index
    %c0_179 = arith.constant 0 : index
    %323 = vector.load %arg8[%c1_177, %c0_178, %c0_179] : memref<2x64x128xbf16, #tpu.memory_space<vmem>>, vector<1x64x128xbf16>
    %324 = vector.shape_cast %323 : vector<1x64x128xbf16> to vector<64x128xbf16>
    %325 = arith.truncf %322 : vector<30x64xf32> to vector<30x64xbf16>
    %cst_180 = arith.constant dense<0.000000e+00> : vector<30x128xf32>
    %326 = tpu.matmul %325, %324, %cst_180 {dimension_numbers = #tpu.dot_dimension_numbers<[1], [0], [0], [1], [0, 0, 1, 1], [], []>} : vector<30x64xbf16>, vector<64x128xbf16>, vector<30x128xf32> -> vector<30x128xf32>
    %c1_181 = arith.constant 1 : index
    %c0_182 = arith.constant 0 : index
    %c0_183 = arith.constant 0 : index
    %327 = vector.load %arg9[%c1_181, %c0_182, %c0_183] : memref<2x1x128xf32, #tpu.memory_space<vmem>>, vector<1x1x128xf32>
    %328 = vector.shape_cast %327 : vector<1x1x128xf32> to vector<1x128xf32>
    %329 = vector.broadcast %328 : vector<1x128xf32> to vector<30x128xf32>
    %330 = arith.addf %326, %329 : vector<30x128xf32>
    %cst_184 = arith.constant 5.000000e-01 : f32
    %331 = vector.broadcast %cst_184 : f32 to vector<30x128xf32>
    %332 = arith.mulf %331, %330 : vector<30x128xf32>
    %cst_185 = arith.constant 4.471500e-02 : f32
    %333 = vector.broadcast %cst_185 : f32 to vector<30x128xf32>
    %334 = arith.mulf %333, %330 : vector<30x128xf32>
    %335 = arith.mulf %334, %330 : vector<30x128xf32>
    %336 = arith.mulf %335, %330 : vector<30x128xf32>
    %337 = arith.addf %330, %336 : vector<30x128xf32>
    %cst_186 = arith.constant 0.797884583 : f32
    %338 = vector.broadcast %cst_186 : f32 to vector<30x128xf32>
    %339 = arith.mulf %338, %337 : vector<30x128xf32>
    %340 = math.tanh %339 : vector<30x128xf32>
    %cst_187 = arith.constant 1.000000e+00 : f32
    %341 = vector.broadcast %cst_187 : f32 to vector<30x128xf32>
    %342 = arith.addf %341, %340 : vector<30x128xf32>
    %343 = arith.mulf %332, %342 : vector<30x128xf32>
    %c1_188 = arith.constant 1 : index
    %c0_189 = arith.constant 0 : index
    %c0_190 = arith.constant 0 : index
    %344 = vector.load %arg10[%c1_188, %c0_189, %c0_190] : memref<2x128x64xbf16, #tpu.memory_space<vmem>>, vector<1x128x64xbf16>
    %345 = vector.shape_cast %344 : vector<1x128x64xbf16> to vector<128x64xbf16>
    %346 = arith.truncf %343 : vector<30x128xf32> to vector<30x128xbf16>
    %cst_191 = arith.constant dense<0.000000e+00> : vector<30x64xf32>
    %347 = tpu.matmul %346, %345, %cst_191 {dimension_numbers = #tpu.dot_dimension_numbers<[1], [0], [0], [1], [0, 0, 1, 1], [], []>} : vector<30x128xbf16>, vector<128x64xbf16>, vector<30x64xf32> -> vector<30x64xf32>
    %348 = arith.addf %302, %347 : vector<30x64xf32>
    %349 = vector.broadcast %193 : vector<1x64xf32> to vector<30x64xf32>
    %350 = arith.addf %348, %349 : vector<30x64xf32>
    %c12 = arith.constant 12 : index
    %c0_192 = arith.constant 0 : index
    %c0_193 = arith.constant 0 : index
    %351 = vector.load %arg11[%c12, %c0_192, %c0_193] : memref<15x1x64xf32, #tpu.memory_space<vmem>>, vector<1x1x64xf32>
    %352 = vector.shape_cast %351 : vector<1x1x64xf32> to vector<1x64xf32>
    %c13 = arith.constant 13 : index
    %c0_194 = arith.constant 0 : index
    %c0_195 = arith.constant 0 : index
    %353 = vector.load %arg11[%c13, %c0_194, %c0_195] : memref<15x1x64xf32, #tpu.memory_space<vmem>>, vector<1x1x64xf32>
    %354 = vector.shape_cast %353 : vector<1x1x64xf32> to vector<1x64xf32>
    %c14 = arith.constant 14 : index
    %c0_196 = arith.constant 0 : index
    %c0_197 = arith.constant 0 : index
    %355 = vector.load %arg11[%c14, %c0_196, %c0_197] : memref<15x1x64xf32, #tpu.memory_space<vmem>>, vector<1x1x64xf32>
    %356 = vector.shape_cast %355 : vector<1x1x64xf32> to vector<1x64xf32>
    %c0_198 = arith.constant 0 : index
    %c0_199 = arith.constant 0 : index
    %357 = vector.load %arg3[%c0_198, %c0_199] : memref<6x30xf32, #tpu.memory_space<vmem>>, vector<6x30xf32>
    %358 = arith.truncf %357 : vector<6x30xf32> to vector<6x30xbf16>
    %359 = arith.truncf %350 : vector<30x64xf32> to vector<30x64xbf16>
    %cst_200 = arith.constant dense<0.000000e+00> : vector<6x64xf32>
    %360 = tpu.matmul %358, %359, %cst_200 {dimension_numbers = #tpu.dot_dimension_numbers<[1], [0], [0], [1], [0, 0, 1, 1], [], []>} : vector<6x30xbf16>, vector<30x64xbf16>, vector<6x64xf32> -> vector<6x64xf32>
    %cst_201 = arith.constant dense<0.000000e+00> : vector<6xf32>
    %361 = vector.multi_reduction <add>, %360, %cst_201 [1] : vector<6x64xf32> to vector<6xf32>
    %362 = vector.shape_cast %361 : vector<6xf32> to vector<6x1xf32>
    %cst_202 = arith.constant 6.400000e+01 : f32
    %363 = vector.broadcast %cst_202 : f32 to vector<6x1xf32>
    %364 = arith.divf %362, %363 : vector<6x1xf32>
    %365 = vector.broadcast %364 : vector<6x1xf32> to vector<6x64xf32>
    %366 = arith.subf %360, %365 : vector<6x64xf32>
    %367 = arith.mulf %366, %366 : vector<6x64xf32>
    %cst_203 = arith.constant dense<0.000000e+00> : vector<6xf32>
    %368 = vector.multi_reduction <add>, %367, %cst_203 [1] : vector<6x64xf32> to vector<6xf32>
    %369 = vector.shape_cast %368 : vector<6xf32> to vector<6x1xf32>
    %cst_204 = arith.constant 6.400000e+01 : f32
    %370 = vector.broadcast %cst_204 : f32 to vector<6x1xf32>
    %371 = arith.divf %369, %370 : vector<6x1xf32>
    %cst_205 = arith.constant 9.99999997E-7 : f32
    %372 = vector.broadcast %cst_205 : f32 to vector<6x1xf32>
    %373 = arith.addf %371, %372 : vector<6x1xf32>
    %374 = math.rsqrt %373 : vector<6x1xf32>
    %375 = vector.broadcast %374 : vector<6x1xf32> to vector<6x64xf32>
    %376 = arith.mulf %366, %375 : vector<6x64xf32>
    %377 = vector.broadcast %352 : vector<1x64xf32> to vector<6x64xf32>
    %378 = arith.mulf %376, %377 : vector<6x64xf32>
    %379 = vector.broadcast %354 : vector<1x64xf32> to vector<6x64xf32>
    %380 = arith.addf %378, %379 : vector<6x64xf32>
    %c0_i32_206 = arith.constant 0 : i32
    %381 = tpu.memref_slice %arg20[%c0_i32_206] : memref<3x!tpu.dma_semaphore, #tpu.memory_space<semaphore_mem>> -> memref<1x!tpu.dma_semaphore, #tpu.memory_space<semaphore_mem>>
    %382 = tpu.memref_squeeze %381 : memref<1x!tpu.dma_semaphore, #tpu.memory_space<semaphore_mem>> -> memref<!tpu.dma_semaphore, #tpu.memory_space<semaphore_mem>>
    tpu.wait_dma2 semaphore(%382 : memref<!tpu.dma_semaphore, #tpu.memory_space<semaphore_mem>>) src(%arg13 : memref<64x1024xbf16, #tpu.memory_space<any>>) dst(%arg17 : memref<64x1024xbf16, #tpu.memory_space<vmem>>)
    %c0_207 = arith.constant 0 : index
    %c0_208 = arith.constant 0 : index
    %383 = vector.load %arg17[%c0_207, %c0_208] : memref<64x1024xbf16, #tpu.memory_space<vmem>>, vector<64x1024xbf16>
    %384 = arith.truncf %380 : vector<6x64xf32> to vector<6x64xbf16>
    %cst_209 = arith.constant dense<0.000000e+00> : vector<6x1024xf32>
    %385 = tpu.matmul %384, %383, %cst_209 {dimension_numbers = #tpu.dot_dimension_numbers<[1], [0], [0], [1], [0, 0, 1, 1], [], []>} : vector<6x64xbf16>, vector<64x1024xbf16>, vector<6x1024xf32> -> vector<6x1024xf32>
    %c0_210 = arith.constant 0 : index
    %c0_211 = arith.constant 0 : index
    %c0_212 = arith.constant 0 : index
    %386 = vector.load %arg12[%c0_210, %c0_211, %c0_212] : memref<2x1x1024xf32, #tpu.memory_space<vmem>>, vector<1x1x1024xf32>
    %387 = vector.shape_cast %386 : vector<1x1x1024xf32> to vector<1x1024xf32>
    %388 = vector.broadcast %387 : vector<1x1024xf32> to vector<6x1024xf32>
    %389 = arith.addf %385, %388 : vector<6x1024xf32>
    %c1_i32_213 = arith.constant 1 : i32
    %390 = tpu.memref_slice %arg20[%c1_i32_213] : memref<3x!tpu.dma_semaphore, #tpu.memory_space<semaphore_mem>> -> memref<1x!tpu.dma_semaphore, #tpu.memory_space<semaphore_mem>>
    %391 = tpu.memref_squeeze %390 : memref<1x!tpu.dma_semaphore, #tpu.memory_space<semaphore_mem>> -> memref<!tpu.dma_semaphore, #tpu.memory_space<semaphore_mem>>
    tpu.wait_dma2 semaphore(%391 : memref<!tpu.dma_semaphore, #tpu.memory_space<semaphore_mem>>) src(%arg14 : memref<1024x512xbf16, #tpu.memory_space<any>>) dst(%arg18 : memref<1024x512xbf16, #tpu.memory_space<vmem>>)
    %c0_214 = arith.constant 0 : index
    %c0_215 = arith.constant 0 : index
    %392 = vector.load %arg18[%c0_214, %c0_215] : memref<1024x512xbf16, #tpu.memory_space<vmem>>, vector<1024x512xbf16>
    %393 = arith.truncf %389 : vector<6x1024xf32> to vector<6x1024xbf16>
    %cst_216 = arith.constant dense<0.000000e+00> : vector<6x512xf32>
    %394 = tpu.matmul %393, %392, %cst_216 {dimension_numbers = #tpu.dot_dimension_numbers<[1], [0], [0], [1], [0, 0, 1, 1], [], []>} : vector<6x1024xbf16>, vector<1024x512xbf16>, vector<6x512xf32> -> vector<6x512xf32>
    %c1_217 = arith.constant 1 : index
    %c0_218 = arith.constant 0 : index
    %c0_219 = arith.constant 0 : index
    %395 = vector.load %arg12[%c1_217, %c0_218, %c0_219] : memref<2x1x1024xf32, #tpu.memory_space<vmem>>, vector<1x1x1024xf32>
    %396 = vector.shape_cast %395 : vector<1x1x1024xf32> to vector<1x1024xf32>
    %397 = vector.extract_strided_slice %396 {offsets = [0, 0], sizes = [1, 512], strides = [1, 1]} : vector<1x1024xf32> to vector<1x512xf32>
    %398 = vector.broadcast %397 : vector<1x512xf32> to vector<6x512xf32>
    %399 = arith.addf %394, %398 : vector<6x512xf32>
    %cst_220 = arith.constant 0.000000e+00 : f32
    %400 = vector.broadcast %cst_220 : f32 to vector<6x512xf32>
    %401 = arith.maximumf %399, %400 : vector<6x512xf32>
    %c2_i32_221 = arith.constant 2 : i32
    %402 = tpu.memref_slice %arg20[%c2_i32_221] : memref<3x!tpu.dma_semaphore, #tpu.memory_space<semaphore_mem>> -> memref<1x!tpu.dma_semaphore, #tpu.memory_space<semaphore_mem>>
    %403 = tpu.memref_squeeze %402 : memref<1x!tpu.dma_semaphore, #tpu.memory_space<semaphore_mem>> -> memref<!tpu.dma_semaphore, #tpu.memory_space<semaphore_mem>>
    tpu.wait_dma2 semaphore(%403 : memref<!tpu.dma_semaphore, #tpu.memory_space<semaphore_mem>>) src(%arg15 : memref<512x64xbf16, #tpu.memory_space<any>>) dst(%arg19 : memref<512x64xbf16, #tpu.memory_space<vmem>>)
    %c0_222 = arith.constant 0 : index
    %c0_223 = arith.constant 0 : index
    %404 = vector.load %arg19[%c0_222, %c0_223] : memref<512x64xbf16, #tpu.memory_space<vmem>>, vector<512x64xbf16>
    %405 = arith.truncf %401 : vector<6x512xf32> to vector<6x512xbf16>
    %cst_224 = arith.constant dense<0.000000e+00> : vector<6x64xf32>
    %406 = tpu.matmul %405, %404, %cst_224 {dimension_numbers = #tpu.dot_dimension_numbers<[1], [0], [0], [1], [0, 0, 1, 1], [], []>} : vector<6x512xbf16>, vector<512x64xbf16>, vector<6x64xf32> -> vector<6x64xf32>
    %407 = vector.broadcast %356 : vector<1x64xf32> to vector<6x64xf32>
    %408 = arith.addf %406, %407 : vector<6x64xf32>
    %c0_225 = arith.constant 0 : index
    %c0_226 = arith.constant 0 : index
    %409 = vector.load %arg16[%c0_225, %c0_226] : memref<6x64xf32, #tpu.memory_space<vmem>>, vector<6x64xf32>
    tpu.vector_store %arg16[%c0_225, %c0_226], %408 {strides = array<i32>} : memref<6x64xf32, #tpu.memory_space<vmem>>, vector<6x64xf32>,
    return
  }
}

</mosaic_0001>

<bundles_post_ra>
// kernel: tile.9
= control target key start
LH: loop header
LB: loop body
LE: loop exit
PB: predicated region body
PF: predicated region fallthrough
CT: control target
= control target key end

     0   :  { %vm3_vm0 = vcmask 523264   ;;  %s86_s0 = inlined_call_operand.vmem [shape: f32[6,5,64], index: 0, kind: input, shape index: {}]   ;;  %s87_s1 = inlined_call_operand.vmem [shape: f32[30,64], index: 1, kind: output, shape index: {}]  }
   0x1   :  { %v2_v0 = vld [vmem:[%s86_s0] sm:$0x1f]   ;;  %v30_v1 = vld [vmem:[%s86_s0 + $0x8] sm:$0x1f]   ;;  %v32_v2 = vld [vmem:[%s86_s0 + $0x10] sm:$0x1f]  }
   0x2   :  { %4 = vst.msk [vmem:[%s87_s1] sm:$0x1f] %vm3_vm0, %v2_v0   ;;  %31 = vst.msk [vmem:[%s87_s1 + $0x5] sm:$0x1f] %vm3_vm0, %v30_v1   ;;  %v34_v3 = vld [vmem:[%s86_s0 + $0x18] sm:$0x1f]  }
   0x3   :  { %33 = vst.msk [vmem:[%s87_s1 + $0xa] sm:$0x1f] %vm3_vm0, %v32_v2   ;;  %v36_v4 = vld [vmem:[%s86_s0 + $0x20] sm:$0x1f]   ;;  %v38_v5 = vld [vmem:[%s86_s0 + $0x28] sm:$0x1f]  }
   0x4   :  { %35 = vst.msk [vmem:[%s87_s1 + $0xf] sm:$0x1f] %vm3_vm0, %v34_v3   ;;  %37 = vst.msk [vmem:[%s87_s1 + $0x14] sm:$0x1f] %vm3_vm0, %v36_v4  }
   0x5   :  { %39 = vst.msk [vmem:[%s87_s1 + $0x19] sm:$0x1f] %vm3_vm0, %v38_v5  }

// kernel: triplet_forward.1
= control target key start
LH: loop header
LB: loop body
LE: loop exit
PB: predicated region body
PF: predicated region fallthrough
CT: control target
= control target key end

     0   :  { %s11243_s0 = inlined_call_operand.vmem [shape: f32[30,192], index: 0, kind: input, shape index: {}]   ;;  %s11244_s1 = inlined_call_operand.vmem [shape: f32[30,64], index: 1, kind: input, shape index: {}]   ;;  %s11245_s2 = inlined_call_operand.vmem [shape: f32[30,30], index: 2, kind: input, shape index: {}]   ;;  %s11246_s3 = inlined_call_operand.vmem [shape: f32[6,30], index: 3, kind: input, shape index: {}]   ;;  %s11247_s4 = inlined_call_operand.vmem [shape: bf16[192,64], index: 4, kind: input, shape index: {}]   ;;  %s11248_s5 = inlined_call_operand.vmem [shape: bf16[12,64,32], index: 5, kind: input, shape index: {}]   ;;  %s11249_s6 = inlined_call_operand.vmem [shape: f32[12,1,32], index: 6, kind: input, shape index: {}]   ;;  %s11250_s7 = inlined_call_operand.vmem [shape: bf16[2,64,64], index: 7, kind: input, shape index: {}]   ;;  %s11251_s8 = inlined_call_operand.vmem [shape: bf16[2,64,128], index: 8, kind: input, shape index: {}]   ;;  %s11252_s9 = inlined_call_operand.vmem [shape: f32[2,1,128], index: 9, kind: input, shape index: {}]   ;;  %s11253_s10 = inlined_call_operand.vmem [shape: bf16[2,128,64], index: 10, kind: input, shape index: {}]   ;;  %s11254_s11 = inlined_call_operand.vmem [shape: f32[15,1,64], index: 11, kind: input, shape index: {}]   ;;  %s11255_s12 = inlined_call_operand.vmem [shape: f32[2,1,1024], index: 12, kind: input, shape index: {}]   ;;  %s11256_s13 = inlined_call_operand.vmem [shape: bf16[64,1024], index: 13, kind: input, shape index: {}]   ;;  %s11257_s14 = inlined_call_operand.vmem [shape: bf16[1024,512], index: 14, kind: input, shape index: {}]   ;;  %s11258_s15 = inlined_call_operand.vmem [shape: bf16[512,64], index: 15, kind: input, shape index: {}]   ;;  %s11259_s16 = inlined_call_operand.vmem [shape: f32[6,64], index: 16, kind: output, shape index: {}]  }
   0x1   :  { %11517 = sst [smem:[#allocation266_spill]] %s11243_s0  ;;  %v8232_v0 = vld [vmem:[%s11256_s13] sm:$0xff]  ;;  %v8237_v1 = vld [vmem:[%s11256_s13 + $0x8] sm:$0xff]  ;;  %v8242_v2 = vld [vmem:[%s11256_s13 + $0x10] sm:$0xff] }
   0x2   :  { %v8247_v3 = vld [vmem:[%s11256_s13 + $0x18] sm:$0xff]  ;;  %v8252_v4 = vld [vmem:[%s11256_s13 + $0x20] sm:$0xff]  ;;  %v8257_v5 = vld [vmem:[%s11256_s13 + $0x28] sm:$0xff] }
   0x3   :  { %v8262_v6 = vld [vmem:[%s11256_s13 + $0x30] sm:$0xff]  ;;  %v8267_v7 = vld [vmem:[%s11256_s13 + $0x38] sm:$0xff]  ;;  %v8272_v8 = vld [vmem:[%s11256_s13 + $0x40] sm:$0xff] }
   0x4   :  { %v8277_v9 = vld [vmem:[%s11256_s13 + $0x48] sm:$0xff]  ;;  %v8282_v10 = vld [vmem:[%s11256_s13 + $0x50] sm:$0xff]  ;;  %v8287_v11 = vld [vmem:[%s11256_s13 + $0x58] sm:$0xff] }
   0x5   :  { %v8292_v12 = vld [vmem:[%s11256_s13 + $0x60] sm:$0xff]  ;;  %v8297_v13 = vld [vmem:[%s11256_s13 + $0x68] sm:$0xff]  ;;  %v8302_v14 = vld [vmem:[%s11256_s13 + $0x70] sm:$0xff] }
   0x6   :  { %v8307_v15 = vld [vmem:[%s11256_s13 + $0x78] sm:$0xff]  ;;  %v8312_v16 = vld [vmem:[%s11256_s13 + $0x80] sm:$0xff]  ;;  %v8317_v17 = vld [vmem:[%s11256_s13 + $0x88] sm:$0xff] }
   0x7   :  { %v8322_v18 = vld [vmem:[%s11256_s13 + $0x90] sm:$0xff]  ;;  %v8327_v19 = vld [vmem:[%s11256_s13 + $0x98] sm:$0xff]  ;;  %v8332_v20 = vld [vmem:[%s11256_s13 + $0xa0] sm:$0xff] }
   0x8   :  { %v8337_v21 = vld [vmem:[%s11256_s13 + $0xa8] sm:$0xff]  ;;  %v8342_v22 = vld [vmem:[%s11256_s13 + $0xb0] sm:$0xff]  ;;  %v8347_v23 = vld [vmem:[%s11256_s13 + $0xb8] sm:$0xff] }
   0x9   :  { %v8352_v24 = vld [vmem:[%s11256_s13 + $0xc0] sm:$0xff]  ;;  %v8357_v25 = vld [vmem:[%s11256_s13 + $0xc8] sm:$0xff]  ;;  %v8362_v26 = vld [vmem:[%s11256_s13 + $0xd0] sm:$0xff] }
   0xa   :  { %v8367_v27 = vld [vmem:[%s11256_s13 + $0xd8] sm:$0xff]  ;;  %v8372_v28 = vld [vmem:[%s11256_s13 + $0xe0] sm:$0xff]  ;;  %v8377_v29 = vld [vmem:[%s11256_s13 + $0xe8] sm:$0xff] }
   0xb   :  { %v8382_v30 = vld [vmem:[%s11256_s13 + $0xf0] sm:$0xff]  ;;  %v8387_v31 = vld [vmem:[%s11256_s13 + $0xf8] sm:$0xff] }
   0xc   :  { %152 = vsyncadd [#allocation5], 4096  ;;  %v8392_v32 = vld [vmem:[%s11257_s14] sm:$0xff]  ;;  %v8397_v33 = vld [vmem:[%s11257_s14 + $0x8] sm:$0xff] }
   0xd   :  { %11518 = vst [vmem:[#allocation12_spill] sm:$0xff] %v8392_v32  ;;  %11519 = vst [vmem:[#allocation13_spill] sm:$0xff] %v8397_v33  ;;  %v8402_v34 = vld [vmem:[%s11257_s14 + $0x10] sm:$0xff]  ;;  %v8407_v35 = vld [vmem:[%s11257_s14 + $0x18] sm:$0xff] }
   0xe   :  { %11520 = vst [vmem:[#allocation14_spill] sm:$0xff] %v8402_v34  ;;  %11521 = vst [vmem:[#allocation15_spill] sm:$0xff] %v8407_v35  ;;  %v8412_v36 = vld [vmem:[%s11257_s14 + $0x20] sm:$0xff]  ;;  %v8417_v37 = vld [vmem:[%s11257_s14 + $0x28] sm:$0xff] }
   0xf   :  { %11522 = vst [vmem:[#allocation16_spill] sm:$0xff] %v8412_v36  ;;  %11523 = vst [vmem:[#allocation17_spill] sm:$0xff] %v8417_v37  ;;  %v8422_v38 = vld [vmem:[%s11257_s14 + $0x30] sm:$0xff]  ;;  %v8427_v39 = vld [vmem:[%s11257_s14 + $0x38] sm:$0xff] }
  0x10   :  { %11524 = vst [vmem:[#allocation18_spill] sm:$0xff] %v8422_v38  ;;  %11525 = vst [vmem:[#allocation19_spill] sm:$0xff] %v8427_v39  ;;  %v8432_v40 = vld [vmem:[%s11257_s14 + $0x40] sm:$0xff]  ;;  %v8437_v41 = vld [vmem:[%s11257_s14 + $0x48] sm:$0xff] }
  0x11   :  { %11526 = vst [vmem:[#allocation20_spill] sm:$0xff] %v8432_v40  ;;  %11527 = vst [vmem:[#allocation21_spill] sm:$0xff] %v8437_v41  ;;  %v8442_v42 = vld [vmem:[%s11257_s14 + $0x50] sm:$0xff]  ;;  %v8447_v43 = vld [vmem:[%s11257_s14 + $0x58] sm:$0xff] }
  0x12   :  { %11528 = vst [vmem:[#allocation22_spill] sm:$0xff] %v8442_v42  ;;  %11529 = vst [vmem:[#allocation23_spill] sm:$0xff] %v8447_v43  ;;  %v8452_v44 = vld [vmem:[%s11257_s14 + $0x60] sm:$0xff]  ;;  %v8457_v45 = vld [vmem:[%s11257_s14 + $0x68] sm:$0xff] }
  0x13   :  { %11530 = vst [vmem:[#allocation24_spill] sm:$0xff] %v8452_v44  ;;  %11531 = vst [vmem:[#allocation25_spill] sm:$0xff] %v8457_v45  ;;  %v8462_v46 = vld [vmem:[%s11257_s14 + $0x70] sm:$0xff]  ;;  %v8467_v47 = vld [vmem:[%s11257_s14 + $0x78] sm:$0xff] }
  0x14   :  { %11532 = vst [vmem:[#allocation26_spill] sm:$0xff] %v8462_v46  ;;  %11533 = vst [vmem:[#allocation27_spill] sm:$0xff] %v8467_v47  ;;  %v8472_v48 = vld [vmem:[%s11257_s14 + $0x80] sm:$0xff]  ;;  %v8477_v49 = vld [vmem:[%s11257_s14 + $0x88] sm:$0xff] }
  0x15   :  { %11534 = vst [vmem:[#allocation28_spill] sm:$0xff] %v8472_v48  ;;  %11535 = vst [vmem:[#allocation29_spill] sm:$0xff] %v8477_v49  ;;  %v8482_v50 = vld [vmem:[%s11257_s14 + $0x90] sm:$0xff]  ;;  %v8487_v51 = vld [vmem:[%s11257_s14 + $0x98] sm:$0xff] }
  0x16   :  { %11536 = vst [vmem:[#allocation30_spill] sm:$0xff] %v8482_v50  ;;  %11537 = vst [vmem:[#allocation31_spill] sm:$0xff] %v8487_v51  ;;  %v8492_v52 = vld [vmem:[%s11257_s14 + $0xa0] sm:$0xff]  ;;  %v8497_v53 = vld [vmem:[%s11257_s14 + $0xa8] sm:$0xff] }
  0x17   :  { %11538 = vst [vmem:[#allocation32_spill] sm:$0xff] %v8492_v52  ;;  %11539 = vst [vmem:[#allocation33_spill] sm:$0xff] %v8497_v53  ;;  %v8502_v54 = vld [vmem:[%s11257_s14 + $0xb0] sm:$0xff]  ;;  %v8507_v55 = vld [vmem:[%s11257_s14 + $0xb8] sm:$0xff] }
  0x18   :  { %11540 = vst [vmem:[#allocation34_spill] sm:$0xff] %v8502_v54  ;;  %11541 = vst [vmem:[#allocation35_spill] sm:$0xff] %v8507_v55  ;;  %v8512_v56 = vld [vmem:[%s11257_s14 + $0xc0] sm:$0xff]  ;;  %v8517_v57 = vld [vmem:[%s11257_s14 + $0xc8] sm:$0xff] }
  0x19   :  { %11542 = vst [vmem:[#allocation36_spill] sm:$0xff] %v8512_v56  ;;  %11543 = vst [vmem:[#allocation37_spill] sm:$0xff] %v8517_v57  ;;  %v8522_v58 = vld [vmem:[%s11257_s14 + $0xd0] sm:$0xff]  ;;  %v8527_v59 = vld [vmem:[%s11257_s14 + $0xd8] sm:$0xff] }
  0x1a   :  { %11544 = vst [vmem:[#allocation38_spill] sm:$0xff] %v8522_v58  ;;  %11545 = vst [vmem:[#allocation39_spill] sm:$0xff] %v8527_v59  ;;  %v8532_v60 = vld [vmem:[%s11257_s14 + $0xe0] sm:$0xff]  ;;  %v8537_v61 = vld [vmem:[%s11257_s14 + $0xe8] sm:$0xff] }
  0x1b   :  { %11546 = vst [vmem:[#allocation40_spill] sm:$0xff] %v8537_v61  ;;  %v8542_v62 = vld [vmem:[%s11257_s14 + $0xf0] sm:$0xff]  ;;  %v8547_v63 = vld [vmem:[%s11257_s14 + $0xf8] sm:$0xff]  ;;  %v8552_v33 = vld [vmem:[%s11257_s14 + $0x100] sm:$0xff] }
  0x1c   :  { %11547 = vst [vmem:[#allocation41_spill] sm:$0xff] %v8547_v63  ;;  %11548 = vst [vmem:[#allocation42_spill] sm:$0xff] %v8552_v33  ;;  %v8557_v35 = vld [vmem:[%s11257_s14 + $0x108] sm:$0xff]  ;;  %v8562_v37 = vld [vmem:[%s11257_s14 + $0x110] sm:$0xff] }
  0x1d   :  { %11549 = vst [vmem:[#allocation43_spill] sm:$0xff] %v8557_v35  ;;  %11550 = vst [vmem:[#allocation44_spill] sm:$0xff] %v8562_v37  ;;  %v8567_v39 = vld [vmem:[%s11257_s14 + $0x118] sm:$0xff]  ;;  %v8572_v41 = vld [vmem:[%s11257_s14 + $0x120] sm:$0xff] }
  0x1e   :  { %11551 = vst [vmem:[#allocation45_spill] sm:$0xff] %v8567_v39  ;;  %11552 = vst [vmem:[#allocation46_spill] sm:$0xff] %v8572_v41  ;;  %v8577_v43 = vld [vmem:[%s11257_s14 + $0x128] sm:$0xff]  ;;  %v8582_v35 = vld [vmem:[%s11257_s14 + $0x130] sm:$0xff] }
  0x1f   :  { %11553 = vst [vmem:[#allocation47_spill] sm:$0xff] %v8577_v43  ;;  %11554 = vst [vmem:[#allocation48_spill] sm:$0xff] %v8582_v35  ;;  %v8587_v45 = vld [vmem:[%s11257_s14 + $0x138] sm:$0xff]  ;;  %v8592_v39 = vld [vmem:[%s11257_s14 + $0x140] sm:$0xff] }
  0x20   :  { %11555 = vst [vmem:[#allocation49_spill] sm:$0xff] %v8587_v45  ;;  %11556 = vst [vmem:[#allocation50_spill] sm:$0xff] %v8592_v39  ;;  %v8597_v47 = vld [vmem:[%s11257_s14 + $0x148] sm:$0xff]  ;;  %v8602_v43 = vld [vmem:[%s11257_s14 + $0x150] sm:$0xff] }
  0x21   :  { %11557 = vst [vmem:[#allocation51_spill] sm:$0xff] %v8597_v47  ;;  %11558 = vst [vmem:[#allocation52_spill] sm:$0xff] %v8602_v43  ;;  %v8607_v49 = vld [vmem:[%s11257_s14 + $0x158] sm:$0xff]  ;;  %v8612_v45 = vld [vmem:[%s11257_s14 + $0x160] sm:$0xff] }
  0x22   :  { %11559 = vst [vmem:[#allocation53_spill] sm:$0xff] %v8607_v49  ;;  %11560 = vst [vmem:[#allocation54_spill] sm:$0xff] %v8612_v45  ;;  %v8617_v51 = vld [vmem:[%s11257_s14 + $0x168] sm:$0xff]  ;;  %v8622_v47 = vld [vmem:[%s11257_s14 + $0x170] sm:$0xff] }
  0x23   :  { %11561 = vst [vmem:[#allocation55_spill] sm:$0xff] %v8617_v51  ;;  %11562 = vst [vmem:[#allocation56_spill] sm:$0xff] %v8622_v47  ;;  %v8627_v53 = vld [vmem:[%s11257_s14 + $0x178] sm:$0xff]  ;;  %v8632_v49 = vld [vmem:[%s11257_s14 + $0x180] sm:$0xff] }
  0x24   :  { %11563 = vst [vmem:[#allocation57_spill] sm:$0xff] %v8627_v53  ;;  %11564 = vst [vmem:[#allocation58_spill] sm:$0xff] %v8632_v49  ;;  %v8637_v55 = vld [vmem:[%s11257_s14 + $0x188] sm:$0xff]  ;;  %v8642_v51 = vld [vmem:[%s11257_s14 + $0x190] sm:$0xff] }
  0x25   :  { %11565 = vst [vmem:[#allocation59_spill] sm:$0xff] %v8637_v55  ;;  %11566 = vst [vmem:[#allocation60_spill] sm:$0xff] %v8642_v51  ;;  %v8647_v57 = vld [vmem:[%s11257_s14 + $0x198] sm:$0xff]  ;;  %v8652_v53 = vld [vmem:[%s11257_s14 + $0x1a0] sm:$0xff] }
  0x26   :  { %11567 = vst [vmem:[#allocation61_spill] sm:$0xff] %v8647_v57  ;;  %11568 = vst [vmem:[#allocation62_spill] sm:$0xff] %v8652_v53  ;;  %v8657_v59 = vld [vmem:[%s11257_s14 + $0x1a8] sm:$0xff]  ;;  %v8662_v55 = vld [vmem:[%s11257_s14 + $0x1b0] sm:$0xff] }
  0x27   :  { %11569 = vst [vmem:[#allocation63_spill] sm:$0xff] %v8657_v59  ;;  %11570 = vst [vmem:[#allocation64_spill] sm:$0xff] %v8662_v55  ;;  %v8667_v61 = vld [vmem:[%s11257_s14 + $0x1b8] sm:$0xff]  ;;  %v8672_v57 = vld [vmem:[%s11257_s14 + $0x1c0] sm:$0xff] }
  0x28   :  { %11571 = vst [vmem:[#allocation65_spill] sm:$0xff] %v8667_v61  ;;  %11572 = vst [vmem:[#allocation66_spill] sm:$0xff] %v8672_v57  ;;  %v8677_v63 = vld [vmem:[%s11257_s14 + $0x1c8] sm:$0xff]  ;;  %v8682_v59 = vld [vmem:[%s11257_s14 + $0x1d0] sm:$0xff] }
  0x29   :  { %11573 = vst [vmem:[#allocation67_spill] sm:$0xff] %v8677_v63  ;;  %11574 = vst [vmem:[#allocation68_spill] sm:$0xff] %v8682_v59  ;;  %v8687_v33 = vld [vmem:[%s11257_s14 + $0x1d8] sm:$0xff]  ;;  %v8692_v61 = vld [vmem:[%s11257_s14 + $0x1e0] sm:$0xff] }
  0x2a   :  { %11575 = vst [vmem:[#allocation69_spill] sm:$0xff] %v8687_v33  ;;  %11576 = vst [vmem:[#allocation70_spill] sm:$0xff] %v8692_v61  ;;  %v8697_v37 = vld [vmem:[%s11257_s14 + $0x1e8] sm:$0xff]  ;;  %v8702_v63 = vld [vmem:[%s11257_s14 + $0x1f0] sm:$0xff] }
  0x2b   :  { %11577 = vst [vmem:[#allocation71_spill] sm:$0xff] %v8697_v37  ;;  %11578 = vst [vmem:[#allocation72_spill] sm:$0xff] %v8702_v63  ;;  %v8707_v41 = vld [vmem:[%s11257_s14 + $0x1f8] sm:$0xff]  ;;  %v8712_v33 = vld [vmem:[%s11257_s14 + $0x200] sm:$0xff] }
  0x2c   :  { %11579 = vst [vmem:[#allocation73_spill] sm:$0xff] %v8707_v41  ;;  %11580 = vst [vmem:[#allocation74_spill] sm:$0xff] %v8712_v33  ;;  %v8717_v35 = vld [vmem:[%s11257_s14 + $0x208] sm:$0xff]  ;;  %v8722_v37 = vld [vmem:[%s11257_s14 + $0x210] sm:$0xff] }
  0x2d   :  { %11581 = vst [vmem:[#allocation75_spill] sm:$0xff] %v8717_v35  ;;  %11582 = vst [vmem:[#allocation76_spill] sm:$0xff] %v8722_v37  ;;  %v8727_v39 = vld [vmem:[%s11257_s14 + $0x218] sm:$0xff]  ;;  %v8732_v41 = vld [vmem:[%s11257_s14 + $0x220] sm:$0xff] }
  0x2e   :  { %11583 = vst [vmem:[#allocation77_spill] sm:$0xff] %v8727_v39  ;;  %11584 = vst [vmem:[#allocation78_spill] sm:$0xff] %v8732_v41  ;;  %v8737_v43 = vld [vmem:[%s11257_s14 + $0x228] sm:$0xff]  ;;  %v8742_v35 = vld [vmem:[%s11257_s14 + $0x230] sm:$0xff] }
  0x2f   :  { %11585 = vst [vmem:[#allocation79_spill] sm:$0xff] %v8737_v43  ;;  %11586 = vst [vmem:[#allocation80_spill] sm:$0xff] %v8742_v35  ;;  %v8747_v45 = vld [vmem:[%s11257_s14 + $0x238] sm:$0xff]  ;;  %v8752_v39 = vld [vmem:[%s11257_s14 + $0x240] sm:$0xff] }
  0x30   :  { %11587 = vst [vmem:[#allocation81_spill] sm:$0xff] %v8747_v45  ;;  %11588 = vst [vmem:[#allocation82_spill] sm:$0xff] %v8752_v39  ;;  %v8757_v47 = vld [vmem:[%s11257_s14 + $0x248] sm:$0xff]  ;;  %v8762_v43 = vld [vmem:[%s11257_s14 + $0x250] sm:$0xff] }
  0x31   :  { %11589 = vst [vmem:[#allocation83_spill] sm:$0xff] %v8757_v47  ;;  %11590 = vst [vmem:[#allocation84_spill] sm:$0xff] %v8762_v43  ;;  %v8767_v49 = vld [vmem:[%s11257_s14 + $0x258] sm:$0xff]  ;;  %v8772_v45 = vld [vmem:[%s11257_s14 + $0x260] sm:$0xff] }
  0x32   :  { %11591 = vst [vmem:[#allocation85_spill] sm:$0xff] %v8767_v49  ;;  %11592 = vst [vmem:[#allocation86_spill] sm:$0xff] %v8772_v45  ;;  %v8777_v51 = vld [vmem:[%s11257_s14 + $0x268] sm:$0xff]  ;;  %v8782_v47 = vld [vmem:[%s11257_s14 + $0x270] sm:$0xff] }
  0x33   :  { %11593 = vst [vmem:[#allocation87_spill] sm:$0xff] %v8777_v51  ;;  %11594 = vst [vmem:[#allocation88_spill] sm:$0xff] %v8782_v47  ;;  %v8787_v53 = vld [vmem:[%s11257_s14 + $0x278] sm:$0xff]  ;;  %v8792_v49 = vld [vmem:[%s11257_s14 + $0x280] sm:$0xff] }
  0x34   :  { %11595 = vst [vmem:[#allocation89_spill] sm:$0xff] %v8787_v53  ;;  %11596 = vst [vmem:[#allocation90_spill] sm:$0xff] %v8792_v49  ;;  %v8797_v55 = vld [vmem:[%s11257_s14 + $0x288] sm:$0xff]  ;;  %v8802_v51 = vld [vmem:[%s11257_s14 + $0x290] sm:$0xff] }
  0x35   :  { %11597 = vst [vmem:[#allocation91_spill] sm:$0xff] %v8797_v55  ;;  %11598 = vst [vmem:[#allocation92_spill] sm:$0xff] %v8802_v51  ;;  %v8807_v57 = vld [vmem:[%s11257_s14 + $0x298] sm:$0xff]  ;;  %v8812_v53 = vld [vmem:[%s11257_s14 + $0x2a0] sm:$0xff] }
  0x36   :  { %11599 = vst [vmem:[#allocation93_spill] sm:$0xff] %v8807_v57  ;;  %11600 = vst [vmem:[#allocation94_spill] sm:$0xff] %v8812_v53  ;;  %v8817_v59 = vld [vmem:[%s11257_s14 + $0x2a8] sm:$0xff]  ;;  %v8822_v55 = vld [vmem:[%s11257_s14 + $0x2b0] sm:$0xff] }
  0x37   :  { %11601 = vst [vmem:[#allocation95_spill] sm:$0xff] %v8817_v59  ;;  %11602 = vst [vmem:[#allocation96_spill] sm:$0xff] %v8822_v55  ;;  %v8827_v61 = vld [vmem:[%s11257_s14 + $0x2b8] sm:$0xff]  ;;  %v8832_v57 = vld [vmem:[%s11257_s14 + $0x2c0] sm:$0xff] }
  0x38   :  { %11603 = vst [vmem:[#allocation97_spill] sm:$0xff] %v8827_v61  ;;  %11604 = vst [vmem:[#allocation98_spill] sm:$0xff] %v8832_v57  ;;  %v8837_v63 = vld [vmem:[%s11257_s14 + $0x2c8] sm:$0xff]  ;;  %v8842_v59 = vld [vmem:[%s11257_s14 + $0x2d0] sm:$0xff] }
  0x39   :  { %11605 = vst [vmem:[#allocation99_spill] sm:$0xff] %v8837_v63  ;;  %11606 = vst [vmem:[#allocation100_spill] sm:$0xff] %v8842_v59  ;;  %v8847_v33 = vld [vmem:[%s11257_s14 + $0x2d8] sm:$0xff]  ;;  %v8852_v61 = vld [vmem:[%s11257_s14 + $0x2e0] sm:$0xff] }
  0x3a   :  { %11607 = vst [vmem:[#allocation101_spill] sm:$0xff] %v8847_v33  ;;  %11608 = vst [vmem:[#allocation102_spill] sm:$0xff] %v8852_v61  ;;  %v8857_v37 = vld [vmem:[%s11257_s14 + $0x2e8] sm:$0xff]  ;;  %v8862_v63 = vld [vmem:[%s11257_s14 + $0x2f0] sm:$0xff] }
  0x3b   :  { %11609 = vst [vmem:[#allocation103_spill] sm:$0xff] %v8857_v37  ;;  %11610 = vst [vmem:[#allocation104_spill] sm:$0xff] %v8862_v63  ;;  %v8867_v32 = vld [vmem:[%s11257_s14 + $0x2f8] sm:$0xff]  ;;  %v8872_v33 = vld [vmem:[%s11257_s14 + $0x300] sm:$0xff] }
  0x3c   :  { %11611 = vst [vmem:[#allocation105_spill] sm:$0xff] %v8867_v32  ;;  %11612 = vst [vmem:[#allocation106_spill] sm:$0xff] %v8872_v33  ;;  %v8877_v34 = vld [vmem:[%s11257_s14 + $0x308] sm:$0xff]  ;;  %v8882_v37 = vld [vmem:[%s11257_s14 + $0x310] sm:$0xff] }
  0x3d   :  { %11613 = vst [vmem:[#allocation107_spill] sm:$0xff] %v8877_v34  ;;  %11614 = vst [vmem:[#allocation108_spill] sm:$0xff] %v8882_v37  ;;  %v8887_v41 = vld [vmem:[%s11257_s14 + $0x318] sm:$0xff]  ;;  %v8892_v32 = vld [vmem:[%s11257_s14 + $0x320] sm:$0xff] }
  0x3e   :  { %11615 = vst [vmem:[#allocation109_spill] sm:$0xff] %v8887_v41  ;;  %11616 = vst [vmem:[#allocation110_spill] sm:$0xff] %v8892_v32  ;;  %v8897_v33 = vld [vmem:[%s11257_s14 + $0x328] sm:$0xff]  ;;  %v8902_v34 = vld [vmem:[%s11257_s14 + $0x330] sm:$0xff] }
  0x3f   :  { %11617 = vst [vmem:[#allocation111_spill] sm:$0xff] %v8897_v33  ;;  %11618 = vst [vmem:[#allocation112_spill] sm:$0xff] %v8902_v34  ;;  %v8907_v37 = vld [vmem:[%s11257_s14 + $0x338] sm:$0xff]  ;;  %v8912_v41 = vld [vmem:[%s11257_s14 + $0x340] sm:$0xff] }
  0x40   :  { %11619 = vst [vmem:[#allocation113_spill] sm:$0xff] %v8907_v37  ;;  %11620 = vst [vmem:[#allocation114_spill] sm:$0xff] %v8912_v41  ;;  %v8917_v32 = vld [vmem:[%s11257_s14 + $0x348] sm:$0xff]  ;;  %v8922_v33 = vld [vmem:[%s11257_s14 + $0x350] sm:$0xff] }
  0x41   :  { %11621 = vst [vmem:[#allocation115_spill] sm:$0xff] %v8917_v32  ;;  %11622 = vst [vmem:[#allocation116_spill] sm:$0xff] %v8922_v33  ;;  %v8927_v34 = vld [vmem:[%s11257_s14 + $0x358] sm:$0xff]  ;;  %v8932_v37 = vld [vmem:[%s11257_s14 + $0x360] sm:$0xff] }
  0x42   :  { %11623 = vst [vmem:[#allocation117_spill] sm:$0xff] %v8927_v34  ;;  %11624 = vst [vmem:[#allocation118_spill] sm:$0xff] %v8932_v37  ;;  %v8937_v41 = vld [vmem:[%s11257_s14 + $0x368] sm:$0xff]  ;;  %v8942_v32 = vld [vmem:[%s11257_s14 + $0x370] sm:$0xff] }
  0x43   :  { %11625 = vst [vmem:[#allocation119_spill] sm:$0xff] %v8937_v41  ;;  %11626 = vst [vmem:[#allocation120_spill] sm:$0xff] %v8942_v32  ;;  %v8947_v33 = vld [vmem:[%s11257_s14 + $0x378] sm:$0xff]  ;;  %v8952_v34 = vld [vmem:[%s11257_s14 + $0x380] sm:$0xff] }
  0x44   :  { %11627 = vst [vmem:[#allocation121_spill] sm:$0xff] %v8947_v33  ;;  %11628 = vst [vmem:[#allocation122_spill] sm:$0xff] %v8952_v34  ;;  %v8957_v37 = vld [vmem:[%s11257_s14 + $0x388] sm:$0xff]  ;;  %v8962_v41 = vld [vmem:[%s11257_s14 + $0x390] sm:$0xff] }
  0x45   :  { %11629 = vst [vmem:[#allocation123_spill] sm:$0xff] %v8957_v37  ;;  %11630 = vst [vmem:[#allocation124_spill] sm:$0xff] %v8962_v41  ;;  %v8967_v32 = vld [vmem:[%s11257_s14 + $0x398] sm:$0xff]  ;;  %v8972_v33 = vld [vmem:[%s11257_s14 + $0x3a0] sm:$0xff] }
  0x46   :  { %11631 = vst [vmem:[#allocation125_spill] sm:$0xff] %v8967_v32  ;;  %11632 = vst [vmem:[#allocation126_spill] sm:$0xff] %v8972_v33  ;;  %v8977_v34 = vld [vmem:[%s11257_s14 + $0x3a8] sm:$0xff]  ;;  %v8982_v37 = vld [vmem:[%s11257_s14 + $0x3b0] sm:$0xff] }
  0x47   :  { %11633 = vst [vmem:[#allocation127_spill] sm:$0xff] %v8977_v34  ;;  %11634 = vst [vmem:[#allocation128_spill] sm:$0xff] %v8982_v37  ;;  %v8987_v41 = vld [vmem:[%s11257_s14 + $0x3b8] sm:$0xff]  ;;  %v8992_v32 = vld [vmem:[%s11257_s14 + $0x3c0] sm:$0xff] }
  0x48   :  { %11635 = vst [vmem:[#allocation129_spill] sm:$0xff] %v8987_v41  ;;  %11636 = vst [vmem:[#allocation130_spill] sm:$0xff] %v8992_v32  ;;  %v8997_v33 = vld [vmem:[%s11257_s14 + $0x3c8] sm:$0xff]  ;;  %v9002_v34 = vld [vmem:[%s11257_s14 + $0x3d0] sm:$0xff] }
  0x49   :  { %11637 = vst [vmem:[#allocation131_spill] sm:$0xff] %v8997_v33  ;;  %11638 = vst [vmem:[#allocation132_spill] sm:$0xff] %v9002_v34  ;;  %v9007_v37 = vld [vmem:[%s11257_s14 + $0x3d8] sm:$0xff]  ;;  %v9012_v41 = vld [vmem:[%s11257_s14 + $0x3e0] sm:$0xff] }
  0x4a   :  { %11639 = vst [vmem:[#allocation133_spill] sm:$0xff] %v9007_v37  ;;  %11640 = vst [vmem:[#allocation134_spill] sm:$0xff] %v9012_v41  ;;  %v9017_v32 = vld [vmem:[%s11257_s14 + $0x3e8] sm:$0xff]  ;;  %v9022_v33 = vld [vmem:[%s11257_s14 + $0x3f0] sm:$0xff] }
  0x4b   :  { %11641 = vst [vmem:[#allocation135_spill] sm:$0xff] %v9017_v32  ;;  %11642 = vst [vmem:[#allocation136_spill] sm:$0xff] %v9022_v33  ;;  %v9027_v34 = vld [vmem:[%s11257_s14 + $0x3f8] sm:$0xff]  ;;  %v9032_v37 = vld [vmem:[%s11257_s14 + $0x400] sm:$0xff] }
  0x4c   :  { %11643 = vst [vmem:[#allocation137_spill] sm:$0xff] %v9027_v34  ;;  %11644 = vst [vmem:[#allocation138_spill] sm:$0xff] %v9032_v37  ;;  %v9037_v41 = vld [vmem:[%s11257_s14 + $0x408] sm:$0xff]  ;;  %v9042_v32 = vld [vmem:[%s11257_s14 + $0x410] sm:$0xff] }
  0x4d   :  { %11645 = vst [vmem:[#allocation139_spill] sm:$0xff] %v9037_v41  ;;  %11646 = vst [vmem:[#allocation140_spill] sm:$0xff] %v9042_v32  ;;  %v9047_v33 = vld [vmem:[%s11257_s14 + $0x418] sm:$0xff]  ;;  %v9052_v34 = vld [vmem:[%s11257_s14 + $0x420] sm:$0xff] }
  0x4e   :  { %11647 = vst [vmem:[#allocation141_spill] sm:$0xff] %v9047_v33  ;;  %11648 = vst [vmem:[#allocation142_spill] sm:$0xff] %v9052_v34  ;;  %v9057_v37 = vld [vmem:[%s11257_s14 + $0x428] sm:$0xff]  ;;  %v9062_v41 = vld [vmem:[%s11257_s14 + $0x430] sm:$0xff] }
  0x4f   :  { %11649 = vst [vmem:[#allocation143_spill] sm:$0xff] %v9057_v37  ;;  %11650 = vst [vmem:[#allocation144_spill] sm:$0xff] %v9062_v41  ;;  %v9067_v32 = vld [vmem:[%s11257_s14 + $0x438] sm:$0xff]  ;;  %v9072_v33 = vld [vmem:[%s11257_s14 + $0x440] sm:$0xff] }
  0x50   :  { %11651 = vst [vmem:[#allocation145_spill] sm:$0xff] %v9067_v32  ;;  %11652 = vst [vmem:[#allocation146_spill] sm:$0xff] %v9072_v33  ;;  %v9077_v34 = vld [vmem:[%s11257_s14 + $0x448] sm:$0xff]  ;;  %v9082_v37 = vld [vmem:[%s11257_s14 + $0x450] sm:$0xff] }
  0x51   :  { %11653 = vst [vmem:[#allocation147_spill] sm:$0xff] %v9077_v34  ;;  %11654 = vst [vmem:[#allocation148_spill] sm:$0xff] %v9082_v37  ;;  %v9087_v41 = vld [vmem:[%s11257_s14 + $0x458] sm:$0xff]  ;;  %v9092_v32 = vld [vmem:[%s11257_s14 + $0x460] sm:$0xff] }
  0x52   :  { %11655 = vst [vmem:[#allocation149_spill] sm:$0xff] %v9087_v41  ;;  %11656 = vst [vmem:[#allocation150_spill] sm:$0xff] %v9092_v32  ;;  %v9097_v33 = vld [vmem:[%s11257_s14 + $0x468] sm:$0xff]  ;;  %v9102_v34 = vld [vmem:[%s11257_s14 + $0x470] sm:$0xff] }
  0x53   :  { %11657 = vst [vmem:[#allocation151_spill] sm:$0xff] %v9097_v33  ;;  %11658 = vst [vmem:[#allocation152_spill] sm:$0xff] %v9102_v34  ;;  %v9107_v37 = vld [vmem:[%s11257_s14 + $0x478] sm:$0xff]  ;;  %v9112_v41 = vld [vmem:[%s11257_s14 + $0x480] sm:$0xff] }
  0x54   :  { %11659 = vst [vmem:[#allocation153_spill] sm:$0xff] %v9107_v37  ;;  %11660 = vst [vmem:[#allocation154_spill] sm:$0xff] %v9112_v41  ;;  %v9117_v32 = vld [vmem:[%s11257_s14 + $0x488] sm:$0xff]  ;;  %v9122_v33 = vld [vmem:[%s11257_s14 + $0x490] sm:$0xff] }
  0x55   :  { %11661 = vst [vmem:[#allocation155_spill] sm:$0xff] %v9117_v32  ;;  %11662 = vst [vmem:[#allocation156_spill] sm:$0xff] %v9122_v33  ;;  %v9127_v34 = vld [vmem:[%s11257_s14 + $0x498] sm:$0xff]  ;;  %v9132_v37 = vld [vmem:[%s11257_s14 + $0x4a0] sm:$0xff] }
  0x56   :  { %11663 = vst [vmem:[#allocation157_spill] sm:$0xff] %v9127_v34  ;;  %11664 = vst [vmem:[#allocation158_spill] sm:$0xff] %v9132_v37  ;;  %v9137_v41 = vld [vmem:[%s11257_s14 + $0x4a8] sm:$0xff]  ;;  %v9142_v32 = vld [vmem:[%s11257_s14 + $0x4b0] sm:$0xff] }
  0x57   :  { %11665 = vst [vmem:[#allocation159_spill] sm:$0xff] %v9137_v41  ;;  %11666 = vst [vmem:[#allocation160_spill] sm:$0xff] %v9142_v32  ;;  %v9147_v33 = vld [vmem:[%s11257_s14 + $0x4b8] sm:$0xff]  ;;  %v9152_v34 = vld [vmem:[%s11257_s14 + $0x4c0] sm:$0xff] }
  0x58   :  { %11667 = vst [vmem:[#allocation161_spill] sm:$0xff] %v9147_v33  ;;  %11668 = vst [vmem:[#allocation162_spill] sm:$0xff] %v9152_v34  ;;  %v9157_v37 = vld [vmem:[%s11257_s14 + $0x4c8] sm:$0xff]  ;;  %v9162_v41 = vld [vmem:[%s11257_s14 + $0x4d0] sm:$0xff] }
  0x59   :  { %11669 = vst [vmem:[#allocation163_spill] sm:$0xff] %v9157_v37  ;;  %11670 = vst [vmem:[#allocation164_spill] sm:$0xff] %v9162_v41  ;;  %v9167_v32 = vld [vmem:[%s11257_s14 + $0x4d8] sm:$0xff]  ;;  %v9172_v33 = vld [vmem:[%s11257_s14 + $0x4e0] sm:$0xff] }
  0x5a   :  { %11671 = vst [vmem:[#allocation165_spill] sm:$0xff] %v9167_v32  ;;  %11672 = vst [vmem:[#allocation166_spill] sm:$0xff] %v9172_v33  ;;  %v9177_v34 = vld [vmem:[%s11257_s14 + $0x4e8] sm:$0xff]  ;;  %v9182_v37 = vld [vmem:[%s11257_s14 + $0x4f0] sm:$0xff] }
  0x5b   :  { %11673 = vst [vmem:[#allocation167_spill] sm:$0xff] %v9177_v34  ;;  %11674 = vst [vmem:[#allocation168_spill] sm:$0xff] %v9182_v37  ;;  %v9187_v41 = vld [vmem:[%s11257_s14 + $0x4f8] sm:$0xff]  ;;  %v9192_v32 = vld [vmem:[%s11257_s14 + $0x500] sm:$0xff] }
  0x5c   :  { %11675 = vst [vmem:[#allocation169_spill] sm:$0xff] %v9187_v41  ;;  %11676 = vst [vmem:[#allocation170_spill] sm:$0xff] %v9192_v32  ;;  %v9197_v33 = vld [vmem:[%s11257_s14 + $0x508] sm:$0xff]  ;;  %v9202_v34 = vld [vmem:[%s11257_s14 + $0x510] sm:$0xff] }
  0x5d   :  { %11677 = vst [vmem:[#allocation171_spill] sm:$0xff] %v9197_v33  ;;  %11678 = vst [vmem:[#allocation172_spill] sm:$0xff] %v9202_v34  ;;  %v9207_v37 = vld [vmem:[%s11257_s14 + $0x518] sm:$0xff]  ;;  %v9212_v41 = vld [vmem:[%s11257_s14 + $0x520] sm:$0xff] }
  0x5e   :  { %11679 = vst [vmem:[#allocation173_spill] sm:$0xff] %v9207_v37  ;;  %11680 = vst [vmem:[#allocation174_spill] sm:$0xff] %v9212_v41  ;;  %v9217_v32 = vld [vmem:[%s11257_s14 + $0x528] sm:$0xff]  ;;  %v9222_v33 = vld [vmem:[%s11257_s14 + $0x530] sm:$0xff] }
  0x5f   :  { %11681 = vst [vmem:[#allocation175_spill] sm:$0xff] %v9217_v32  ;;  %11682 = vst [vmem:[#allocation176_spill] sm:$0xff] %v9222_v33  ;;  %v9227_v34 = vld [vmem:[%s11257_s14 + $0x538] sm:$0xff]  ;;  %v9232_v37 = vld [vmem:[%s11257_s14 + $0x540] sm:$0xff] }
  0x60   :  { %11683 = vst [vmem:[#allocation177_spill] sm:$0xff] %v9227_v34  ;;  %11684 = vst [vmem:[#allocation178_spill] sm:$0xff] %v9232_v37  ;;  %v9237_v41 = vld [vmem:[%s11257_s14 + $0x548] sm:$0xff]  ;;  %v9242_v32 = vld [vmem:[%s11257_s14 + $0x550] sm:$0xff] }
  0x61   :  { %11685 = vst [vmem:[#allocation179_spill] sm:$0xff] %v9237_v41  ;;  %11686 = vst [vmem:[#allocation180_spill] sm:$0xff] %v9242_v32  ;;  %v9247_v33 = vld [vmem:[%s11257_s14 + $0x558] sm:$0xff]  ;;  %v9252_v34 = vld [vmem:[%s11257_s14 + $0x560] sm:$0xff] }
  0x62   :  { %11687 = vst [vmem:[#allocation181_spill] sm:$0xff] %v9247_v33  ;;  %11688 = vst [vmem:[#allocation182_spill] sm:$0xff] %v9252_v34  ;;  %v9257_v37 = vld [vmem:[%s11257_s14 + $0x568] sm:$0xff]  ;;  %v9262_v41 = vld [vmem:[%s11257_s14 + $0x570] sm:$0xff] }
  0x63   :  { %11689 = vst [vmem:[#allocation183_spill] sm:$0xff] %v9257_v37  ;;  %11690 = vst [vmem:[#allocation184_spill] sm:$0xff] %v9262_v41  ;;  %v9267_v32 = vld [vmem:[%s11257_s14 + $0x578] sm:$0xff]  ;;  %v9272_v33 = vld [vmem:[%s11257_s14 + $0x580] sm:$0xff] }
  0x64   :  { %11691 = vst [vmem:[#allocation185_spill] sm:$0xff] %v9267_v32  ;;  %11692 = vst [vmem:[#allocation186_spill] sm:$0xff] %v9272_v33  ;;  %v9277_v34 = vld [vmem:[%s11257_s14 + $0x588] sm:$0xff]  ;;  %v9282_v37 = vld [vmem:[%s11257_s14 + $0x590] sm:$0xff] }
  0x65   :  { %11693 = vst [vmem:[#allocation187_spill] sm:$0xff] %v9277_v34  ;;  %11694 = vst [vmem:[#allocation188_spill] sm:$0xff] %v9282_v37  ;;  %v9287_v41 = vld [vmem:[%s11257_s14 + $0x598] sm:$0xff]  ;;  %v9292_v32 = vld [vmem:[%s11257_s14 + $0x5a0] sm:$0xff] }
  0x66   :  { %11695 = vst [vmem:[#allocation189_spill] sm:$0xff] %v9287_v41  ;;  %11696 = vst [vmem:[#allocation190_spill] sm:$0xff] %v9292_v32  ;;  %v9297_v33 = vld [vmem:[%s11257_s14 + $0x5a8] sm:$0xff]  ;;  %v9302_v34 = vld [vmem:[%s11257_s14 + $0x5b0] sm:$0xff] }
  0x67   :  { %11697 = vst [vmem:[#allocation191_spill] sm:$0xff] %v9297_v33  ;;  %11698 = vst [vmem:[#allocation192_spill] sm:$0xff] %v9302_v34  ;;  %v9307_v37 = vld [vmem:[%s11257_s14 + $0x5b8] sm:$0xff]  ;;  %v9312_v41 = vld [vmem:[%s11257_s14 + $0x5c0] sm:$0xff] }
  0x68   :  { %11699 = vst [vmem:[#allocation193_spill] sm:$0xff] %v9307_v37  ;;  %11700 = vst [vmem:[#allocation194_spill] sm:$0xff] %v9312_v41  ;;  %v9317_v32 = vld [vmem:[%s11257_s14 + $0x5c8] sm:$0xff]  ;;  %v9322_v33 = vld [vmem:[%s11257_s14 + $0x5d0] sm:$0xff] }
  0x69   :  { %11701 = vst [vmem:[#allocation195_spill] sm:$0xff] %v9317_v32  ;;  %11702 = vst [vmem:[#allocation196_spill] sm:$0xff] %v9322_v33  ;;  %v9327_v34 = vld [vmem:[%s11257_s14 + $0x5d8] sm:$0xff]  ;;  %v9332_v37 = vld [vmem:[%s11257_s14 + $0x5e0] sm:$0xff] }
  0x6a   :  { %11703 = vst [vmem:[#allocation197_spill] sm:$0xff] %v9327_v34  ;;  %11704 = vst [vmem:[#allocation198_spill] sm:$0xff] %v9332_v37  ;;  %v9337_v41 = vld [vmem:[%s11257_s14 + $0x5e8] sm:$0xff]  ;;  %v9342_v32 = vld [vmem:[%s11257_s14 + $0x5f0] sm:$0xff] }
  0x6b   :  { %11705 = vst [vmem:[#allocation199_spill] sm:$0xff] %v9337_v41  ;;  %11706 = vst [vmem:[#allocation200_spill] sm:$0xff] %v9342_v32  ;;  %v9347_v33 = vld [vmem:[%s11257_s14 + $0x5f8] sm:$0xff]  ;;  %v9352_v34 = vld [vmem:[%s11257_s14 + $0x600] sm:$0xff] }
  0x6c   :  { %11707 = vst [vmem:[#allocation201_spill] sm:$0xff] %v9347_v33  ;;  %11708 = vst [vmem:[#allocation202_spill] sm:$0xff] %v9352_v34  ;;  %v9357_v37 = vld [vmem:[%s11257_s14 + $0x608] sm:$0xff]  ;;  %v9362_v41 = vld [vmem:[%s11257_s14 + $0x610] sm:$0xff] }
  0x6d   :  { %11709 = vst [vmem:[#allocation203_spill] sm:$0xff] %v9357_v37  ;;  %11710 = vst [vmem:[#allocation204_spill] sm:$0xff] %v9362_v41  ;;  %v9367_v32 = vld [vmem:[%s11257_s14 + $0x618] sm:$0xff]  ;;  %v9372_v33 = vld [vmem:[%s11257_s14 + $0x620] sm:$0xff] }
  0x6e   :  { %11711 = vst [vmem:[#allocation205_spill] sm:$0xff] %v9367_v32  ;;  %11712 = vst [vmem:[#allocation206_spill] sm:$0xff] %v9372_v33  ;;  %v9377_v34 = vld [vmem:[%s11257_s14 + $0x628] sm:$0xff]  ;;  %v9382_v37 = vld [vmem:[%s11257_s14 + $0x630] sm:$0xff] }
  0x6f   :  { %11713 = vst [vmem:[#allocation207_spill] sm:$0xff] %v9377_v34  ;;  %11714 = vst [vmem:[#allocation208_spill] sm:$0xff] %v9382_v37  ;;  %v9387_v41 = vld [vmem:[%s11257_s14 + $0x638] sm:$0xff]  ;;  %v9392_v32 = vld [vmem:[%s11257_s14 + $0x640] sm:$0xff] }
  0x70   :  { %11715 = vst [vmem:[#allocation209_spill] sm:$0xff] %v9387_v41  ;;  %11716 = vst [vmem:[#allocation210_spill] sm:$0xff] %v9392_v32  ;;  %v9397_v33 = vld [vmem:[%s11257_s14 + $0x648] sm:$0xff]  ;;  %v9402_v34 = vld [vmem:[%s11257_s14 + $0x650] sm:$0xff] }
  0x71   :  { %11717 = vst [vmem:[#allocation211_spill] sm:$0xff] %v9397_v33  ;;  %11718 = vst [vmem:[#allocation212_spill] sm:$0xff] %v9402_v34  ;;  %v9407_v37 = vld [vmem:[%s11257_s14 + $0x658] sm:$0xff]  ;;  %v9412_v41 = vld [vmem:[%s11257_s14 + $0x660] sm:$0xff] }
  0x72   :  { %11719 = vst [vmem:[#allocation213_spill] sm:$0xff] %v9407_v37  ;;  %11720 = vst [vmem:[#allocation214_spill] sm:$0xff] %v9412_v41  ;;  %v9417_v32 = vld [vmem:[%s11257_s14 + $0x668] sm:$0xff]  ;;  %v9422_v33 = vld [vmem:[%s11257_s14 + $0x670] sm:$0xff] }
  0x73   :  { %11721 = vst [vmem:[#allocation215_spill] sm:$0xff] %v9417_v32  ;;  %11722 = vst [vmem:[#allocation216_spill] sm:$0xff] %v9422_v33  ;;  %v9427_v34 = vld [vmem:[%s11257_s14 + $0x678] sm:$0xff]  ;;  %v9432_v37 = vld [vmem:[%s11257_s14 + $0x680] sm:$0xff] }
  0x74   :  { %11723 = vst [vmem:[#allocation217_spill] sm:$0xff] %v9427_v34  ;;  %11724 = vst [vmem:[#allocation218_spill] sm:$0xff] %v9432_v37  ;;  %v9437_v41 = vld [vmem:[%s11257_s14 + $0x688] sm:$0xff]  ;;  %v9442_v32 = vld [vmem:[%s11257_s14 + $0x690] sm:$0xff] }
  0x75   :  { %11725 = vst [vmem:[#allocation219_spill] sm:$0xff] %v9437_v41  ;;  %11726 = vst [vmem:[#allocation220_spill] sm:$0xff] %v9442_v32  ;;  %v9447_v33 = vld [vmem:[%s11257_s14 + $0x698] sm:$0xff]  ;;  %v9452_v34 = vld [vmem:[%s11257_s14 + $0x6a0] sm:$0xff] }
  0x76   :  { %11727 = vst [vmem:[#allocation221_spill] sm:$0xff] %v9447_v33  ;;  %11728 = vst [vmem:[#allocation222_spill] sm:$0xff] %v9452_v34  ;;  %v9457_v37 = vld [vmem:[%s11257_s14 + $0x6a8] sm:$0xff]  ;;  %v9462_v41 = vld [vmem:[%s11257_s14 + $0x6b0] sm:$0xff] }
  0x77   :  { %11729 = vst [vmem:[#allocation223_spill] sm:$0xff] %v9457_v37  ;;  %11730 = vst [vmem:[#allocation224_spill] sm:$0xff] %v9462_v41  ;;  %v9467_v32 = vld [vmem:[%s11257_s14 + $0x6b8] sm:$0xff]  ;;  %v9472_v33 = vld [vmem:[%s11257_s14 + $0x6c0] sm:$0xff] }
  0x78   :  { %11731 = vst [vmem:[#allocation225_spill] sm:$0xff] %v9467_v32  ;;  %11732 = vst [vmem:[#allocation226_spill] sm:$0xff] %v9472_v33  ;;  %v9477_v34 = vld [vmem:[%s11257_s14 + $0x6c8] sm:$0xff]  ;;  %v9482_v37 = vld [vmem:[%s11257_s14 + $0x6d0] sm:$0xff] }
  0x79   :  { %11733 = vst [vmem:[#allocation227_spill] sm:$0xff] %v9477_v34  ;;  %11734 = vst [vmem:[#allocation228_spill] sm:$0xff] %v9482_v37  ;;  %v9487_v41 = vld [vmem:[%s11257_s14 + $0x6d8] sm:$0xff]  ;;  %v9492_v32 = vld [vmem:[%s11257_s14 + $0x6e0] sm:$0xff] }
  0x7a   :  { %11735 = vst [vmem:[#allocation229_spill] sm:$0xff] %v9487_v41  ;;  %11736 = vst [vmem:[#allocation230_spill] sm:$0xff] %v9492_v32  ;;  %v9497_v33 = vld [vmem:[%s11257_s14 + $0x6e8] sm:$0xff]  ;;  %v9502_v34 = vld [vmem:[%s11257_s14 + $0x6f0] sm:$0xff] }
  0x7b   :  { %11737 = vst [vmem:[#allocation231_spill] sm:$0xff] %v9497_v33  ;;  %11738 = vst [vmem:[#allocation232_spill] sm:$0xff] %v9502_v34  ;;  %v9507_v37 = vld [vmem:[%s11257_s14 + $0x6f8] sm:$0xff]  ;;  %v9512_v41 = vld [vmem:[%s11257_s14 + $0x700] sm:$0xff] }
  0x7c   :  { %11739 = vst [vmem:[#allocation233_spill] sm:$0xff] %v9507_v37  ;;  %11740 = vst [vmem:[#allocation234_spill] sm:$0xff] %v9512_v41  ;;  %v9517_v32 = vld [vmem:[%s11257_s14 + $0x708] sm:$0xff]  ;;  %v9522_v33 = vld [vmem:[%s11257_s14 + $0x710] sm:$0xff] }
  0x7d   :  { %11741 = vst [vmem:[#allocation235_spill] sm:$0xff] %v9517_v32  ;;  %11742 = vst [vmem:[#allocation236_spill] sm:$0xff] %v9522_v33  ;;  %v9527_v34 = vld [vmem:[%s11257_s14 + $0x718] sm:$0xff]  ;;  %v9532_v37 = vld [vmem:[%s11257_s14 + $0x720] sm:$0xff] }
  0x7e   :  { %11743 = vst [vmem:[#allocation237_spill] sm:$0xff] %v9527_v34  ;;  %11744 = vst [vmem:[#allocation238_spill] sm:$0xff] %v9532_v37  ;;  %v9537_v41 = vld [vmem:[%s11257_s14 + $0x728] sm:$0xff]  ;;  %v9542_v32 = vld [vmem:[%s11257_s14 + $0x730] sm:$0xff] }
  0x7f   :  { %11745 = vst [vmem:[#allocation239_spill] sm:$0xff] %v9537_v41  ;;  %11746 = vst [vmem:[#allocation240_spill] sm:$0xff] %v9542_v32  ;;  %v9547_v33 = vld [vmem:[%s11257_s14 + $0x738] sm:$0xff]  ;;  %v9552_v34 = vld [vmem:[%s11257_s14 + $0x740] sm:$0xff] }
  0x80   :  { %11747 = vst [vmem:[#allocation241_spill] sm:$0xff] %v9547_v33  ;;  %11748 = vst [vmem:[#allocation242_spill] sm:$0xff] %v9552_v34  ;;  %v9557_v37 = vld [vmem:[%s11257_s14 + $0x748] sm:$0xff]  ;;  %v9562_v41 = vld [vmem:[%s11257_s14 + $0x750] sm:$0xff] }
  0x81   :  { %11749 = vst [vmem:[#allocation243_spill] sm:$0xff] %v9557_v37  ;;  %11750 = vst [vmem:[#allocation244_spill] sm:$0xff] %v9562_v41  ;;  %v9567_v32 = vld [vmem:[%s11257_s14 + $0x758] sm:$0xff]  ;;  %v9572_v33 = vld [vmem:[%s11257_s14 + $0x760] sm:$0xff] }
  0x82   :  { %11751 = vst [vmem:[#allocation245_spill] sm:$0xff] %v9567_v32  ;;  %11752 = vst [vmem:[#allocation246_spill] sm:$0xff] %v9572_v33  ;;  %v9577_v34 = vld [vmem:[%s11257_s14 + $0x768] sm:$0xff]  ;;  %v9582_v37 = vld [vmem:[%s11257_s14 + $0x770] sm:$0xff] }
  0x83   :  { %11753 = vst [vmem:[#allocation247_spill] sm:$0xff] %v9577_v34  ;;  %11754 = vst [vmem:[#allocation248_spill] sm:$0xff] %v9582_v37  ;;  %v9587_v41 = vld [vmem:[%s11257_s14 + $0x778] sm:$0xff]  ;;  %v9592_v32 = vld [vmem:[%s11257_s14 + $0x780] sm:$0xff] }
  0x84   :  { %11755 = vst [vmem:[#allocation249_spill] sm:$0xff] %v9587_v41  ;;  %11756 = vst [vmem:[#allocation250_spill] sm:$0xff] %v9592_v32  ;;  %v9597_v33 = vld [vmem:[%s11257_s14 + $0x788] sm:$0xff]  ;;  %v9602_v34 = vld [vmem:[%s11257_s14 + $0x790] sm:$0xff] }
  0x85   :  { %11757 = vst [vmem:[#allocation251_spill] sm:$0xff] %v9597_v33  ;;  %11758 = vst [vmem:[#allocation252_spill] sm:$0xff] %v9602_v34  ;;  %v9607_v37 = vld [vmem:[%s11257_s14 + $0x798] sm:$0xff]  ;;  %v9612_v41 = vld [vmem:[%s11257_s14 + $0x7a0] sm:$0xff] }
  0x86   :  { %11759 = vst [vmem:[#allocation253_spill] sm:$0xff] %v9607_v37  ;;  %11760 = vst [vmem:[#allocation254_spill] sm:$0xff] %v9612_v41  ;;  %v9617_v32 = vld [vmem:[%s11257_s14 + $0x7a8] sm:$0xff]  ;;  %v9622_v33 = vld [vmem:[%s11257_s14 + $0x7b0] sm:$0xff] }
  0x87   :  { %11761 = vst [vmem:[#allocation255_spill] sm:$0xff] %v9617_v32  ;;  %11762 = vst [vmem:[#allocation256_spill] sm:$0xff] %v9622_v33  ;;  %v9627_v34 = vld [vmem:[%s11257_s14 + $0x7b8] sm:$0xff]  ;;  %v9632_v37 = vld [vmem:[%s11257_s14 + $0x7c0] sm:$0xff] }
  0x88   :  { %11763 = vst [vmem:[#allocation257_spill] sm:$0xff] %v9627_v34  ;;  %11764 = vst [vmem:[#allocation258_spill] sm:$0xff] %v9632_v37  ;;  %v9637_v41 = vld [vmem:[%s11257_s14 + $0x7c8] sm:$0xff]  ;;  %v9642_v32 = vld [vmem:[%s11257_s14 + $0x7d0] sm:$0xff] }
  0x89   :  { %11765 = vst [vmem:[#allocation259_spill] sm:$0xff] %v9637_v41  ;;  %11766 = vst [vmem:[#allocation260_spill] sm:$0xff] %v9642_v32  ;;  %v9647_v33 = vld [vmem:[%s11257_s14 + $0x7d8] sm:$0xff]  ;;  %v9652_v34 = vld [vmem:[%s11257_s14 + $0x7e0] sm:$0xff] }
  0x8a   :  { %11767 = vst [vmem:[#allocation261_spill] sm:$0xff] %v9647_v33  ;;  %11768 = vst [vmem:[#allocation262_spill] sm:$0xff] %v9652_v34  ;;  %v9657_v37 = vld [vmem:[%s11257_s14 + $0x7e8] sm:$0xff]  ;;  %v9662_v41 = vld [vmem:[%s11257_s14 + $0x7f0] sm:$0xff] }
  0x8b   :  { %11769 = vst [vmem:[#allocation263_spill] sm:$0xff] %v9657_v37  ;;  %11770 = vst [vmem:[#allocation264_spill] sm:$0xff] %v9662_v41  ;;  %v9667_v32 = vld [vmem:[%s11257_s14 + $0x7f8] sm:$0xff] }
  0x8c   :  { %11771 = vst [vmem:[#allocation265_spill] sm:$0xff] %v9667_v32 }
  0x8d   :  { %706 = vsyncadd [#allocation5 + $0x1], 32768  ;;  %v741_v33 = vld [vmem:[%s11258_s15] sm:$0xff]  ;;  %v743_v34 = vld [vmem:[%s11258_s15 + $0x8] sm:$0xff] }
  0x8e   :  { %742 = vst [vmem:[#allocation4] sm:$0xff] %v741_v33  ;;  %744 = vst [vmem:[#allocation4 + $0x8] sm:$0xff] %v743_v34  ;;  %v745_v37 = vld [vmem:[%s11258_s15 + $0x10] sm:$0xff]  ;;  %v747_v41 = vld [vmem:[%s11258_s15 + $0x18] sm:$0xff] }
  0x8f   :  { %v749_v32 = vld [vmem:[%s11258_s15 + $0x20] sm:$0xff]  ;;  %746 = vst [vmem:[#allocation4 + $0x10] sm:$0xff] %v745_v37  ;;  %748 = vst [vmem:[#allocation4 + $0x18] sm:$0xff] %v747_v41  ;;  %v751_v33 = vld [vmem:[%s11258_s15 + $0x28] sm:$0xff] }
  0x90   :  { %750 = vst [vmem:[#allocation4 + $0x20] sm:$0xff] %v749_v32  ;;  %v753_v34 = vld [vmem:[%s11258_s15 + $0x30] sm:$0xff]  ;;  %v755_v35 = vld [vmem:[%s11258_s15 + $0x38] sm:$0xff]  ;;  %752 = vst [vmem:[#allocation4 + $0x28] sm:$0xff] %v751_v33 }
  0x91   :  { %754 = vst [vmem:[#allocation4 + $0x30] sm:$0xff] %v753_v34  ;;  %756 = vst [vmem:[#allocation4 + $0x38] sm:$0xff] %v755_v35  ;;  %v757_v37 = vld [vmem:[%s11258_s15 + $0x40] sm:$0xff]  ;;  %v759_v32 = vld [vmem:[%s11258_s15 + $0x48] sm:$0xff] }
  0x92   :  { %v761_v41 = vld [vmem:[%s11258_s15 + $0x50] sm:$0xff]  ;;  %758 = vst [vmem:[#allocation4 + $0x40] sm:$0xff] %v757_v37  ;;  %760 = vst [vmem:[#allocation4 + $0x48] sm:$0xff] %v759_v32  ;;  %v763_v33 = vld [vmem:[%s11258_s15 + $0x58] sm:$0xff] }
  0x93   :  { %762 = vst [vmem:[#allocation4 + $0x50] sm:$0xff] %v761_v41  ;;  %v765_v35 = vld [vmem:[%s11258_s15 + $0x60] sm:$0xff]  ;;  %v767_v34 = vld [vmem:[%s11258_s15 + $0x68] sm:$0xff]  ;;  %764 = vst [vmem:[#allocation4 + $0x58] sm:$0xff] %v763_v33 }
  0x94   :  { %766 = vst [vmem:[#allocation4 + $0x60] sm:$0xff] %v765_v35  ;;  %768 = vst [vmem:[#allocation4 + $0x68] sm:$0xff] %v767_v34  ;;  %v769_v37 = vld [vmem:[%s11258_s15 + $0x70] sm:$0xff]  ;;  %v771_v32 = vld [vmem:[%s11258_s15 + $0x78] sm:$0xff] }
  0x95   :  { %v773_v41 = vld [vmem:[%s11258_s15 + $0x80] sm:$0xff]  ;;  %770 = vst [vmem:[#allocation4 + $0x70] sm:$0xff] %v769_v37  ;;  %772 = vst [vmem:[#allocation4 + $0x78] sm:$0xff] %v771_v32  ;;  %v775_v33 = vld [vmem:[%s11258_s15 + $0x88] sm:$0xff] }
  0x96   :  { %774 = vst [vmem:[#allocation4 + $0x80] sm:$0xff] %v773_v41  ;;  %v777_v35 = vld [vmem:[%s11258_s15 + $0x90] sm:$0xff]  ;;  %v779_v34 = vld [vmem:[%s11258_s15 + $0x98] sm:$0xff]  ;;  %776 = vst [vmem:[#allocation4 + $0x88] sm:$0xff] %v775_v33 }
  0x97   :  { %778 = vst [vmem:[#allocation4 + $0x90] sm:$0xff] %v777_v35  ;;  %780 = vst [vmem:[#allocation4 + $0x98] sm:$0xff] %v779_v34  ;;  %v781_v37 = vld [vmem:[%s11258_s15 + $0xa0] sm:$0xff]  ;;  %v783_v32 = vld [vmem:[%s11258_s15 + $0xa8] sm:$0xff] }
  0x98   :  { %v785_v41 = vld [vmem:[%s11258_s15 + $0xb0] sm:$0xff]  ;;  %782 = vst [vmem:[#allocation4 + $0xa0] sm:$0xff] %v781_v37  ;;  %784 = vst [vmem:[#allocation4 + $0xa8] sm:$0xff] %v783_v32  ;;  %v787_v33 = vld [vmem:[%s11258_s15 + $0xb8] sm:$0xff] }
  0x99   :  { %786 = vst [vmem:[#allocation4 + $0xb0] sm:$0xff] %v785_v41  ;;  %v789_v35 = vld [vmem:[%s11258_s15 + $0xc0] sm:$0xff]  ;;  %v791_v34 = vld [vmem:[%s11258_s15 + $0xc8] sm:$0xff]  ;;  %788 = vst [vmem:[#allocation4 + $0xb8] sm:$0xff] %v787_v33 }
  0x9a   :  { %790 = vst [vmem:[#allocation4 + $0xc0] sm:$0xff] %v789_v35  ;;  %792 = vst [vmem:[#allocation4 + $0xc8] sm:$0xff] %v791_v34  ;;  %v793_v37 = vld [vmem:[%s11258_s15 + $0xd0] sm:$0xff]  ;;  %v795_v32 = vld [vmem:[%s11258_s15 + $0xd8] sm:$0xff] }
  0x9b   :  { %v797_v41 = vld [vmem:[%s11258_s15 + $0xe0] sm:$0xff]  ;;  %794 = vst [vmem:[#allocation4 + $0xd0] sm:$0xff] %v793_v37  ;;  %796 = vst [vmem:[#allocation4 + $0xd8] sm:$0xff] %v795_v32  ;;  %v799_v33 = vld [vmem:[%s11258_s15 + $0xe8] sm:$0xff] }
  0x9c   :  { %798 = vst [vmem:[#allocation4 + $0xe0] sm:$0xff] %v797_v41  ;;  %v801_v35 = vld [vmem:[%s11258_s15 + $0xf0] sm:$0xff]  ;;  %v803_v34 = vld [vmem:[%s11258_s15 + $0xf8] sm:$0xff]  ;;  %800 = vst [vmem:[#allocation4 + $0xe8] sm:$0xff] %v799_v33 }
  0x9d   :  { %802 = vst [vmem:[#allocation4 + $0xf0] sm:$0xff] %v801_v35  ;;  %804 = vst [vmem:[#allocation4 + $0xf8] sm:$0xff] %v803_v34 }
  0x9e   :  { %812 = vsyncadd [#allocation5 + $0x2], 4096  ;;  %v7893_v37 = vld [vmem:[%s11247_s4 + $0x38] sm:$0xff]   ;;  %v11497_v32 = vmov 0   ;;  %v7894_v41 = vld [vmem:[%s11247_s4 + $0x30] sm:$0xff]   ;;  %s11772_s30 = sld [smem:[#allocation266_spill]] }
  0x9f   :  { %932 = vmatprep.subr.bf16.mxu0 %v11497_v32  ;;  %v7895_v33 = vld [vmem:[%s11247_s4 + $0x28] sm:$0xff]   ;;  %v7896_v35 = vld [vmem:[%s11247_s4 + $0x20] sm:$0xff]   ;;  %vm925_vm0 = vcmask 523264   ;;  %v7898_v36 = vld [vmem:[%s11247_s4 + $0x10] sm:$0xff]   ;;  %vm1005_vm1 = vcmask 521216   ;;  %vm1358_vm2 = vcmask 261120  }
  0xa0   :  { %933 = vmatpush1.bf16.msra.mxu0 %v7893_v37  ;;  %vm1476_vm3 = vcmask 1046528   ;;  %vm1420_vm4 = vcmask 244736   ;;  %vm1430_vm5 = vcmask 242688   ;;  %vm8143_vm6 = vmmov 0  }
  0xa1   :  { %934 = vmatprep.subr.bf16.mxu0 %v11497_v32 }
  0xa4   :  { %935 = vmatpush1.bf16.msra.mxu0 %v7894_v41  ;;  %v814_v34 = vld [vmem:[%s11772_s30 + $0x8] sm:$0xff]  ;;  %v816_v37 = vld [vmem:[%s11772_s30 + $0x18] sm:$0xff]  ;;  %v817_v43 = vld [vmem:[%s11772_s30 + $0x20] sm:$0xff] }
  0xa5   :  { %936 = vmatprep.subr.bf16.mxu0 %v11497_v32  ;;  %v846_v41 = vpack.c.bf16 %v816_v37, %v814_v34  ;;  %v7899_v34 = vld [vmem:[%s11247_s4 + $0x8] sm:$0xff]   ;;  %v7901_v37 = vld [vmem:[%s11247_s4 + $0x58] sm:$0xff]   ;;  %v819_v40 = vld [vmem:[%s11772_s30 + $0x30] sm:$0x3f] }
  0xa6   :  { %v847_v42 = vpack.c.bf16 %v819_v40, %v817_v43 }
  0xa7   :  { %6729 = vmatprep.mubr.msk.bf16.mxu0 %vm925_vm0, %v846_v41  ;;  %v7903_v41 = vld [vmem:[%s11247_s4 + $0x48] sm:$0xff]  }
  0xa8   :  { %937 = vmatpush1.bf16.msra.mxu0 %v7895_v33  ;;  %v7897_v33 = vld [vmem:[%s11247_s4 + $0x18] sm:$0xff]  }
  0xa9   :  { %938 = vmatprep.subr.bf16.mxu0 %v11497_v32 }
  0xac   :  { %939 = vmatpush1.bf16.msra.mxu0 %v7896_v35  ;;  %v7900_v35 = vld [vmem:[%s11247_s4] sm:$0xff]  }
  0xad   :  { %940 = vmatprep.subr.bf16.mxu0 %v11497_v32 }
  0xb0   :  { %941 = vmatpush1.bf16.msra.mxu0 %v7897_v33  ;;  %v7904_v33 = vld [vmem:[%s11247_s4 + $0x40] sm:$0xff]  }
  0xb1   :  { %942 = vmatprep.subr.bf16.mxu0 %v11497_v32 }
  0xb4   :  { %943 = vmatpush1.bf16.msra.mxu0 %v7898_v36  ;;  %v7902_v36 = vld [vmem:[%s11247_s4 + $0x50] sm:$0xff]  }
  0xb5   :  { %944 = vmatprep.subr.bf16.mxu0 %v11497_v32 }
  0xb8   :  { %945 = vmatpush1.bf16.msra.mxu0 %v7899_v34  ;;  %v813_v34 = vld [vmem:[%s11772_s30] sm:$0xff] }
  0xb9   :  { %946 = vmatprep.subr.bf16.mxu0 %v11497_v32 }
  0xbc   :  { %947 = vmatpush1.bf16.msra.mxu0 %v7900_v35  ;;  %v815_v35 = vld [vmem:[%s11772_s30 + $0x10] sm:$0xff] }
  0xbd   :  { %956 = vmatprep.subr.bf16.mxu0 %v11497_v32  ;;  %v845_v38 = vpack.c.bf16 %v815_v35, %v813_v34 }
  0xc0   :  { %957 = vmatpush2.bf16.msra.mxu0 %v7901_v37  ;;  %v818_v37 = vld [vmem:[%s11772_s30 + $0x28] sm:$0xff] }
  0xc1   :  { %958 = vmatprep.subr.bf16.mxu0 %v11497_v32 }
  0xc4   :  { %959 = vmatpush2.bf16.msra.mxu0 %v7902_v36  ;;  %v820_v36 = vld [vmem:[%s11772_s30 + $0x38] sm:$0x3f] }
  0xc5   :  { %960 = vmatprep.subr.bf16.mxu0 %v11497_v32  ;;  %v848_v39 = vpack.c.bf16 %v820_v36, %v818_v37  ;;  %v850_v37 = vld [vmem:[%s11244_s1 + $0x8] sm:$0xff] }
  0xc8   :  { %961 = vmatpush2.bf16.msra.mxu0 %v7903_v41  ;;  %v849_v41 = vld [vmem:[%s11244_s1] sm:$0xff] }
  0xc9   :  { %962 = vmatprep.subr.bf16.mxu0 %v11497_v32  ;;  %v852_v32 = vld [vmem:[%s11244_s1 + $0x18] sm:$0x3f] }
  0xcc   :  { %963 = vmatpush2.bf16.msra.mxu0 %v7904_v33 }
  0xcf   :  { %965 = vmatmul.mubr.bf16.vlgmr.msra.gmra.mxu0 %v845_v38 }
  0xd0   :  { %6730 = vmatprep.mubr.msk.bf16.mxu0 %vm925_vm0, %v848_v39 }
  0xd7   :  { %973 = vmatmul.mubr.bf16.gmra.mxu0 %v847_v42  ;;  %v851_v42 = vld [vmem:[%s11244_s1 + $0x10] sm:$0xff] }
 0x18f   :  { %v966_v34 = vpop.f32.mrf.mxu0 }
 0x190   :  { %v9842_v33 = vadd.f32 %v966_v34, %v849_v41 }
 0x191   :  { %v968_v35 = vpop.f32.mrf.mxu0 }
 0x192   :  { %v996_v36 = vsel %vm925_vm0, %v9842_v33, 0.0 }
 0x193   :  { %v969_v38 = vpop.f32.mrf.mxu0  ;;  %997 = vadd.xlane.f32.xlu0 %v996_v36 }
 0x194   :  { %v9849_v39 = vadd.f32 %v969_v38, %v850_v37 }
 0x195   :  { %v971_v40 = vpop.f32.mrf.mxu0 }
 0x196   :  { %v999_v43 = vsel %vm925_vm0, %v9849_v39, 0.0 }
 0x197   :  { %v974_v41 = vpop.f32.mrf.mxu0  ;;  %1000 = vadd.xlane.f32.xlu0 %v999_v43 }
 0x198   :  { %v9856_v34 = vadd.f32 %v974_v41, %v851_v42 }
 0x199   :  { %v976_v35 = vpop.f32.mrf.mxu0 }
 0x19a   :  { %v1002_v37 = vsel %vm925_vm0, %v9856_v34, 0.0 }
 0x19b   :  { %v977_v36 = vpop.f32.mrf.mxu0  ;;  %1003 = vadd.xlane.f32.xlu1 %v1002_v37 }
 0x19c   :  { %v9863_v38 = vadd.f32 %v977_v36, %v852_v32 }
 0x19d   :  { %v979_v40 = vpop.f32.mrf.mxu0 }
 0x19e   :  { %v1006_v45 = vsel %vm1005_vm1, %v9863_v38, 0.0 }
 0x19f   :  { %1007 = vadd.xlane.f32.xlu1 %v1006_v45 }
 0x21c   :  { %v998_v42 = vpop.xlane.xlu0 %997 }
 0x21d   :  { %v1010_v43 = vmul.f32 0.015625, %v998_v42 }
 0x21f   :  { %v1014_v41 = vsub.f32 %v9842_v33, %v1010_v43 }
 0x220   :  { %v1001_v35 = vpop.xlane.xlu0 %1000 }
 0x221   :  { %v1011_v47 = vmul.f32 0.015625, %v1001_v35  ;;  %v1018_v44 = vmul.f32 %v1014_v41, %v1014_v41 }
 0x223   :  { %v1015_v46 = vsub.f32 %v9849_v39, %v1011_v47  ;;  %v1022_v49 = vsel %vm925_vm0, %v1018_v44, 0.0 }
 0x224   :  { %v1004_v37 = vpop.xlane.xlu1 %1003  ;;  %1023 = vadd.xlane.f32.xlu0 %v1022_v49  ;;  %v7905_v49 = vld [vmem:[%s11248_s5 + $0x18] sm:$0xff]  }
 0x225   :  { %v1012_v32 = vmul.f32 0.015625, %v1004_v37  ;;  %v1019_v36 = vmul.f32 %v1015_v46, %v1015_v46  ;;  %7566 = vmatprep.subr.bf16.mxu1 %v7905_v49  ;;  %v7908_v37 = vld [vmem:[%s11248_s5] sm:$0xff]  }
 0x226   :  { %7567 = vmatpush3.bf16.msra.mxu1 %v7905_v49 }
 0x227   :  { %v1016_v40 = vsub.f32 %v9856_v34, %v1012_v32  ;;  %v1025_v51 = vsel %vm925_vm0, %v1019_v36, 0.0  ;;  %v7909_v32 = vld [vmem:[%s11248_s5 + $0x58] sm:$0xff]  }
 0x228   :  { %v1008_v45 = vpop.xlane.xlu1 %1007  ;;  %1026 = vadd.xlane.f32.xlu1 %v1025_v51  ;;  %v7906_v51 = vld [vmem:[%s11248_s5 + $0x10] sm:$0xff]  }
 0x229   :  { %v1013_v42 = vmul.f32 0.015625, %v1008_v45  ;;  %v1020_v48 = vmul.f32 %v1016_v40, %v1016_v40  ;;  %7568 = vmatprep.subr.bf16.mxu1 %v7906_v51 }
 0x22a   :  { %7569 = vmatpush3.bf16.msra.mxu1 %v7906_v51 }
 0x22b   :  { %v1017_v43 = vsub.f32 %v9863_v38, %v1013_v42  ;;  %v1028_v35 = vsel %vm925_vm0, %v1020_v48, 0.0  ;;  %v7907_v48 = vld [vmem:[%s11248_s5 + $0x8] sm:$0xff]  }
 0x22c   :  { %1029 = vadd.xlane.f32.xlu0 %v1028_v35  ;;  %7570 = vmatprep.subr.bf16.mxu1 %v7907_v48 }
 0x22d   :  { %v1021_v47 = vmul.f32 %v1017_v43, %v1017_v43 }
 0x22e   :  { %7571 = vmatpush3.bf16.msra.mxu1 %v7907_v48 }
 0x22f   :  { %v1031_v44 = vsel %vm1005_vm1, %v1021_v47, 0.0  ;;  %7572 = vmatprep.subr.bf16.mxu1 %v7908_v37 }
 0x230   :  { %1032 = vadd.xlane.f32.xlu1 %v1031_v44 }
 0x232   :  { %7573 = vmatpush3.bf16.msra.mxu1 %v7908_v37  ;;  %v6736_v37 = vld [vmem:[%s11254_s11] ss:$0 sm:$0xff] }
 0x233   :  { %7578 = vmatprep.subr.bf16.mxu1 %v7909_v32 }
 0x2ad   :  { %v1024_v36 = vpop.xlane.xlu0 %1023 }
 0x2ae   :  { %v1034_v45 = vmul.f32 0.015625, %v1024_v36 }
 0x2b0   :  { %v1038_v42 = vadd.f32 1e-06, %v1034_v45 }
 0x2b1   :  { %v1027_v35 = vpop.xlane.xlu1 %1026 }
 0x2b2   :  { %7985 = vrsqrt.f32 %v1038_v42  ;;  %v1035_v47 = vmul.f32 0.015625, %v1027_v35  ;;  %v6737_v35 = vld [vmem:[%s11254_s11 + $0x1] ss:$0 sm:$0xff] }
 0x2b4   :  { %v1039_v44 = vadd.f32 1e-06, %v1035_v47 }
 0x2b5   :  { %v1030_v49 = vpop.xlane.xlu0 %1029 }
 0x2b6   :  { %7987 = vrsqrt.f32 %v1039_v44  ;;  %v1036_v51 = vmul.f32 0.015625, %v1030_v49 }
 0x2b8   :  { %v1040_v48 = vadd.f32 1e-06, %v1036_v51 }
 0x2b9   :  { %v1033_v50 = vpop.xlane.xlu1 %1032 }
 0x2ba   :  { %7989 = vrsqrt.f32 %v1040_v48  ;;  %v1037_v53 = vmul.f32 0.015625, %v1033_v50 }
 0x2bc   :  { %v1041_v55 = vadd.f32 1e-06, %v1037_v53 }
 0x2be   :  { %7991 = vrsqrt.f32 %v1041_v55 }
 0x2bf   :  { %v7986_v52 = vpop.eup %7985 }
 0x2c0   :  { %v1046_v54 = vmul.f32 %v7986_v52, %v1014_v41 }
 0x2c2   :  { %v1056_v45 = vmul.f32 %v6736_v37, %v1046_v54 }
 0x2c3   :  { %v7988_v36 = vpop.eup %7987 }
 0x2c4   :  { %v1047_v42 = vmul.f32 %v7988_v36, %v1015_v46  ;;  %v1066_v51 = vadd.f32 %v6737_v35, %v1056_v45  ;;  %v7915_v45 = vld [vmem:[%s11248_s5 + $0x88] sm:$0xff]  }
 0x2c6   :  { %v1057_v47 = vmul.f32 %v6736_v37, %v1047_v42  ;;  %v7910_v42 = vld [vmem:[%s11248_s5 + $0x50] sm:$0xff]  }
 0x2c7   :  { %v7990_v44 = vpop.eup %7989 }
 0x2c8   :  { %v1048_v49 = vmul.f32 %v7990_v44, %v1016_v40  ;;  %v1067_v50 = vadd.f32 %v6737_v35, %v1057_v47  ;;  %v7911_v40 = vld [vmem:[%s11248_s5 + $0x48] sm:$0xff]  }
 0x2ca   :  { %v9896_v53 = vpack.c.bf16 %v1067_v50, %v1066_v51  ;;  %v1058_v52 = vmul.f32 %v6736_v37, %v1048_v49  ;;  %v6738_v51 = vld [vmem:[%s11249_s6] ss:$0 sm:$0xff] }
 0x2cb   :  { %v7992_v55 = vpop.eup %7991 }
 0x2cc   :  { %v1049_v41 = vmul.f32 %v7992_v55, %v1017_v43  ;;  %7574 = vmatprep.mubr.msk.bf16.mxu1 %vm925_vm0, %v9896_v53  ;;  %v1068_v54 = vadd.f32 %v6737_v35, %v1058_v52  ;;  %v7912_v43 = vld [vmem:[%s11248_s5 + $0x40] sm:$0xff]  }
 0x2ce   :  { %v1059_v48 = vmul.f32 %v6736_v37, %v1049_v41  ;;  %v7914_v37 = vld [vmem:[%s11248_s5 + $0x90] sm:$0xff]  }
 0x2d0   :  { %v1069_v46 = vadd.f32 %v6737_v35, %v1059_v48  ;;  %v7916_v35 = vld [vmem:[%s11248_s5 + $0x80] sm:$0xff]  }
 0x2d2   :  { %v9900_v36 = vpack.c.bf16 %v1069_v46, %v1068_v54  ;;  %v6754_v54 = vld [vmem:[%s11249_s6 + $0x2] ss:$0 sm:$0xff] }
 0x2d4   :  { %7575 = vmatmul.mubr.msk.bf16.vlgmr.msra.gmra.mxu1 %vm925_vm0, %v9900_v36 }
 0x2d5   :  { %7579 = vmatpush3.bf16.msra.mxu1 %v7909_v32  ;;  %7586 = vmatprep.mubr.msk.bf16.mxu1 %vm925_vm0, %v9896_v53  ;;  %v7913_v32 = vld [vmem:[%s11248_s5 + $0x98] sm:$0xff]  }
 0x2d6   :  { %7580 = vmatprep.subr.bf16.mxu1 %v7910_v42 }
 0x2d9   :  { %7581 = vmatpush3.bf16.msra.mxu1 %v7910_v42 }
 0x2da   :  { %7582 = vmatprep.subr.bf16.mxu1 %v7911_v40 }
 0x2dd   :  { %7583 = vmatpush3.bf16.msra.mxu1 %v7911_v40 }
 0x2de   :  { %7584 = vmatprep.subr.bf16.mxu1 %v7912_v43 }
 0x2e1   :  { %7585 = vmatpush3.bf16.msra.mxu1 %v7912_v43 }
 0x2e2   :  { %7590 = vmatprep.subr.bf16.mxu1 %v7913_v32 }
 0x2e4   :  { %7587 = vmatmul.mubr.msk.bf16.vlgmr.msra.gmra.mxu1 %vm925_vm0, %v9900_v36 }
 0x2e5   :  { %7591 = vmatpush3.bf16.msra.mxu1 %v7913_v32  ;;  %7598 = vmatprep.mubr.msk.bf16.mxu1 %vm925_vm0, %v9896_v53 }
 0x2e6   :  { %7592 = vmatprep.subr.bf16.mxu1 %v7914_v37 }
 0x2e9   :  { %7593 = vmatpush3.bf16.msra.mxu1 %v7914_v37 }
 0x2ea   :  { %7594 = vmatprep.subr.bf16.mxu1 %v7915_v45 }
 0x2ed   :  { %7595 = vmatpush3.bf16.msra.mxu1 %v7915_v45 }
 0x2ee   :  { %7596 = vmatprep.subr.bf16.mxu1 %v7916_v35 }
 0x2f1   :  { %7597 = vmatpush3.bf16.msra.mxu1 %v7916_v35 }
 0x2f4   :  { %7599 = vmatmul.mubr.msk.bf16.vlgmr.msra.gmra.mxu1 %vm925_vm0, %v9900_v36 }
 0x394   :  { %v7576_v47 = vpop.f32.mrf.mxu1 }
 0x396   :  { %v1159_v44 = vpop.f32.mrf.mxu1 }
 0x397   :  { %v1160_v55 = vadd.f32 %v6738_v51, %v1159_v44 }
 0x398   :  { %v7577_v49 = vpop.f32.mrf.mxu1 }
 0x39a   :  { %v1162_v50 = vpop.f32.mrf.mxu1 }
 0x39b   :  { %v1163_v52 = vadd.f32 %v6738_v51, %v1162_v50  ;;  %v7917_v50 = vld [vmem:[%s11248_s5 + $0x78] sm:$0xff]  }
 0x39d   :  { %v1354_v41 = vpack.c.bf16 %v1163_v52, %v1160_v55 }
 0x39f   :  { %7606 = vmatprep.mubr.msk.bf16.mxu0 %vm1358_vm2, %v1354_v41  ;;  %v6770_v41 = vld [vmem:[%s11249_s6 + $0x4] ss:$0 sm:$0xff] }
 0x3a4   :  { %v7588_v48 = vpop.f32.mrf.mxu1 }
 0x3a5   :  { %v1258_v40 = vadd.f32 %v7588_v48, %v6754_v54 }
 0x3a6   :  { %v1249_v46 = vpop.f32.mrf.mxu1 }
 0x3a7   :  { %v1250_v37 = vadd.f32 %v6754_v54, %v1249_v46 }
 0x3a8   :  { %v7589_v42 = vpop.f32.mrf.mxu1 }
 0x3a9   :  { %v1261_v43 = vadd.f32 %v7589_v42, %v6754_v54  ;;  %v1168_v42 = vadd.f32 %v7576_v47, %v6738_v51  ;;  %v7919_v47 = vld [vmem:[%s11248_s5 + $0x68] sm:$0xff]  }
 0x3aa   :  { %v1252_v32 = vpop.f32.mrf.mxu1 }
 0x3ab   :  { %v1357_v45 = vpack.c.bf16 %v1261_v43, %v1258_v40  ;;  %v1253_v35 = vadd.f32 %v6754_v54, %v1252_v32  ;;  %v1171_v54 = vadd.f32 %v7577_v49, %v6738_v51  ;;  %v7920_v51 = vld [vmem:[%s11248_s5 + $0x60] sm:$0xff]  }
 0x3ad   :  { %v1356_v57 = vpack.c.bf16 %v1253_v35, %v1250_v37  ;;  %7878 = vmatprep.subr.msk.bf16.mxu0 %vm1358_vm2, %v1357_v45  ;;  %v1369_v44 = vsel %vm1358_vm2, %v1357_v45, 0  ;;  %v1355_v37 = vpack.c.bf16 %v1171_v54, %v1168_v42  ;;  %v9980_v54 = vld [vmem:[%s11245_s2 + $0x8] sm:$0xff] }
 0x3ae   :  { %7603 = vmatpush3.bf16.xpose.msra.mxu0 %v1369_v44 }
 0x3af   :  { %7879 = vmatprep.subr.msk.bf16.mxu0 %vm1358_vm2, %v1356_v57  ;;  %v1366_v52 = vsel %vm1358_vm2, %v1356_v57, 0  ;;  %v7918_v57 = vld [vmem:[%s11248_s5 + $0x70] sm:$0xff]  }
 0x3b4   :  { %v7600_v55 = vpop.f32.mrf.mxu1 }
 0x3b5   :  { %v1348_v40 = vadd.f32 %v7600_v55, %v6770_v41  ;;  %v9969_v55 = vld [vmem:[%s11245_s2] sm:$0xff] }
 0x3b6   :  { %v1339_v48 = vpop.f32.mrf.mxu1  ;;  %7605 = vmatpush3.bf16.xpose.msra.mxu0 %v1366_v52 }
 0x3b7   :  { %7630 = vmatprep.subr.bf16.mxu0 %v7917_v50  ;;  %v1340_v45 = vadd.f32 %v6770_v41, %v1339_v48 }
 0x3b8   :  { %v7601_v46 = vpop.f32.mrf.mxu1 }
 0x3b9   :  { %v1351_v43 = vadd.f32 %v7601_v46, %v6770_v41 }
 0x3ba   :  { %v1342_v32 = vpop.f32.mrf.mxu1 }
 0x3bb   :  { %v1469_v35 = vpack.c.bf16 %v1351_v43, %v1348_v40  ;;  %v1343_v44 = vadd.f32 %v6770_v41, %v1342_v32  ;;  %v9987_v40 = vld [vmem:[%s11245_s2 + $0x18] sm:$0x3f] }
 0x3bd   :  { %v1468_v59 = vpack.c.bf16 %v1343_v44, %v1340_v45  ;;  %7607 = vmatmul.mubr.msk.bf16.vlgmr.msra.gmra.mxu0 %vm1358_vm2, %v1355_v37  ;;  %7880 = vmatprep.subr.msk.bf16.mxu1 %vm1476_vm3, %v1469_v35  ;;  %v1478_v49 = vsel %vm1476_vm3, %v1469_v35, 0 }
 0x3be   :  { %7611 = vmatpush3.bf16.msra.mxu1 %v1478_v49  ;;  %7631 = vmatpush3.bf16.msra.mxu0 %v7917_v50  ;;  %v6806_v49 = vld [vmem:[%s11249_s6 + $0x3] ss:$0 sm:$0xff] }
 0x3bf   :  { %7638 = vmatprep.mubr.msk.bf16.mxu0 %vm925_vm0, %v9896_v53  ;;  %7612 = vmatprep.subr.bf16.mxu1 %v1468_v59 }
 0x3c0   :  { %7632 = vmatprep.subr.bf16.mxu0 %v7918_v57 }
 0x3c2   :  { %7613 = vmatpush3.bf16.msra.mxu1 %v1468_v59  ;;  %7633 = vmatpush3.bf16.msra.mxu0 %v7918_v57  ;;  %v9974_v59 = vld [vmem:[%s11245_s2 + $0x10] sm:$0xff] }
 0x3c3   :  { %7634 = vmatprep.subr.bf16.mxu0 %v7919_v47 }
 0x3c6   :  { %7635 = vmatpush3.bf16.msra.mxu0 %v7919_v47 }
 0x3c7   :  { %7636 = vmatprep.subr.bf16.mxu0 %v7920_v51 }
 0x3ca   :  { %7637 = vmatpush3.bf16.msra.mxu0 %v7920_v51 }
 0x3cd   :  { %7639 = vmatmul.mubr.msk.bf16.vlgmr.msra.gmra.mxu0 %vm925_vm0, %v9900_v36 }
 0x47d   :  { %v7608_v50 = vpop.f32.mrf.mxu0 }
 0x47e   :  { %v1414_v46 = vadd.f32 %v7608_v50, %v9974_v59 }
 0x47f   :  { %v1405_v52 = vpop.f32.mrf.mxu0 }
 0x480   :  { %v1406_v41 = vadd.f32 %v1405_v52, %v9969_v55  ;;  %v1427_v35 = vsel %vm1420_vm4, %v1414_v46, -inf }
 0x481   :  { %v7609_v48 = vpop.f32.mrf.mxu0 }
 0x482   :  { %v1421_v42 = vsel %vm1420_vm4, %v1406_v41, -inf  ;;  %v1417_v37 = vadd.f32 %v7609_v48, %v9987_v40 }
 0x483   :  { %v1408_v43 = vpop.f32.mrf.mxu0  ;;  %1422 = vmax.xlane.f32.xlu0 %v1421_v42 }
 0x484   :  { %v1409_v32 = vadd.f32 %v1408_v43, %v9980_v54  ;;  %v1431_v44 = vsel %vm1430_vm5, %v1417_v37, -inf }
 0x486   :  { %v1424_v45 = vsel %vm1420_vm4, %v1409_v32, -inf }
 0x487   :  { %1425 = vmax.xlane.f32.xlu1 %v1424_v45  ;;  %1428 = vmax.xlane.f32.xlu0 %v1427_v35 }
 0x48b   :  { %1432 = vmax.xlane.f32.xlu1 %v1431_v44 }
 0x48d   :  { %v7640_v57 = vpop.f32.mrf.mxu0 }
 0x48e   :  { %v1705_v50 = vadd.f32 %v7640_v57, %v6806_v49 }
 0x48f   :  { %v1696_v47 = vpop.f32.mrf.mxu0 }
 0x490   :  { %v1697_v42 = vadd.f32 %v6806_v49, %v1696_v47 }
 0x491   :  { %v7641_v51 = vpop.f32.mrf.mxu0 }
 0x492   :  { %v1708_v52 = vadd.f32 %v7641_v51, %v6806_v49 }
 0x493   :  { %v1699_v48 = vpop.f32.mrf.mxu0 }
 0x494   :  { %v1804_v43 = vpack.c.bf16 %v1708_v52, %v1705_v50  ;;  %v1700_v56 = vadd.f32 %v6806_v49, %v1699_v48 }
 0x496   :  { %v1803_v58 = vpack.c.bf16 %v1700_v56, %v1697_v42  ;;  %7881 = vmatprep.subr.msk.bf16.mxu0 %vm1358_vm2, %v1804_v43  ;;  %v1815_v45 = vsel %vm1358_vm2, %v1804_v43, 0 }
 0x497   :  { %7655 = vmatpush3.bf16.xpose.msra.mxu0 %v1815_v45 }
 0x498   :  { %7882 = vmatprep.subr.msk.bf16.mxu0 %vm1358_vm2, %v1803_v58  ;;  %v1812_v35 = vsel %vm1358_vm2, %v1803_v58, 0 }
 0x49f   :  { %7657 = vmatpush3.bf16.xpose.msra.mxu0 %v1812_v35 }
 0x50c   :  { %v1423_v44 = vpop.xlane.xlu0 %1422 }
 0x50d   :  { %v1434_v61 = vsub.f32 %v1406_v41, %v1423_v44 }
 0x50f   :  { %v1438_v63 = vmul.f32 1.442695, %v1434_v61 }
 0x510   :  { %v1426_v57 = vpop.xlane.xlu1 %1425  ;;  %v1429_v51 = vpop.xlane.xlu0 %1428 }
 0x511   :  { %7993 = vpow2.f32 %v1438_v63  ;;  %v1435_v47 = vsub.f32 %v1409_v32, %v1426_v57  ;;  %v1436_v50 = vsub.f32 %v1414_v46, %v1429_v51 }
 0x513   :  { %v1440_v49 = vmul.f32 1.442695, %v1435_v47  ;;  %v1442_v56 = vmul.f32 1.442695, %v1436_v50 }
 0x514   :  { %v1433_v52 = vpop.xlane.xlu1 %1432 }
 0x515   :  { %7995 = vpow2.f32 %v1440_v49  ;;  %v1437_v48 = vsub.f32 %v1417_v37, %v1433_v52  ;;  %v7921_v37 = vld [vmem:[%s11248_s5 + $0x38] sm:$0xff]  }
 0x516   :  { %7997 = vpow2.f32 %v1442_v56  ;;  %7618 = vmatprep.subr.bf16.mxu1 %v7921_v37 }
 0x517   :  { %v1444_v42 = vmul.f32 1.442695, %v1437_v48 }
 0x519   :  { %7999 = vpow2.f32 %v1444_v42 }
 0x51e   :  { %v7994_v43 = vpop.eup %7993 }
 0x51f   :  { %v1446_v58 = vsel %vm1420_vm4, %v7994_v43, 0.0 }
 0x520   :  { %1447 = vadd.xlane.f32.xlu0 %v1446_v58 }
 0x522   :  { %v7996_v45 = vpop.eup %7995 }
 0x523   :  { %v7998_v41 = vpop.eup %7997  ;;  %v1449_v61 = vsel %vm1420_vm4, %v7996_v45, 0.0 }
 0x524   :  { %1450 = vadd.xlane.f32.xlu1 %v1449_v61  ;;  %v1452_v63 = vsel %vm1420_vm4, %v7998_v41, 0.0 }
 0x525   :  { %1453 = vadd.xlane.f32.xlu0 %v1452_v63 }
 0x526   :  { %v8000_v46 = vpop.eup %7999 }
 0x527   :  { %v1455_v32 = vsel %vm1430_vm5, %v8000_v46, 0.0 }
 0x528   :  { %1456 = vadd.xlane.f32.xlu1 %v1455_v32  ;;  %v7922_v32 = vld [vmem:[%s11248_s5 + $0x30] sm:$0xff]  }
 0x5a9   :  { %v1448_v35 = vpop.xlane.xlu0 %1447 }
 0x5aa   :  { %8001 = vrcp.f32 %v1448_v35  ;;  %v7928_v35 = vld [vmem:[%s11248_s5 + $0xa0] sm:$0xff]  }
 0x5ad   :  { %v1451_v44 = vpop.xlane.xlu1 %1450 }
 0x5ae   :  { %8003 = vrcp.f32 %v1451_v44  ;;  %v1454_v57 = vpop.xlane.xlu0 %1453 }
 0x5af   :  { %8005 = vrcp.f32 %v1454_v57 }
 0x5b1   :  { %v1457_v51 = vpop.xlane.xlu1 %1456 }
 0x5b2   :  { %8007 = vrcp.f32 %v1457_v51 }
 0x5b7   :  { %v8002_v47 = vpop.eup %8001 }
 0x5b8   :  { %v1462_v49 = vmul.f32 %v8002_v47, %v7994_v43  ;;  %v7923_v43 = vld [vmem:[%s11248_s5 + $0x28] sm:$0xff]  }
 0x5bb   :  { %v8004_v50 = vpop.eup %8003 }
 0x5bc   :  { %v1463_v56 = vmul.f32 %v8004_v50, %v7996_v45  ;;  %v8006_v52 = vpop.eup %8005  ;;  %v7924_v45 = vld [vmem:[%s11248_s5 + $0x20] sm:$0xff]  }
 0x5bd   :  { %v1464_v58 = vmul.f32 %v8006_v52, %v7998_v41  ;;  %v7925_v41 = vld [vmem:[%s11248_s5 + $0xb8] sm:$0xff]  }
 0x5be   :  { %v1466_v48 = vpack.c.bf16 %v1463_v56, %v1462_v49 }
 0x5bf   :  { %v8008_v42 = vpop.eup %8007 }
 0x5c0   :  { %7614 = vmatprep.mubr.msk.bf16.mxu1 %vm1420_vm4, %v1466_v48  ;;  %v1465_v61 = vmul.f32 %v8008_v42, %v8000_v46  ;;  %v7926_v46 = vld [vmem:[%s11248_s5 + $0xb0] sm:$0xff]  }
 0x5c2   :  { %v1467_v63 = vpack.c.bf16 %v1465_v61, %v1464_v58 }
 0x5c4   :  { %7615 = vmatmul.mubr.msk.bf16.vlgmr.msra.gmra.mxu1 %vm1420_vm4, %v1467_v63 }
 0x5c5   :  { %7619 = vmatpush3.bf16.msra.mxu1 %v7921_v37  ;;  %7626 = vmatprep.mubr.msk.bf16.mxu1 %vm925_vm0, %v9896_v53  ;;  %v7927_v37 = vld [vmem:[%s11248_s5 + $0xa8] sm:$0xff]  }
 0x5c6   :  { %7620 = vmatprep.subr.bf16.mxu1 %v7922_v32 }
 0x5c9   :  { %7621 = vmatpush3.bf16.msra.mxu1 %v7922_v32 }
 0x5ca   :  { %7622 = vmatprep.subr.bf16.mxu1 %v7923_v43 }
 0x5cd   :  { %7623 = vmatpush3.bf16.msra.mxu1 %v7923_v43 }
 0x5ce   :  { %7624 = vmatprep.subr.bf16.mxu1 %v7924_v45 }
 0x5d1   :  { %7625 = vmatpush3.bf16.msra.mxu1 %v7924_v45 }
 0x5d2   :  { %7642 = vmatprep.subr.bf16.mxu1 %v7925_v41 }
 0x5d4   :  { %7627 = vmatmul.mubr.msk.bf16.vlgmr.msra.gmra.mxu1 %vm925_vm0, %v9900_v36 }
 0x5d5   :  { %7643 = vmatpush3.bf16.msra.mxu1 %v7925_v41  ;;  %7650 = vmatprep.mubr.msk.bf16.mxu1 %vm925_vm0, %v9896_v53  ;;  %v6822_v41 = vld [vmem:[%s11249_s6 + $0x5] ss:$0 sm:$0xff] }
 0x5d6   :  { %7644 = vmatprep.subr.bf16.mxu1 %v7926_v46 }
 0x5d9   :  { %7645 = vmatpush3.bf16.msra.mxu1 %v7926_v46 }
 0x5da   :  { %7646 = vmatprep.subr.bf16.mxu1 %v7927_v37 }
 0x5dd   :  { %7647 = vmatpush3.bf16.msra.mxu1 %v7927_v37 }
 0x5de   :  { %7648 = vmatprep.subr.bf16.mxu1 %v7928_v35 }
 0x5e1   :  { %7649 = vmatpush3.bf16.msra.mxu1 %v7928_v35 }
 0x5e4   :  { %7651 = vmatmul.mubr.msk.bf16.vlgmr.msra.gmra.mxu1 %vm925_vm0, %v9900_v36  ;;  %v6790_v36 = vld [vmem:[%s11249_s6 + $0x1] ss:$0 sm:$0xff] }
 0x684   :  { %v10039_v44 = vpop.f32.mrf.mxu1 }
 0x686   :  { %v10041_v53 = vpop.f32.mrf.mxu1 }
 0x688   :  { %v10043_v57 = vpop.f32.mrf.mxu1 }
 0x68a   :  { %v10047_v47 = vpop.f32.mrf.mxu1 }
 0x694   :  { %v7628_v49 = vpop.f32.mrf.mxu1 }
 0x695   :  { %v1615_v63 = vadd.f32 %v7628_v49, %v6790_v36 }
 0x696   :  { %v1606_v56 = vpop.f32.mrf.mxu1 }
 0x697   :  { %v1607_v58 = vadd.f32 %v6790_v36, %v1606_v56 }
 0x698   :  { %v7629_v52 = vpop.f32.mrf.mxu1 }
 0x699   :  { %v1618_v48 = vadd.f32 %v7629_v52, %v6790_v36 }
 0x69a   :  { %v1609_v42 = vpop.f32.mrf.mxu1 }
 0x69b   :  { %v1610_v61 = vadd.f32 %v6790_v36, %v1609_v42  ;;  %v1802_v43 = vpack.c.bf16 %v1618_v48, %v1615_v63 }
 0x69d   :  { %v1801_v32 = vpack.c.bf16 %v1610_v61, %v1607_v58 }
 0x69f   :  { %7658 = vmatprep.mubr.msk.bf16.mxu0 %vm1358_vm2, %v1801_v32 }
 0x6a0   :  { %7659 = vmatmul.mubr.msk.bf16.vlgmr.msra.gmra.mxu0 %vm1358_vm2, %v1802_v43 }
 0x6a4   :  { %v7652_v45 = vpop.f32.mrf.mxu1 }
 0x6a5   :  { %v1795_v35 = vadd.f32 %v7652_v45, %v6822_v41 }
 0x6a6   :  { %v1786_v46 = vpop.f32.mrf.mxu1 }
 0x6a7   :  { %v1787_v50 = vadd.f32 %v6822_v41, %v1786_v46 }
 0x6a8   :  { %v7653_v37 = vpop.f32.mrf.mxu1 }
 0x6a9   :  { %v1798_v51 = vadd.f32 %v7653_v37, %v6822_v41 }
 0x6aa   :  { %v1789_v52 = vpop.f32.mrf.mxu1 }
 0x6ab   :  { %v1913_v56 = vpack.c.bf16 %v1798_v51, %v1795_v35  ;;  %v1790_v42 = vadd.f32 %v6822_v41, %v1789_v52 }
 0x6ad   :  { %v1912_v49 = vpack.c.bf16 %v1790_v42, %v1787_v50  ;;  %7883 = vmatprep.subr.msk.bf16.mxu1 %vm1476_vm3, %v1913_v56  ;;  %v1921_v36 = vsel %vm1476_vm3, %v1913_v56, 0 }
 0x6ae   :  { %7663 = vmatpush3.bf16.msra.mxu1 %v1921_v36 }
 0x6af   :  { %7664 = vmatprep.subr.bf16.mxu1 %v1912_v49 }
 0x6b2   :  { %7665 = vmatpush3.bf16.msra.mxu1 %v1912_v49 }
 0x760   :  { %v7660_v48 = vpop.f32.mrf.mxu0 }
 0x761   :  { %v1860_v32 = vadd.f32 %v7660_v48, %v9974_v59 }
 0x762   :  { %v1851_v58 = vpop.f32.mrf.mxu0 }
 0x763   :  { %v1852_v61 = vadd.f32 %v1851_v58, %v9969_v55  ;;  %v1872_v46 = vsel %vm1420_vm4, %v1860_v32, -inf }
 0x764   :  { %v7661_v63 = vpop.f32.mrf.mxu0 }
 0x765   :  { %v1866_v43 = vsel %vm1420_vm4, %v1852_v61, -inf  ;;  %v1863_v50 = vadd.f32 %v7661_v63, %v9987_v40 }
 0x766   :  { %v1854_v45 = vpop.f32.mrf.mxu0  ;;  %1867 = vmax.xlane.f32.xlu0 %v1866_v43 }
 0x767   :  { %v1855_v51 = vadd.f32 %v1854_v45, %v9980_v54  ;;  %v1875_v37 = vsel %vm1430_vm5, %v1863_v50, -inf }
 0x769   :  { %v1869_v41 = vsel %vm1420_vm4, %v1855_v51, -inf }
 0x76a   :  { %1870 = vmax.xlane.f32.xlu1 %v1869_v41  ;;  %1873 = vmax.xlane.f32.xlu0 %v1872_v46 }
 0x76e   :  { %1876 = vmax.xlane.f32.xlu1 %v1875_v37 }
 0x7ef   :  { %v1868_v55 = vpop.xlane.xlu0 %1867 }
 0x7f0   :  { %v1878_v35 = vsub.f32 %v1852_v61, %v1868_v55 }
 0x7f2   :  { %v1882_v59 = vmul.f32 1.442695, %v1878_v35 }
 0x7f3   :  { %v1871_v52 = vpop.xlane.xlu1 %1870  ;;  %v1874_v56 = vpop.xlane.xlu0 %1873 }
 0x7f4   :  { %8009 = vpow2.f32 %v1882_v59  ;;  %v1879_v42 = vsub.f32 %v1855_v51, %v1871_v52  ;;  %v1880_v49 = vsub.f32 %v1860_v32, %v1874_v56 }
 0x7f6   :  { %v1884_v54 = vmul.f32 1.442695, %v1879_v42  ;;  %v1886_v36 = vmul.f32 1.442695, %v1880_v49 }
 0x7f7   :  { %v1877_v40 = vpop.xlane.xlu1 %1876 }
 0x7f8   :  { %8011 = vpow2.f32 %v1884_v54  ;;  %v1881_v48 = vsub.f32 %v1863_v50, %v1877_v40  ;;  %v7929_v50 = vld [vmem:[%s11250_s7 + $0x8] sm:$0xff]  }
 0x7f9   :  { %8013 = vpow2.f32 %v1886_v36  ;;  %7678 = vmatprep.subr.bf16.mxu1 %v7929_v50 }
 0x7fa   :  { %v1888_v58 = vmul.f32 1.442695, %v1881_v48 }
 0x7fc   :  { %8015 = vpow2.f32 %v1888_v58 }
 0x801   :  { %v8010_v63 = vpop.eup %8009 }
 0x802   :  { %v1890_v43 = vsel %vm1420_vm4, %v8010_v63, 0.0 }
 0x803   :  { %1891 = vadd.xlane.f32.xlu0 %v1890_v43 }
 0x805   :  { %v8012_v45 = vpop.eup %8011 }
 0x806   :  { %v8014_v61 = vpop.eup %8013  ;;  %v1893_v41 = vsel %vm1420_vm4, %v8012_v45, 0.0 }
 0x807   :  { %1894 = vadd.xlane.f32.xlu1 %v1893_v41  ;;  %v1896_v51 = vsel %vm1420_vm4, %v8014_v61, 0.0  ;;  %v7930_v41 = vld [vmem:[%s11250_s7] sm:$0xff]  }
 0x808   :  { %1897 = vadd.xlane.f32.xlu0 %v1896_v51  ;;  %v11773_v51 = vpack.c.bf16 %v10047_v47, %v10041_v53 }
 0x809   :  { %v8016_v32 = vpop.eup %8015 }
 0x80a   :  { %v1899_v46 = vsel %vm1430_vm5, %v8016_v32, 0.0 }
 0x80b   :  { %1900 = vadd.xlane.f32.xlu1 %v1899_v46 }
 0x88c   :  { %v1892_v37 = vpop.xlane.xlu0 %1891 }
 0x88d   :  { %8017 = vrcp.f32 %v1892_v37 }
 0x890   :  { %v1895_v55 = vpop.xlane.xlu1 %1894 }
 0x891   :  { %8019 = vrcp.f32 %v1895_v55  ;;  %v1898_v35 = vpop.xlane.xlu0 %1897 }
 0x892   :  { %8021 = vrcp.f32 %v1898_v35 }
 0x894   :  { %v1901_v59 = vpop.xlane.xlu1 %1900 }
 0x895   :  { %8023 = vrcp.f32 %v1901_v59 }
 0x89a   :  { %v8018_v52 = vpop.eup %8017 }
 0x89b   :  { %v1906_v42 = vmul.f32 %v8018_v52, %v8010_v63  ;;  %v11774_v63 = vpack.c.bf16 %v10043_v57, %v10039_v44 }
 0x89e   :  { %v8020_v56 = vpop.eup %8019 }
 0x89f   :  { %v1907_v49 = vmul.f32 %v8020_v56, %v8012_v45  ;;  %v8022_v54 = vpop.eup %8021  ;;  %v7931_v45 = vld [vmem:[%s11250_s7 + $0x18] sm:$0xff]  }
 0x8a0   :  { %v1908_v48 = vmul.f32 %v8022_v54, %v8014_v61  ;;  %7670 = vmatprep.subr.bf16.mxu0 %v7931_v45  ;;  %v7932_v61 = vld [vmem:[%s11250_s7 + $0x10] sm:$0xff]  }
 0x8a1   :  { %v1910_v36 = vpack.c.bf16 %v1907_v49, %v1906_v42  ;;  %7671 = vmatpush3.bf16.msra.mxu0 %v7931_v45 }
 0x8a2   :  { %v8024_v40 = vpop.eup %8023  ;;  %7672 = vmatprep.subr.bf16.mxu0 %v7932_v61 }
 0x8a3   :  { %7666 = vmatprep.mubr.msk.bf16.mxu1 %vm1420_vm4, %v1910_v36  ;;  %v1909_v58 = vmul.f32 %v8024_v40, %v8016_v32 }
 0x8a5   :  { %v1911_v43 = vpack.c.bf16 %v1909_v58, %v1908_v48  ;;  %7673 = vmatpush3.bf16.msra.mxu0 %v7932_v61  ;;  %v6841_v48 = vld [vmem:[%s11254_s11 + $0x4] ss:$0 sm:$0xff] }
 0x8a7   :  { %7667 = vmatmul.mubr.msk.bf16.vlgmr.msra.gmra.mxu1 %vm1420_vm4, %v1911_v43 }
 0x8a8   :  { %7679 = vmatpush3.bf16.msra.mxu1 %v7929_v50  ;;  %7682 = vmatprep.mubr.msk.bf16.mxu1 %vm1358_vm2, %v11773_v51 }
 0x8a9   :  { %7680 = vmatprep.subr.bf16.mxu1 %v7930_v41 }
 0x8ac   :  { %7681 = vmatpush3.bf16.msra.mxu1 %v7930_v41 }
 0x8af   :  { %7683 = vmatmul.mubr.msk.bf16.vlgmr.msra.gmra.mxu1 %vm1358_vm2, %v11774_v63 }
 0x967   :  { %v7668_v53 = vpop.f32.mrf.mxu1 }
 0x969   :  { %v1957_v47 = vpop.f32.mrf.mxu1 }
 0x96b   :  { %v7669_v32 = vpop.f32.mrf.mxu1 }
 0x96c   :  { %v1973_v44 = vpack.c.bf16 %v7669_v32, %v7668_v53 }
 0x96d   :  { %v1960_v46 = vpop.f32.mrf.mxu1 }
 0x96e   :  { %v1972_v50 = vpack.c.bf16 %v1960_v46, %v1957_v47 }
 0x96f   :  { %v7684_v57 = vpop.f32.mrf.mxu1 }
 0x970   :  { %7674 = vmatprep.mubr.msk.bf16.mxu0 %vm1358_vm2, %v1972_v50 }
 0x971   :  { %7675 = vmatmul.mubr.msk.bf16.vlgmr.msra.gmra.mxu0 %vm1358_vm2, %v1973_v44  ;;  %v2093_v37 = vpop.f32.mrf.mxu1 }
 0x973   :  { %v7685_v59 = vpop.f32.mrf.mxu1 }
 0x975   :  { %v2096_v40 = vpop.f32.mrf.mxu1 }
 0xa31   :  { %v7676_v55 = vpop.f32.mrf.mxu0 }
 0xa32   :  { %v2102_v35 = vadd.f32 %v7684_v57, %v7676_v55 }
 0xa33   :  { %v2026_v52 = vpop.f32.mrf.mxu0 }
 0xa34   :  { %v2094_v56 = vadd.f32 %v2093_v37, %v2026_v52  ;;  %v2110_v49 = vadd.f32 %v2102_v35, %v9856_v34 }
 0xa35   :  { %v7677_v42 = vpop.f32.mrf.mxu0 }
 0xa36   :  { %v2108_v54 = vadd.f32 %v2094_v56, %v9842_v33  ;;  %v2105_v36 = vadd.f32 %v7685_v59, %v7677_v42  ;;  %v10104_v51 = vadd.f32 %v6841_v48, %v2110_v49 }
 0xa37   :  { %v2029_v58 = vpop.f32.mrf.mxu0 }
 0xa38   :  { %v10102_v43 = vadd.f32 %v6841_v48, %v2108_v54  ;;  %v2097_v41 = vadd.f32 %v2096_v40, %v2029_v58  ;;  %v2111_v63 = vadd.f32 %v2105_v36, %v9863_v38  ;;  %v2128_v47 = vsel %vm925_vm0, %v10104_v51, 0.0 }
 0xa3a   :  { %v2109_v45 = vadd.f32 %v2097_v41, %v9849_v39  ;;  %v2122_v34 = vsel %vm925_vm0, %v10102_v43, 0.0  ;;  %v10112_v61 = vadd.f32 %v6841_v48, %v2111_v63  ;;  %v7933_v63 = vld [vmem:[%s11251_s8 + $0x18] sm:$0xff]  }
 0xa3b   :  { %2123 = vadd.xlane.f32.xlu0 %v2122_v34  ;;  %7686 = vmatprep.subr.bf16.mxu0 %v7933_v63  ;;  %v7935_v34 = vld [vmem:[%s11251_s8 + $0x8] sm:$0xff]  }
 0xa3c   :  { %v10110_v33 = vadd.f32 %v6841_v48, %v2109_v45  ;;  %v2131_v38 = vsel %vm1005_vm1, %v10112_v61, 0.0  ;;  %7687 = vmatpush3.bf16.msra.mxu0 %v7933_v63  ;;  %v7934_v45 = vld [vmem:[%s11251_s8 + $0x10] sm:$0xff]  }
 0xa3d   :  { %7688 = vmatprep.subr.bf16.mxu0 %v7934_v45 }
 0xa3e   :  { %v2125_v53 = vsel %vm925_vm0, %v10110_v33, 0.0 }
 0xa3f   :  { %2126 = vadd.xlane.f32.xlu1 %v2125_v53  ;;  %2129 = vadd.xlane.f32.xlu0 %v2128_v47  ;;  %v7936_v53 = vld [vmem:[%s11251_s8] sm:$0xff]  }
 0xa40   :  { %7689 = vmatpush3.bf16.msra.mxu0 %v7934_v45 }
 0xa41   :  { %7690 = vmatprep.subr.bf16.mxu0 %v7935_v34 }
 0xa43   :  { %2132 = vadd.xlane.f32.xlu1 %v2131_v38 }
 0xa44   :  { %7691 = vmatpush3.bf16.msra.mxu0 %v7935_v34  ;;  %v6843_v34 = vld [vmem:[%s11254_s11 + $0x3] ss:$0 sm:$0xff] }
 0xa45   :  { %7692 = vmatprep.subr.bf16.mxu0 %v7936_v53 }
 0xa48   :  { %7693 = vmatpush3.bf16.msra.mxu0 %v7936_v53 }
 0xac4   :  { %v2124_v39 = vpop.xlane.xlu0 %2123 }
 0xac5   :  { %v2134_v32 = vmul.f32 0.015625, %v2124_v39 }
 0xac7   :  { %v2138_v46 = vsub.f32 %v10102_v43, %v2134_v32 }
 0xac8   :  { %v2127_v50 = vpop.xlane.xlu1 %2126  ;;  %v2130_v44 = vpop.xlane.xlu0 %2129 }
 0xac9   :  { %v2135_v57 = vmul.f32 0.015625, %v2127_v50  ;;  %v2136_v37 = vmul.f32 0.015625, %v2130_v44  ;;  %v2142_v55 = vmul.f32 %v2138_v46, %v2138_v46 }
 0xacb   :  { %v2139_v35 = vsub.f32 %v10110_v33, %v2135_v57  ;;  %v2140_v59 = vsub.f32 %v10104_v51, %v2136_v37  ;;  %v2146_v52 = vsel %vm925_vm0, %v2142_v55, 0.0 }
 0xacc   :  { %v2133_v56 = vpop.xlane.xlu1 %2132  ;;  %2147 = vadd.xlane.f32.xlu0 %v2146_v52 }
 0xacd   :  { %v2137_v42 = vmul.f32 0.015625, %v2133_v56  ;;  %v2143_v49 = vmul.f32 %v2139_v35, %v2139_v35  ;;  %v2144_v54 = vmul.f32 %v2140_v59, %v2140_v59 }
 0xacf   :  { %v2141_v36 = vsub.f32 %v10112_v61, %v2137_v42  ;;  %v2149_v40 = vsel %vm925_vm0, %v2143_v49, 0.0  ;;  %v2152_v48 = vsel %vm925_vm0, %v2144_v54, 0.0 }
 0xad0   :  { %2150 = vadd.xlane.f32.xlu1 %v2149_v40  ;;  %2153 = vadd.xlane.f32.xlu0 %v2152_v48  ;;  %v6842_v40 = vld [vmem:[%s11254_s11 + $0x2] ss:$0 sm:$0xff] }
 0xad1   :  { %v2145_v58 = vmul.f32 %v2141_v36, %v2141_v36 }
 0xad3   :  { %v2155_v41 = vsel %vm1005_vm1, %v2145_v58, 0.0 }
 0xad4   :  { %2156 = vadd.xlane.f32.xlu1 %v2155_v41 }
 0xb55   :  { %v2148_v47 = vpop.xlane.xlu0 %2147 }
 0xb56   :  { %v2158_v38 = vmul.f32 0.015625, %v2148_v47 }
 0xb58   :  { %v2162_v39 = vadd.f32 1e-06, %v2158_v38 }
 0xb59   :  { %v2151_v32 = vpop.xlane.xlu1 %2150  ;;  %v2154_v50 = vpop.xlane.xlu0 %2153 }
 0xb5a   :  { %8025 = vrsqrt.f32 %v2162_v39  ;;  %v2159_v44 = vmul.f32 0.015625, %v2151_v32  ;;  %v2160_v57 = vmul.f32 0.015625, %v2154_v50 }
 0xb5c   :  { %v2163_v37 = vadd.f32 1e-06, %v2159_v44  ;;  %v2164_v55 = vadd.f32 1e-06, %v2160_v57 }
 0xb5d   :  { %v2157_v52 = vpop.xlane.xlu1 %2156 }
 0xb5e   :  { %8027 = vrsqrt.f32 %v2163_v37  ;;  %v2161_v56 = vmul.f32 0.015625, %v2157_v52  ;;  %v7940_v52 = vld [vmem:[%s11253_s10 + $0x20] sm:$0xff]  }
 0xb5f   :  { %8029 = vrsqrt.f32 %v2164_v55 }
 0xb60   :  { %v2165_v42 = vadd.f32 1e-06, %v2161_v56  ;;  %v7941_v56 = vld [vmem:[%s11253_s10 + $0x18] sm:$0xff]  }
 0xb62   :  { %8031 = vrsqrt.f32 %v2165_v42  ;;  %v7942_v42 = vld [vmem:[%s11253_s10 + $0x10] sm:$0xff]  }
 0xb67   :  { %v8026_v49 = vpop.eup %8025 }
 0xb68   :  { %v2170_v54 = vmul.f32 %v8026_v49, %v2138_v46  ;;  %v7943_v49 = vld [vmem:[%s11253_s10 + $0x8] sm:$0xff]  }
 0xb6a   :  { %v2180_v63 = vmul.f32 %v6842_v40, %v2170_v54  ;;  %v7944_v54 = vld [vmem:[%s11253_s10] sm:$0xff]  }
 0xb6b   :  { %v8028_v48 = vpop.eup %8027 }
 0xb6c   :  { %v8030_v58 = vpop.eup %8029  ;;  %v2171_v41 = vmul.f32 %v8028_v48, %v2139_v35  ;;  %v2190_v39 = vadd.f32 %v6843_v34, %v2180_v63  ;;  %v7937_v35 = vld [vmem:[%s11253_s10 + $0x38] sm:$0xff]  }
 0xb6d   :  { %v2172_v45 = vmul.f32 %v8030_v58, %v2140_v59  ;;  %7698 = vmatprep.subr.bf16.mxu1 %v7937_v35  ;;  %v7938_v59 = vld [vmem:[%s11253_s10 + $0x30] sm:$0xff]  }
 0xb6e   :  { %v2181_v53 = vmul.f32 %v6842_v40, %v2171_v41  ;;  %7699 = vmatpush3.bf16.msra.mxu1 %v7937_v35 }
 0xb6f   :  { %v8032_v47 = vpop.eup %8031  ;;  %v2182_v50 = vmul.f32 %v6842_v40, %v2172_v45  ;;  %7700 = vmatprep.subr.bf16.mxu1 %v7938_v59 }
 0xb70   :  { %v2173_v38 = vmul.f32 %v8032_v47, %v2141_v36  ;;  %v2191_v32 = vadd.f32 %v6843_v34, %v2181_v53  ;;  %v7939_v36 = vld [vmem:[%s11253_s10 + $0x28] sm:$0xff]  }
 0xb71   :  { %v2192_v57 = vadd.f32 %v6843_v34, %v2182_v50 }
 0xb72   :  { %v2202_v46 = vpack.c.bf16 %v2191_v32, %v2190_v39  ;;  %v2183_v44 = vmul.f32 %v6842_v40, %v2173_v38  ;;  %7701 = vmatpush3.bf16.msra.mxu1 %v7938_v59  ;;  %v6844_v40 = vld [vmem:[%s11252_s9] ss:$0 sm:$0xff] }
 0xb73   :  { %7702 = vmatprep.subr.bf16.mxu1 %v7939_v36 }
 0xb74   :  { %7694 = vmatprep.mubr.msk.bf16.mxu0 %vm925_vm0, %v2202_v46  ;;  %v2193_v37 = vadd.f32 %v6843_v34, %v2183_v44 }
 0xb76   :  { %v2203_v55 = vpack.c.bf16 %v2193_v37, %v2192_v57  ;;  %7703 = vmatpush3.bf16.msra.mxu1 %v7939_v36 }
 0xb77   :  { %7704 = vmatprep.subr.bf16.mxu1 %v7940_v52 }
 0xb78   :  { %7695 = vmatmul.mubr.msk.bf16.vlgmr.msra.gmra.mxu0 %vm925_vm0, %v2203_v55 }
 0xb7a   :  { %7705 = vmatpush3.bf16.msra.mxu1 %v7940_v52 }
 0xb7b   :  { %7706 = vmatprep.subr.bf16.mxu1 %v7941_v56 }
 0xb7e   :  { %7707 = vmatpush3.bf16.msra.mxu1 %v7941_v56 }
 0xb7f   :  { %7708 = vmatprep.subr.bf16.mxu1 %v7942_v42 }
 0xb82   :  { %7709 = vmatpush3.bf16.msra.mxu1 %v7942_v42 }
 0xb83   :  { %7710 = vmatprep.subr.bf16.mxu1 %v7943_v49 }
 0xb86   :  { %7711 = vmatpush3.bf16.msra.mxu1 %v7943_v49 }
 0xb87   :  { %7712 = vmatprep.subr.bf16.mxu1 %v7944_v54 }
 0xb8a   :  { %7713 = vmatpush3.bf16.msra.mxu1 %v7944_v54 }
 0xc38   :  { %v7696_v48 = vpop.f32.mrf.mxu0 }
 0xc39   :  { %v2284_v58 = vadd.f32 %v7696_v48, %v6844_v40 }
 0xc3a   :  { %v2275_v41 = vpop.f32.mrf.mxu0 }
 0xc3b   :  { %v2296_v63 = vmul.f32 0.044715, %v2284_v58  ;;  %v2276_v45 = vadd.f32 %v6844_v40, %v2275_v41 }
 0xc3c   :  { %v7697_v34 = vpop.f32.mrf.mxu0 }
 0xc3d   :  { %v2300_v53 = vmul.f32 %v2296_v63, %v2284_v58  ;;  %v2294_v47 = vmul.f32 0.044715, %v2276_v45  ;;  %v2287_v38 = vadd.f32 %v7697_v34, %v6844_v40 }
 0xc3e   :  { %v2278_v39 = vpop.f32.mrf.mxu0 }
 0xc3f   :  { %v2304_v32 = vmul.f32 %v2300_v53, %v2284_v58  ;;  %v2298_v50 = vmul.f32 %v2294_v47, %v2276_v45  ;;  %v2297_v46 = vmul.f32 0.044715, %v2287_v38  ;;  %v2279_v44 = vadd.f32 %v6844_v40, %v2278_v39 }
 0xc41   :  { %v2308_v57 = vadd.f32 %v2304_v32, %v2284_v58  ;;  %v2302_v37 = vmul.f32 %v2298_v50, %v2276_v45  ;;  %v2301_v55 = vmul.f32 %v2297_v46, %v2287_v38  ;;  %v2295_v35 = vmul.f32 0.044715, %v2279_v44 }
 0xc42   :  { %v2293_v50 = vmul.f32 0.5, %v2287_v38 }
 0xc43   :  { %v2305_v59 = vmul.f32 %v2301_v55, %v2287_v38  ;;  %v2299_v36 = vmul.f32 %v2295_v35, %v2279_v44  ;;  %v2306_v52 = vadd.f32 %v2302_v37, %v2276_v45  ;;  %v2312_v56 = vmul.f32 0.7978846, %v2308_v57 }
 0xc44   :  { %v2290_v37 = vmul.f32 0.5, %v2276_v45  ;;  %v2291_v57 = vmul.f32 0.5, %v2279_v44  ;;  %v2292_v35 = vmul.f32 0.5, %v2284_v58  ;;  %v6859_v45 = vld [vmem:[%s11254_s11 + $0x5] ss:$0 sm:$0xff] }
 0xc45   :  { %v2309_v42 = vadd.f32 %v2305_v59, %v2287_v38  ;;  %v2303_v49 = vmul.f32 %v2299_v36, %v2279_v44  ;;  %v2310_v54 = vmul.f32 0.7978846, %v2306_v52 }
 0xc47   :  { %v2313_v48 = vmul.f32 0.7978846, %v2309_v42  ;;  %v2307_v41 = vadd.f32 %v2303_v49, %v2279_v44  ;;  %8033 = vtanh.f32 %v2310_v54 }
 0xc48   :  { %8035 = vtanh.f32 %v2312_v56 }
 0xc49   :  { %8037 = vtanh.f32 %v2313_v48  ;;  %v2311_v63 = vmul.f32 0.7978846, %v2307_v41 }
 0xc4b   :  { %8039 = vtanh.f32 %v2311_v63 }
 0xc54   :  { %v8034_v34 = vpop.eup %8033 }
 0xc55   :  { %v8036_v40 = vpop.eup %8035  ;;  %v2318_v47 = vadd.f32 1.0, %v8034_v34 }
 0xc56   :  { %v8038_v53 = vpop.eup %8037  ;;  %v2320_v46 = vadd.f32 1.0, %v8036_v40 }
 0xc57   :  { %v2321_v39 = vadd.f32 1.0, %v8038_v53  ;;  %v2322_v36 = vmul.f32 %v2318_v47, %v2290_v37 }
 0xc58   :  { %v8040_v32 = vpop.eup %8039  ;;  %v2324_v42 = vmul.f32 %v2320_v46, %v2292_v35 }
 0xc59   :  { %v2319_v55 = vadd.f32 1.0, %v8040_v32  ;;  %v2325_v59 = vmul.f32 %v2321_v39, %v2293_v50 }
 0xc5b   :  { %v2323_v52 = vmul.f32 %v2319_v55, %v2291_v57  ;;  %v2343_v49 = vpack.c.bf16 %v2325_v59, %v2324_v42 }
 0xc5d   :  { %v2342_v56 = vpack.c.bf16 %v2323_v52, %v2322_v36 }
 0xc5f   :  { %7714 = vmatprep.mubr.bf16.mxu1 %v2342_v56 }
 0xc60   :  { %7715 = vmatmul.mubr.bf16.vlgmr.msra.gmra.mxu1 %v2343_v49 }
 0xd20   :  { %v7716_v54 = vpop.f32.mrf.mxu1 }
 0xd21   :  { %v2443_v41 = vadd.f32 %v7716_v54, %v10104_v51 }
 0xd22   :  { %v2426_v48 = vpop.f32.mrf.mxu1 }
 0xd23   :  { %v2441_v63 = vadd.f32 %v2426_v48, %v10102_v43  ;;  %v10182_v34 = vadd.f32 %v6859_v45, %v2443_v41 }
 0xd24   :  { %v7717_v38 = vpop.f32.mrf.mxu1 }
 0xd25   :  { %v10180_v58 = vadd.f32 %v6859_v45, %v2441_v63  ;;  %v2444_v40 = vadd.f32 %v7717_v38, %v10112_v61  ;;  %v2473_v39 = vsel %vm925_vm0, %v10182_v34, 0.0 }
 0xd26   :  { %v2429_v44 = vpop.f32.mrf.mxu1 }
 0xd27   :  { %v2442_v53 = vadd.f32 %v2429_v44, %v10110_v33  ;;  %v2467_v47 = vsel %vm925_vm0, %v10180_v58, 0.0  ;;  %v10190_v43 = vadd.f32 %v6859_v45, %v2444_v40  ;;  %v7945_v40 = vld [vmem:[%s11248_s5 + $0xd8] sm:$0xff]  }
 0xd28   :  { %2468 = vadd.xlane.f32.xlu0 %v2467_v47  ;;  %7718 = vmatprep.subr.bf16.mxu0 %v7945_v40  ;;  %v7947_v47 = vld [vmem:[%s11248_s5 + $0xd0] sm:$0xff]  }
 0xd29   :  { %v10188_v51 = vadd.f32 %v6859_v45, %v2442_v53  ;;  %v2476_v61 = vsel %vm1005_vm1, %v10190_v43, 0.0  ;;  %v7946_v53 = vld [vmem:[%s11248_s5 + $0x158] sm:$0xff]   ;;  %7719 = vmatpush3.bf16.msra.mxu0 %v7945_v40 }
 0xd2a   :  { %7742 = vmatprep.subr.bf16.mxu1 %v7946_v53  ;;  %7720 = vmatprep.subr.bf16.mxu0 %v7947_v47 }
 0xd2b   :  { %v2470_v32 = vsel %vm925_vm0, %v10188_v51, 0.0  ;;  %7743 = vmatpush3.bf16.msra.mxu1 %v7946_v53  ;;  %v6866_v53 = vld [vmem:[%s11254_s11 + $0x6] ss:$0 sm:$0xff] }
 0xd2c   :  { %2474 = vadd.xlane.f32.xlu0 %v2473_v39  ;;  %2471 = vadd.xlane.f32.xlu1 %v2470_v32  ;;  %v7948_v39 = vld [vmem:[%s11248_s5 + $0x150] sm:$0xff]   ;;  %v7949_v32 = vld [vmem:[%s11248_s5 + $0xc8] sm:$0xff]  }
 0xd2d   :  { %7721 = vmatpush3.bf16.msra.mxu0 %v7947_v47  ;;  %7744 = vmatprep.subr.bf16.mxu1 %v7948_v39 }
 0xd2e   :  { %7722 = vmatprep.subr.bf16.mxu0 %v7949_v32 }
 0xd2f   :  { %7745 = vmatpush3.bf16.msra.mxu1 %v7948_v39 }
 0xd30   :  { %2477 = vadd.xlane.f32.xlu1 %v2476_v61  ;;  %v7950_v61 = vld [vmem:[%s11248_s5 + $0x148] sm:$0xff]  }
 0xd31   :  { %7723 = vmatpush3.bf16.msra.mxu0 %v7949_v32  ;;  %7746 = vmatprep.subr.bf16.mxu1 %v7950_v61 }
 0xd33   :  { %7747 = vmatpush3.bf16.msra.mxu1 %v7950_v61 }
 0xdb1   :  { %v2469_v33 = vpop.xlane.xlu0 %2468 }
 0xdb2   :  { %v2479_v50 = vmul.f32 0.015625, %v2469_v33  ;;  %v7951_v33 = vld [vmem:[%s11248_s5 + $0xc0] sm:$0xff]  }
 0xdb3   :  { %7724 = vmatprep.subr.bf16.mxu0 %v7951_v33 }
 0xdb4   :  { %v10199_v46 = vsub.f32 %v10180_v58, %v2479_v50  ;;  %v7952_v50 = vld [vmem:[%s11248_s5 + $0x140] sm:$0xff]   ;;  %7725 = vmatpush3.bf16.msra.mxu0 %v7951_v33 }
 0xdb5   :  { %v2475_v37 = vpop.xlane.xlu0 %2474  ;;  %v2472_v57 = vpop.xlane.xlu1 %2471  ;;  %7748 = vmatprep.subr.bf16.mxu1 %v7952_v50 }
 0xdb6   :  { %v2481_v55 = vmul.f32 0.015625, %v2475_v37  ;;  %v2480_v35 = vmul.f32 0.015625, %v2472_v57  ;;  %v2487_v59 = vmul.f32 %v10199_v46, %v10199_v46  ;;  %v7953_v37 = vld [vmem:[%s11248_s5 + $0x118] sm:$0xff]   ;;  %7749 = vmatpush3.bf16.msra.mxu1 %v7952_v50  ;;  %v6867_v50 = vld [vmem:[%s11254_s11 + $0x7] ss:$0 sm:$0xff] }
 0xdb7   :  { %7730 = vmatprep.subr.bf16.mxu0 %v7953_v37 }
 0xdb8   :  { %v10204_v36 = vsub.f32 %v10182_v34, %v2481_v55  ;;  %v10207_v52 = vsub.f32 %v10188_v51, %v2480_v35  ;;  %v2491_v42 = vsel %vm925_vm0, %v2487_v59, 0.0 }
 0xdb9   :  { %2492 = vadd.xlane.f32.xlu0 %v2491_v42  ;;  %v2478_v56 = vpop.xlane.xlu1 %2477 }
 0xdba   :  { %v2482_v49 = vmul.f32 0.015625, %v2478_v56  ;;  %v2489_v54 = vmul.f32 %v10204_v36, %v10204_v36  ;;  %v2488_v48 = vmul.f32 %v10207_v52, %v10207_v52 }
 0xdbc   :  { %v2486_v41 = vsub.f32 %v10190_v43, %v2482_v49  ;;  %v2497_v63 = vsel %vm925_vm0, %v2489_v54, 0.0  ;;  %v2494_v45 = vsel %vm925_vm0, %v2488_v48, 0.0 }
 0xdbd   :  { %2498 = vadd.xlane.f32.xlu0 %v2497_v63  ;;  %2495 = vadd.xlane.f32.xlu1 %v2494_v45 }
 0xdbe   :  { %v2490_v38 = vmul.f32 %v2486_v41, %v2486_v41 }
 0xdc0   :  { %v2500_v44 = vsel %vm1005_vm1, %v2490_v38, 0.0 }
 0xdc1   :  { %2501 = vadd.xlane.f32.xlu1 %v2500_v44 }
 0xe42   :  { %v2493_v57 = vpop.xlane.xlu0 %2492 }
 0xe43   :  { %v2503_v55 = vmul.f32 0.015625, %v2493_v57 }
 0xe45   :  { %v2507_v35 = vadd.f32 1e-06, %v2503_v55 }
 0xe46   :  { %v2499_v59 = vpop.xlane.xlu0 %2498  ;;  %v2496_v42 = vpop.xlane.xlu1 %2495 }
 0xe47   :  { %8041 = vrsqrt.f32 %v2507_v35  ;;  %v2505_v56 = vmul.f32 0.015625, %v2499_v59  ;;  %v2504_v49 = vmul.f32 0.015625, %v2496_v42 }
 0xe49   :  { %v2509_v54 = vadd.f32 1e-06, %v2505_v56  ;;  %v2508_v48 = vadd.f32 1e-06, %v2504_v49 }
 0xe4a   :  { %v2502_v63 = vpop.xlane.xlu1 %2501 }
 0xe4b   :  { %8043 = vrsqrt.f32 %v2509_v54  ;;  %v2506_v45 = vmul.f32 0.015625, %v2502_v63  ;;  %v7956_v63 = vld [vmem:[%s11248_s5 + $0x100] sm:$0xff]  }
 0xe4c   :  { %8045 = vrsqrt.f32 %v2508_v48 }
 0xe4d   :  { %v2510_v38 = vadd.f32 1e-06, %v2506_v45 }
 0xe4f   :  { %8047 = vrsqrt.f32 %v2510_v38  ;;  %v6917_v38 = vld [vmem:[%s11249_s6 + $0xa] ss:$0 sm:$0xff] }
 0xe54   :  { %v8042_v44 = vpop.eup %8041 }
 0xe55   :  { %v2515_v40 = vmul.f32 %v8042_v44, %v10199_v46 }
 0xe57   :  { %v2525_v61 = vmul.f32 %v6866_v53, %v2515_v40 }
 0xe58   :  { %v8044_v47 = vpop.eup %8043 }
 0xe59   :  { %v8046_v39 = vpop.eup %8045  ;;  %v2517_v32 = vmul.f32 %v8044_v47, %v10204_v36  ;;  %v2535_v46 = vadd.f32 %v6867_v50, %v2525_v61 }
 0xe5a   :  { %v2516_v33 = vmul.f32 %v8046_v39, %v10207_v52  ;;  %v7954_v52 = vld [vmem:[%s11248_s5 + $0x110] sm:$0xff]   ;;  %v6885_v39 = vld [vmem:[%s11249_s6 + $0x6] ss:$0 sm:$0xff] }
 0xe5b   :  { %v2527_v35 = vmul.f32 %v6866_v53, %v2517_v32 }
 0xe5c   :  { %v8048_v57 = vpop.eup %8047  ;;  %v2526_v55 = vmul.f32 %v6866_v53, %v2516_v33 }
 0xe5d   :  { %v2518_v59 = vmul.f32 %v8048_v57, %v2486_v41  ;;  %v2537_v54 = vadd.f32 %v6867_v50, %v2527_v35  ;;  %v7955_v41 = vld [vmem:[%s11248_s5 + $0x108] sm:$0xff]  }
 0xe5e   :  { %v2536_v42 = vadd.f32 %v6867_v50, %v2526_v55 }
 0xe5f   :  { %v2528_v56 = vmul.f32 %v6866_v53, %v2518_v59 }
 0xe60   :  { %v10254_v49 = vpack.c.bf16 %v2536_v42, %v2535_v46 }
 0xe61   :  { %v2538_v48 = vadd.f32 %v6867_v50, %v2528_v56 }
 0xe62   :  { %7726 = vmatprep.mubr.msk.bf16.mxu0 %vm925_vm0, %v10254_v49  ;;  %7750 = vmatprep.mubr.msk.bf16.mxu1 %vm925_vm0, %v10254_v49 }
 0xe63   :  { %v10260_v36 = vpack.c.bf16 %v2538_v48, %v2537_v54 }
 0xe65   :  { %7727 = vmatmul.mubr.msk.bf16.vlgmr.msra.gmra.mxu0 %vm925_vm0, %v10260_v36  ;;  %7751 = vmatmul.mubr.msk.bf16.vlgmr.msra.gmra.mxu1 %vm925_vm0, %v10260_v36 }
 0xe66   :  { %7731 = vmatpush3.bf16.msra.mxu0 %v7953_v37  ;;  %7738 = vmatprep.mubr.msk.bf16.mxu0 %vm925_vm0, %v10254_v49 }
 0xe67   :  { %7732 = vmatprep.subr.bf16.mxu0 %v7954_v52 }
 0xe6a   :  { %7733 = vmatpush3.bf16.msra.mxu0 %v7954_v52  ;;  %v6901_v52 = vld [vmem:[%s11249_s6 + $0x8] ss:$0 sm:$0xff] }
 0xe6b   :  { %7734 = vmatprep.subr.bf16.mxu0 %v7955_v41 }
 0xe6e   :  { %7735 = vmatpush3.bf16.msra.mxu0 %v7955_v41 }
 0xe6f   :  { %7736 = vmatprep.subr.bf16.mxu0 %v7956_v63 }
 0xe72   :  { %7737 = vmatpush3.bf16.msra.mxu0 %v7956_v63 }
 0xe75   :  { %7739 = vmatmul.mubr.msk.bf16.vlgmr.msra.gmra.mxu0 %vm925_vm0, %v10260_v36 }
 0xf25   :  { %v7728_v37 = vpop.f32.mrf.mxu0  ;;  %v7752_v45 = vpop.f32.mrf.mxu1 }
 0xf26   :  { %v2820_v32 = vadd.f32 %v7752_v45, %v6917_v38 }
 0xf27   :  { %v2631_v44 = vpop.f32.mrf.mxu0  ;;  %v2811_v40 = vpop.f32.mrf.mxu1 }
 0xf28   :  { %v2632_v33 = vadd.f32 %v6885_v39, %v2631_v44  ;;  %v2812_v55 = vadd.f32 %v6917_v38, %v2811_v40 }
 0xf29   :  { %v7729_v53 = vpop.f32.mrf.mxu0  ;;  %v7753_v47 = vpop.f32.mrf.mxu1 }
 0xf2a   :  { %v2823_v61 = vadd.f32 %v7753_v47, %v6917_v38 }
 0xf2b   :  { %v2634_v50 = vpop.f32.mrf.mxu0  ;;  %v2814_v57 = vpop.f32.mrf.mxu1 }
 0xf2c   :  { %v2938_v35 = vpack.c.bf16 %v2823_v61, %v2820_v32  ;;  %v2635_v59 = vadd.f32 %v6885_v39, %v2634_v50  ;;  %v2815_v46 = vadd.f32 %v6917_v38, %v2814_v57  ;;  %v7957_v50 = vld [vmem:[%s11248_s5 + $0x138] sm:$0xff]  }
 0xf2e   :  { %v2826_v42 = vpack.c.bf16 %v2635_v59, %v2632_v33  ;;  %v2937_v56 = vpack.c.bf16 %v2815_v46, %v2812_v55  ;;  %7886 = vmatprep.subr.msk.bf16.mxu1 %vm1476_vm3, %v2938_v35  ;;  %v2946_v54 = vsel %vm1476_vm3, %v2938_v35, 0  ;;  %v2643_v55 = vadd.f32 %v7729_v53, %v6885_v39  ;;  %v7958_v46 = vld [vmem:[%s11248_s5 + $0x130] sm:$0xff]  }
 0xf2f   :  { %7763 = vmatpush3.bf16.msra.mxu1 %v2946_v54  ;;  %v2640_v35 = vadd.f32 %v7728_v37, %v6885_v39  ;;  %v7960_v37 = vld [vmem:[%s11248_s5 + $0x120] sm:$0xff]  }
 0xf30   :  { %7758 = vmatprep.mubr.msk.bf16.mxu0 %vm1358_vm2, %v2826_v42  ;;  %7764 = vmatprep.subr.bf16.mxu1 %v2937_v56  ;;  %v7959_v42 = vld [vmem:[%s11248_s5 + $0x128] sm:$0xff]  }
 0xf31   :  { %v2827_v59 = vpack.c.bf16 %v2643_v55, %v2640_v35 }
 0xf33   :  { %7765 = vmatpush3.bf16.msra.mxu1 %v2937_v56  ;;  %v10315_v56 = vld [vmem:[%s11245_s2] sm:$0xff] }
 0xf35   :  { %v7740_v48 = vpop.f32.mrf.mxu0 }
 0xf36   :  { %v2730_v45 = vadd.f32 %v7740_v48, %v6901_v52 }
 0xf37   :  { %v2721_v41 = vpop.f32.mrf.mxu0 }
 0xf38   :  { %v2722_v40 = vadd.f32 %v6901_v52, %v2721_v41 }
 0xf39   :  { %v7741_v63 = vpop.f32.mrf.mxu0 }
 0xf3a   :  { %v2733_v38 = vadd.f32 %v7741_v63, %v6901_v52 }
 0xf3b   :  { %v2724_v44 = vpop.f32.mrf.mxu0 }
 0xf3c   :  { %v2829_v47 = vpack.c.bf16 %v2733_v38, %v2730_v45  ;;  %v2725_v32 = vadd.f32 %v6901_v52, %v2724_v44  ;;  %v10321_v52 = vld [vmem:[%s11245_s2 + $0x10] sm:$0xff]  ;;  %v10328_v38 = vld [vmem:[%s11245_s2 + $0x8] sm:$0xff] }
 0xf3e   :  { %v2828_v61 = vpack.c.bf16 %v2725_v32, %v2722_v40  ;;  %7884 = vmatprep.subr.msk.bf16.mxu0 %vm1358_vm2, %v2829_v47  ;;  %v2840_v33 = vsel %vm1358_vm2, %v2829_v47, 0  ;;  %v10334_v40 = vld [vmem:[%s11245_s2 + $0x18] sm:$0x3f] }
 0xf3f   :  { %7755 = vmatpush3.bf16.xpose.msra.mxu0 %v2840_v33 }
 0xf40   :  { %7885 = vmatprep.subr.msk.bf16.mxu0 %vm1358_vm2, %v2828_v61  ;;  %v2837_v57 = vsel %vm1358_vm2, %v2828_v61, 0 }
 0xf47   :  { %7757 = vmatpush3.bf16.xpose.msra.mxu0 %v2837_v57  ;;  %v6953_v57 = vld [vmem:[%s11249_s6 + $0x9] ss:$0 sm:$0xff] }
 0xf48   :  { %7782 = vmatprep.subr.bf16.mxu0 %v7957_v50 }
 0xf4e   :  { %7759 = vmatmul.mubr.msk.bf16.vlgmr.msra.gmra.mxu0 %vm1358_vm2, %v2827_v59 }
 0xf4f   :  { %7783 = vmatpush3.bf16.msra.mxu0 %v7957_v50  ;;  %7790 = vmatprep.mubr.msk.bf16.mxu0 %vm925_vm0, %v10254_v49 }
 0xf50   :  { %7784 = vmatprep.subr.bf16.mxu0 %v7958_v46 }
 0xf53   :  { %7785 = vmatpush3.bf16.msra.mxu0 %v7958_v46 }
 0xf54   :  { %7786 = vmatprep.subr.bf16.mxu0 %v7959_v42 }
 0xf57   :  { %7787 = vmatpush3.bf16.msra.mxu0 %v7959_v42 }
 0xf58   :  { %7788 = vmatprep.subr.bf16.mxu0 %v7960_v37 }
 0xf5b   :  { %7789 = vmatpush3.bf16.msra.mxu0 %v7960_v37 }
 0xf5e   :  { %7791 = vmatmul.mubr.msk.bf16.vlgmr.msra.gmra.mxu0 %vm925_vm0, %v10260_v36 }
0x100e   :  { %v7760_v53 = vpop.f32.mrf.mxu0 }
0x100f   :  { %v2885_v41 = vadd.f32 %v10321_v52, %v7760_v53 }
0x1010   :  { %v2876_v39 = vpop.f32.mrf.mxu0 }
0x1011   :  { %v2877_v54 = vadd.f32 %v10315_v56, %v2876_v39  ;;  %v2897_v61 = vsel %vm1420_vm4, %v2885_v41, -inf }
0x1012   :  { %v7761_v48 = vpop.f32.mrf.mxu0 }
0x1013   :  { %v2891_v63 = vsel %vm1420_vm4, %v2877_v54, -inf  ;;  %v2888_v47 = vadd.f32 %v10334_v40, %v7761_v48 }
0x1014   :  { %v2879_v45 = vpop.f32.mrf.mxu0  ;;  %2892 = vmax.xlane.f32.xlu0 %v2891_v63 }
0x1015   :  { %v2880_v44 = vadd.f32 %v10328_v38, %v2879_v45  ;;  %v2900_v33 = vsel %vm1430_vm5, %v2888_v47, -inf }
0x1017   :  { %v2894_v32 = vsel %vm1420_vm4, %v2880_v44, -inf }
0x1018   :  { %2895 = vmax.xlane.f32.xlu1 %v2894_v32  ;;  %2898 = vmax.xlane.f32.xlu0 %v2897_v61 }
0x101c   :  { %2901 = vmax.xlane.f32.xlu1 %v2900_v33 }
0x101e   :  { %v7792_v50 = vpop.f32.mrf.mxu0 }
0x101f   :  { %v3173_v59 = vadd.f32 %v7792_v50, %v6953_v57 }
0x1020   :  { %v3164_v55 = vpop.f32.mrf.mxu0 }
0x1021   :  { %v3165_v37 = vadd.f32 %v6953_v57, %v3164_v55 }
0x1022   :  { %v7793_v35 = vpop.f32.mrf.mxu0 }
0x1023   :  { %v3176_v46 = vadd.f32 %v7793_v35, %v6953_v57 }
0x1024   :  { %v3167_v42 = vpop.f32.mrf.mxu0 }
0x1025   :  { %v3272_v53 = vpack.c.bf16 %v3176_v46, %v3173_v59  ;;  %v3168_v39 = vadd.f32 %v6953_v57, %v3167_v42 }
0x1027   :  { %v3271_v48 = vpack.c.bf16 %v3168_v39, %v3165_v37  ;;  %7887 = vmatprep.subr.msk.bf16.mxu0 %vm1358_vm2, %v3272_v53  ;;  %v3283_v63 = vsel %vm1358_vm2, %v3272_v53, 0 }
0x1028   :  { %7807 = vmatpush3.bf16.xpose.msra.mxu0 %v3283_v63 }
0x1029   :  { %7888 = vmatprep.subr.msk.bf16.mxu0 %vm1358_vm2, %v3271_v48  ;;  %v3280_v45 = vsel %vm1358_vm2, %v3271_v48, 0 }
0x1030   :  { %7809 = vmatpush3.bf16.xpose.msra.mxu0 %v3280_v45 }
0x109d   :  { %v2893_v32 = vpop.xlane.xlu0 %2892 }
0x109e   :  { %v2903_v61 = vsub.f32 %v2877_v54, %v2893_v32 }
0x10a0   :  { %v2907_v33 = vmul.f32 1.442695, %v2903_v61 }
0x10a1   :  { %v2896_v50 = vpop.xlane.xlu1 %2895  ;;  %v2899_v35 = vpop.xlane.xlu0 %2898 }
0x10a2   :  { %8049 = vpow2.f32 %v2907_v33  ;;  %v2904_v55 = vsub.f32 %v2880_v44, %v2896_v50  ;;  %v2905_v59 = vsub.f32 %v2885_v41, %v2899_v35 }
0x10a4   :  { %v2909_v57 = vmul.f32 1.442695, %v2904_v55  ;;  %v2911_v46 = vmul.f32 1.442695, %v2905_v59 }
0x10a5   :  { %v2902_v42 = vpop.xlane.xlu1 %2901 }
0x10a6   :  { %8051 = vpow2.f32 %v2909_v57  ;;  %v2906_v37 = vsub.f32 %v2888_v47, %v2902_v42  ;;  %v7961_v47 = vld [vmem:[%s11248_s5 + $0xf8] sm:$0xff]  }
0x10a7   :  { %8053 = vpow2.f32 %v2911_v46  ;;  %7770 = vmatprep.subr.bf16.mxu1 %v7961_v47 }
0x10a8   :  { %v2913_v53 = vmul.f32 1.442695, %v2906_v37 }
0x10aa   :  { %8055 = vpow2.f32 %v2913_v53 }
0x10af   :  { %v8050_v39 = vpop.eup %8049 }
0x10b0   :  { %v2915_v48 = vsel %vm1420_vm4, %v8050_v39, 0.0 }
0x10b1   :  { %2916 = vadd.xlane.f32.xlu0 %v2915_v48 }
0x10b3   :  { %v8052_v63 = vpop.eup %8051 }
0x10b4   :  { %v8054_v54 = vpop.eup %8053  ;;  %v2918_v45 = vsel %vm1420_vm4, %v8052_v63, 0.0 }
0x10b5   :  { %2919 = vadd.xlane.f32.xlu1 %v2918_v45  ;;  %v2921_v44 = vsel %vm1420_vm4, %v8054_v54, 0.0 }
0x10b6   :  { %2922 = vadd.xlane.f32.xlu0 %v2921_v44 }
0x10b7   :  { %v8056_v41 = vpop.eup %8055 }
0x10b8   :  { %v2924_v32 = vsel %vm1430_vm5, %v8056_v41, 0.0 }
0x10b9   :  { %2925 = vadd.xlane.f32.xlu1 %v2924_v32  ;;  %v7962_v32 = vld [vmem:[%s11248_s5 + $0xf0] sm:$0xff]  }
0x113a   :  { %v2917_v61 = vpop.xlane.xlu0 %2916 }
0x113b   :  { %8057 = vrcp.f32 %v2917_v61  ;;  %v7968_v61 = vld [vmem:[%s11248_s5 + $0x160] sm:$0xff]  }
0x113e   :  { %v2920_v33 = vpop.xlane.xlu1 %2919 }
0x113f   :  { %8059 = vrcp.f32 %v2920_v33  ;;  %v2923_v50 = vpop.xlane.xlu0 %2922 }
0x1140   :  { %8061 = vrcp.f32 %v2923_v50 }
0x1142   :  { %v2926_v35 = vpop.xlane.xlu1 %2925 }
0x1143   :  { %8063 = vrcp.f32 %v2926_v35 }
0x1148   :  { %v8058_v55 = vpop.eup %8057 }
0x1149   :  { %v2931_v57 = vmul.f32 %v8058_v55, %v8050_v39  ;;  %v7963_v39 = vld [vmem:[%s11248_s5 + $0xe8] sm:$0xff]  }
0x114c   :  { %v8060_v59 = vpop.eup %8059 }
0x114d   :  { %v2932_v46 = vmul.f32 %v8060_v59, %v8052_v63  ;;  %v8062_v42 = vpop.eup %8061  ;;  %v7964_v63 = vld [vmem:[%s11248_s5 + $0xe0] sm:$0xff]  }
0x114e   :  { %v2933_v48 = vmul.f32 %v8062_v42, %v8054_v54  ;;  %v7965_v54 = vld [vmem:[%s11248_s5 + $0x178] sm:$0xff]  }
0x114f   :  { %v2935_v37 = vpack.c.bf16 %v2932_v46, %v2931_v57 }
0x1150   :  { %v8064_v53 = vpop.eup %8063 }
0x1151   :  { %7766 = vmatprep.mubr.msk.bf16.mxu1 %vm1420_vm4, %v2935_v37  ;;  %v2934_v45 = vmul.f32 %v8064_v53, %v8056_v41  ;;  %v7966_v41 = vld [vmem:[%s11248_s5 + $0x170] sm:$0xff]  }
0x1153   :  { %v2936_v44 = vpack.c.bf16 %v2934_v45, %v2933_v48 }
0x1155   :  { %7767 = vmatmul.mubr.msk.bf16.vlgmr.msra.gmra.mxu1 %vm1420_vm4, %v2936_v44 }
0x1156   :  { %7771 = vmatpush3.bf16.msra.mxu1 %v7961_v47  ;;  %7778 = vmatprep.mubr.msk.bf16.mxu1 %vm925_vm0, %v10254_v49  ;;  %v7967_v47 = vld [vmem:[%s11248_s5 + $0x168] sm:$0xff]  }
0x1157   :  { %7772 = vmatprep.subr.bf16.mxu1 %v7962_v32 }
0x115a   :  { %7773 = vmatpush3.bf16.msra.mxu1 %v7962_v32 }
0x115b   :  { %7774 = vmatprep.subr.bf16.mxu1 %v7963_v39 }
0x115e   :  { %7775 = vmatpush3.bf16.msra.mxu1 %v7963_v39 }
0x115f   :  { %7776 = vmatprep.subr.bf16.mxu1 %v7964_v63 }
0x1162   :  { %7777 = vmatpush3.bf16.msra.mxu1 %v7964_v63 }
0x1163   :  { %7794 = vmatprep.subr.bf16.mxu1 %v7965_v54 }
0x1165   :  { %7779 = vmatmul.mubr.msk.bf16.vlgmr.msra.gmra.mxu1 %vm925_vm0, %v10260_v36 }
0x1166   :  { %7795 = vmatpush3.bf16.msra.mxu1 %v7965_v54  ;;  %7802 = vmatprep.mubr.msk.bf16.mxu1 %vm925_vm0, %v10254_v49  ;;  %v6969_v54 = vld [vmem:[%s11249_s6 + $0xb] ss:$0 sm:$0xff] }
0x1167   :  { %7796 = vmatprep.subr.bf16.mxu1 %v7966_v41 }
0x116a   :  { %7797 = vmatpush3.bf16.msra.mxu1 %v7966_v41 }
0x116b   :  { %7798 = vmatprep.subr.bf16.mxu1 %v7967_v47 }
0x116e   :  { %7799 = vmatpush3.bf16.msra.mxu1 %v7967_v47 }
0x116f   :  { %7800 = vmatprep.subr.bf16.mxu1 %v7968_v61 }
0x1172   :  { %7801 = vmatpush3.bf16.msra.mxu1 %v7968_v61 }
0x1175   :  { %7803 = vmatmul.mubr.msk.bf16.vlgmr.msra.gmra.mxu1 %vm925_vm0, %v10260_v36  ;;  %v6937_v36 = vld [vmem:[%s11249_s6 + $0x7] ss:$0 sm:$0xff] }
0x1215   :  { %v10385_v33 = vpop.f32.mrf.mxu1 }
0x1217   :  { %v10387_v49 = vpop.f32.mrf.mxu1 }
0x1219   :  { %v10389_v50 = vpop.f32.mrf.mxu1 }
0x121b   :  { %v10393_v55 = vpop.f32.mrf.mxu1 }
0x1225   :  { %v7780_v57 = vpop.f32.mrf.mxu1 }
0x1226   :  { %v3083_v44 = vadd.f32 %v7780_v57, %v6937_v36 }
0x1227   :  { %v3074_v46 = vpop.f32.mrf.mxu1 }
0x1228   :  { %v3075_v48 = vadd.f32 %v6937_v36, %v3074_v46 }
0x1229   :  { %v7781_v42 = vpop.f32.mrf.mxu1 }
0x122a   :  { %v3086_v37 = vadd.f32 %v7781_v42, %v6937_v36 }
0x122b   :  { %v3077_v53 = vpop.f32.mrf.mxu1 }
0x122c   :  { %v3078_v45 = vadd.f32 %v6937_v36, %v3077_v53  ;;  %v3270_v39 = vpack.c.bf16 %v3086_v37, %v3083_v44 }
0x122e   :  { %v3269_v32 = vpack.c.bf16 %v3078_v45, %v3075_v48 }
0x1230   :  { %7810 = vmatprep.mubr.msk.bf16.mxu0 %vm1358_vm2, %v3269_v32 }
0x1231   :  { %7811 = vmatmul.mubr.msk.bf16.vlgmr.msra.gmra.mxu0 %vm1358_vm2, %v3270_v39 }
0x1235   :  { %v7804_v63 = vpop.f32.mrf.mxu1 }
0x1236   :  { %v3263_v61 = vadd.f32 %v7804_v63, %v6969_v54 }
0x1237   :  { %v3254_v41 = vpop.f32.mrf.mxu1 }
0x1238   :  { %v3255_v59 = vadd.f32 %v6969_v54, %v3254_v41 }
0x1239   :  { %v7805_v47 = vpop.f32.mrf.mxu1 }
0x123a   :  { %v3266_v35 = vadd.f32 %v7805_v47, %v6969_v54 }
0x123b   :  { %v3257_v42 = vpop.f32.mrf.mxu1 }
0x123c   :  { %v3381_v46 = vpack.c.bf16 %v3266_v35, %v3263_v61  ;;  %v3258_v53 = vadd.f32 %v6969_v54, %v3257_v42 }
0x123e   :  { %v3380_v57 = vpack.c.bf16 %v3258_v53, %v3255_v59  ;;  %7889 = vmatprep.subr.msk.bf16.mxu1 %vm1476_vm3, %v3381_v46  ;;  %v3389_v36 = vsel %vm1476_vm3, %v3381_v46, 0 }
0x123f   :  { %7815 = vmatpush3.bf16.msra.mxu1 %v3389_v36 }
0x1240   :  { %7816 = vmatprep.subr.bf16.mxu1 %v3380_v57 }
0x1243   :  { %7817 = vmatpush3.bf16.msra.mxu1 %v3380_v57 }
0x12f1   :  { %v7812_v37 = vpop.f32.mrf.mxu0 }
0x12f2   :  { %v3328_v32 = vadd.f32 %v10321_v52, %v7812_v37 }
0x12f3   :  { %v3319_v48 = vpop.f32.mrf.mxu0 }
0x12f4   :  { %v3320_v45 = vadd.f32 %v10315_v56, %v3319_v48  ;;  %v3340_v41 = vsel %vm1420_vm4, %v3328_v32, -inf }
0x12f5   :  { %v7813_v44 = vpop.f32.mrf.mxu0 }
0x12f6   :  { %v3334_v39 = vsel %vm1420_vm4, %v3320_v45, -inf  ;;  %v3331_v59 = vadd.f32 %v10334_v40, %v7813_v44 }
0x12f7   :  { %v3322_v63 = vpop.f32.mrf.mxu0  ;;  %3335 = vmax.xlane.f32.xlu0 %v3334_v39 }
0x12f8   :  { %v3323_v35 = vadd.f32 %v10328_v38, %v3322_v63  ;;  %v3343_v47 = vsel %vm1430_vm5, %v3331_v59, -inf }
0x12fa   :  { %v3337_v54 = vsel %vm1420_vm4, %v3323_v35, -inf }
0x12fb   :  { %3338 = vmax.xlane.f32.xlu1 %v3337_v54  ;;  %3341 = vmax.xlane.f32.xlu0 %v3340_v41 }
0x12ff   :  { %3344 = vmax.xlane.f32.xlu1 %v3343_v47 }
0x1380   :  { %v3336_v56 = vpop.xlane.xlu0 %3335 }
0x1381   :  { %v3346_v61 = vsub.f32 %v3320_v45, %v3336_v56 }
0x1383   :  { %v3350_v52 = vmul.f32 1.442695, %v3346_v61 }
0x1384   :  { %v3339_v42 = vpop.xlane.xlu1 %3338  ;;  %v3342_v46 = vpop.xlane.xlu0 %3341 }
0x1385   :  { %8065 = vpow2.f32 %v3350_v52  ;;  %v3347_v53 = vsub.f32 %v3323_v35, %v3339_v42  ;;  %v3348_v57 = vsub.f32 %v3328_v32, %v3342_v46 }
0x1387   :  { %v3352_v38 = vmul.f32 1.442695, %v3347_v53  ;;  %v3354_v36 = vmul.f32 1.442695, %v3348_v57 }
0x1388   :  { %v3345_v40 = vpop.xlane.xlu1 %3344 }
0x1389   :  { %8067 = vpow2.f32 %v3352_v38  ;;  %v3349_v37 = vsub.f32 %v3331_v59, %v3345_v40  ;;  %v7969_v59 = vld [vmem:[%s11250_s7 + $0x28] sm:$0xff]  }
0x138a   :  { %8069 = vpow2.f32 %v3354_v36  ;;  %7830 = vmatprep.subr.bf16.mxu1 %v7969_v59 }
0x138b   :  { %v3356_v48 = vmul.f32 1.442695, %v3349_v37 }
0x138d   :  { %8071 = vpow2.f32 %v3356_v48 }
0x1392   :  { %v8066_v44 = vpop.eup %8065 }
0x1393   :  { %v3358_v39 = vsel %vm1420_vm4, %v8066_v44, 0.0 }
0x1394   :  { %3359 = vadd.xlane.f32.xlu0 %v3358_v39 }
0x1396   :  { %v8068_v63 = vpop.eup %8067 }
0x1397   :  { %v8070_v45 = vpop.eup %8069  ;;  %v3361_v54 = vsel %vm1420_vm4, %v8068_v63, 0.0 }
0x1398   :  { %3362 = vadd.xlane.f32.xlu1 %v3361_v54  ;;  %v3364_v35 = vsel %vm1420_vm4, %v8070_v45, 0.0  ;;  %v7970_v54 = vld [vmem:[%s11250_s7 + $0x20] sm:$0xff]  }
0x1399   :  { %3365 = vadd.xlane.f32.xlu0 %v3364_v35  ;;  %v11775_v35 = vpack.c.bf16 %v10393_v55, %v10387_v49 }
0x139a   :  { %v8072_v32 = vpop.eup %8071 }
0x139b   :  { %v3367_v41 = vsel %vm1430_vm5, %v8072_v32, 0.0 }
0x139c   :  { %3368 = vadd.xlane.f32.xlu1 %v3367_v41 }
0x141d   :  { %v3360_v47 = vpop.xlane.xlu0 %3359 }
0x141e   :  { %8073 = vrcp.f32 %v3360_v47 }
0x1421   :  { %v3363_v56 = vpop.xlane.xlu1 %3362 }
0x1422   :  { %8075 = vrcp.f32 %v3363_v56  ;;  %v3366_v61 = vpop.xlane.xlu0 %3365 }
0x1423   :  { %8077 = vrcp.f32 %v3366_v61 }
0x1425   :  { %v3369_v52 = vpop.xlane.xlu1 %3368 }
0x1426   :  { %8079 = vrcp.f32 %v3369_v52 }
0x142b   :  { %v8074_v42 = vpop.eup %8073 }
0x142c   :  { %v3374_v53 = vmul.f32 %v8074_v42, %v8066_v44  ;;  %v11776_v44 = vpack.c.bf16 %v10389_v50, %v10385_v33 }
0x142f   :  { %v8076_v46 = vpop.eup %8075 }
0x1430   :  { %v3375_v57 = vmul.f32 %v8076_v46, %v8068_v63  ;;  %v8078_v38 = vpop.eup %8077  ;;  %v7971_v63 = vld [vmem:[%s11250_s7 + $0x38] sm:$0xff]  }
0x1431   :  { %v3376_v37 = vmul.f32 %v8078_v38, %v8070_v45  ;;  %7822 = vmatprep.subr.bf16.mxu0 %v7971_v63  ;;  %v7972_v45 = vld [vmem:[%s11250_s7 + $0x30] sm:$0xff]  }
0x1432   :  { %v3378_v36 = vpack.c.bf16 %v3375_v57, %v3374_v53  ;;  %7823 = vmatpush3.bf16.msra.mxu0 %v7971_v63 }
0x1433   :  { %v8080_v40 = vpop.eup %8079  ;;  %7824 = vmatprep.subr.bf16.mxu0 %v7972_v45 }
0x1434   :  { %7818 = vmatprep.mubr.msk.bf16.mxu1 %vm1420_vm4, %v3378_v36  ;;  %v3377_v48 = vmul.f32 %v8080_v40, %v8072_v32 }
0x1436   :  { %v3379_v39 = vpack.c.bf16 %v3377_v48, %v3376_v37  ;;  %7825 = vmatpush3.bf16.msra.mxu0 %v7972_v45  ;;  %v6988_v37 = vld [vmem:[%s11254_s11 + $0xa] ss:$0 sm:$0xff] }
0x1438   :  { %7819 = vmatmul.mubr.msk.bf16.vlgmr.msra.gmra.mxu1 %vm1420_vm4, %v3379_v39 }
0x1439   :  { %7831 = vmatpush3.bf16.msra.mxu1 %v7969_v59  ;;  %7834 = vmatprep.mubr.msk.bf16.mxu1 %vm1358_vm2, %v11775_v35 }
0x143a   :  { %7832 = vmatprep.subr.bf16.mxu1 %v7970_v54 }
0x143d   :  { %7833 = vmatpush3.bf16.msra.mxu1 %v7970_v54 }
0x1440   :  { %7835 = vmatmul.mubr.msk.bf16.vlgmr.msra.gmra.mxu1 %vm1358_vm2, %v11776_v44 }
0x14f8   :  { %v7820_v49 = vpop.f32.mrf.mxu1 }
0x14fa   :  { %v3425_v55 = vpop.f32.mrf.mxu1 }
0x14fc   :  { %v7821_v32 = vpop.f32.mrf.mxu1 }
0x14fd   :  { %v3441_v33 = vpack.c.bf16 %v7821_v32, %v7820_v49 }
0x14fe   :  { %v3428_v41 = vpop.f32.mrf.mxu1 }
0x14ff   :  { %v3440_v59 = vpack.c.bf16 %v3428_v41, %v3425_v55 }
0x1500   :  { %v7836_v50 = vpop.f32.mrf.mxu1 }
0x1501   :  { %7826 = vmatprep.mubr.msk.bf16.mxu0 %vm1358_vm2, %v3440_v59 }
0x1502   :  { %7827 = vmatmul.mubr.msk.bf16.vlgmr.msra.gmra.mxu0 %vm1358_vm2, %v3441_v33  ;;  %v3561_v47 = vpop.f32.mrf.mxu1 }
0x1504   :  { %v7837_v52 = vpop.f32.mrf.mxu1 }
0x1506   :  { %v3564_v40 = vpop.f32.mrf.mxu1 }
0x15c2   :  { %v7828_v56 = vpop.f32.mrf.mxu0 }
0x15c3   :  { %v3570_v61 = vadd.f32 %v7836_v50, %v7828_v56 }
0x15c4   :  { %v3494_v42 = vpop.f32.mrf.mxu0 }
0x15c5   :  { %v3562_v46 = vadd.f32 %v3561_v47, %v3494_v42  ;;  %v3578_v57 = vadd.f32 %v3570_v61, %v10182_v34 }
0x15c6   :  { %v7829_v53 = vpop.f32.mrf.mxu0 }
0x15c7   :  { %v3576_v38 = vadd.f32 %v3562_v46, %v10180_v58  ;;  %v3573_v36 = vadd.f32 %v7837_v52, %v7829_v53  ;;  %v10450_v35 = vadd.f32 %v6988_v37, %v3578_v57 }
0x15c8   :  { %v3497_v48 = vpop.f32.mrf.mxu0 }
0x15c9   :  { %v10448_v39 = vadd.f32 %v6988_v37, %v3576_v38  ;;  %v3565_v54 = vadd.f32 %v3564_v40, %v3497_v48  ;;  %v3579_v44 = vadd.f32 %v3573_v36, %v10190_v43  ;;  %v3596_v55 = vsel %vm925_vm0, %v10450_v35, 0.0 }
0x15cb   :  { %v3577_v63 = vadd.f32 %v3565_v54, %v10188_v51  ;;  %v3590_v34 = vsel %vm925_vm0, %v10448_v39, 0.0  ;;  %v10458_v45 = vadd.f32 %v6988_v37, %v3579_v44  ;;  %v7973_v44 = vld [vmem:[%s11251_s8 + $0x38] sm:$0xff]  }
0x15cc   :  { %3591 = vadd.xlane.f32.xlu0 %v3590_v34  ;;  %7838 = vmatprep.subr.bf16.mxu0 %v7973_v44  ;;  %v7975_v34 = vld [vmem:[%s11251_s8 + $0x28] sm:$0xff]  }
0x15cd   :  { %v10456_v58 = vadd.f32 %v6988_v37, %v3577_v63  ;;  %v3599_v43 = vsel %vm1005_vm1, %v10458_v45, 0.0  ;;  %7839 = vmatpush3.bf16.msra.mxu0 %v7973_v44  ;;  %v7974_v63 = vld [vmem:[%s11251_s8 + $0x30] sm:$0xff]  }
0x15ce   :  { %7840 = vmatprep.subr.bf16.mxu0 %v7974_v63 }
0x15cf   :  { %v3593_v49 = vsel %vm925_vm0, %v10456_v58, 0.0 }
0x15d0   :  { %3594 = vadd.xlane.f32.xlu1 %v3593_v49  ;;  %3597 = vadd.xlane.f32.xlu0 %v3596_v55  ;;  %v7976_v49 = vld [vmem:[%s11251_s8 + $0x20] sm:$0xff]  }
0x15d1   :  { %7841 = vmatpush3.bf16.msra.mxu0 %v7974_v63 }
0x15d2   :  { %7842 = vmatprep.subr.bf16.mxu0 %v7975_v34 }
0x15d4   :  { %3600 = vadd.xlane.f32.xlu1 %v3599_v43 }
0x15d5   :  { %7843 = vmatpush3.bf16.msra.mxu0 %v7975_v34  ;;  %v6990_v34 = vld [vmem:[%s11254_s11 + $0x9] ss:$0 sm:$0xff] }
0x15d6   :  { %7844 = vmatprep.subr.bf16.mxu0 %v7976_v49 }
0x15d9   :  { %7845 = vmatpush3.bf16.msra.mxu0 %v7976_v49 }
0x1655   :  { %v3592_v51 = vpop.xlane.xlu0 %3591 }
0x1656   :  { %v3602_v32 = vmul.f32 0.015625, %v3592_v51 }
0x1658   :  { %v3606_v41 = vsub.f32 %v10448_v39, %v3602_v32 }
0x1659   :  { %v3595_v59 = vpop.xlane.xlu1 %3594  ;;  %v3598_v33 = vpop.xlane.xlu0 %3597 }
0x165a   :  { %v3603_v50 = vmul.f32 0.015625, %v3595_v59  ;;  %v3604_v47 = vmul.f32 0.015625, %v3598_v33  ;;  %v3610_v56 = vmul.f32 %v3606_v41, %v3606_v41 }
0x165c   :  { %v3607_v61 = vsub.f32 %v10456_v58, %v3603_v50  ;;  %v3608_v52 = vsub.f32 %v10450_v35, %v3604_v47  ;;  %v3614_v42 = vsel %vm925_vm0, %v3610_v56, 0.0 }
0x165d   :  { %v3601_v46 = vpop.xlane.xlu1 %3600  ;;  %3615 = vadd.xlane.f32.xlu0 %v3614_v42 }
0x165e   :  { %v3605_v53 = vmul.f32 0.015625, %v3601_v46  ;;  %v3611_v57 = vmul.f32 %v3607_v61, %v3607_v61  ;;  %v3612_v38 = vmul.f32 %v3608_v52, %v3608_v52 }
0x1660   :  { %v3609_v36 = vsub.f32 %v10458_v45, %v3605_v53  ;;  %v3617_v40 = vsel %vm925_vm0, %v3611_v57, 0.0  ;;  %v3620_v37 = vsel %vm925_vm0, %v3612_v38, 0.0 }
0x1661   :  { %3618 = vadd.xlane.f32.xlu1 %v3617_v40  ;;  %3621 = vadd.xlane.f32.xlu0 %v3620_v37  ;;  %v6989_v40 = vld [vmem:[%s11254_s11 + $0x8] ss:$0 sm:$0xff] }
0x1662   :  { %v3613_v48 = vmul.f32 %v3609_v36, %v3609_v36 }
0x1664   :  { %v3623_v54 = vsel %vm1005_vm1, %v3613_v48, 0.0 }
0x1665   :  { %3624 = vadd.xlane.f32.xlu1 %v3623_v54 }
0x16e6   :  { %v3616_v55 = vpop.xlane.xlu0 %3615 }
0x16e7   :  { %v3626_v43 = vmul.f32 0.015625, %v3616_v55 }
0x16e9   :  { %v3630_v51 = vadd.f32 1e-06, %v3626_v43 }
0x16ea   :  { %v3619_v32 = vpop.xlane.xlu1 %3618  ;;  %v3622_v59 = vpop.xlane.xlu0 %3621 }
0x16eb   :  { %8081 = vrsqrt.f32 %v3630_v51  ;;  %v3627_v33 = vmul.f32 0.015625, %v3619_v32  ;;  %v3628_v50 = vmul.f32 0.015625, %v3622_v59 }
0x16ed   :  { %v3631_v47 = vadd.f32 1e-06, %v3627_v33  ;;  %v3632_v56 = vadd.f32 1e-06, %v3628_v50 }
0x16ee   :  { %v3625_v42 = vpop.xlane.xlu1 %3624 }
0x16ef   :  { %8083 = vrsqrt.f32 %v3631_v47  ;;  %v3629_v46 = vmul.f32 0.015625, %v3625_v42  ;;  %v7980_v42 = vld [vmem:[%s11253_s10 + $0x60] sm:$0xff]  }
0x16f0   :  { %8085 = vrsqrt.f32 %v3632_v56 }
0x16f1   :  { %v3633_v53 = vadd.f32 1e-06, %v3629_v46  ;;  %v7981_v46 = vld [vmem:[%s11253_s10 + $0x58] sm:$0xff]  }
0x16f3   :  { %8087 = vrsqrt.f32 %v3633_v53  ;;  %v7982_v53 = vld [vmem:[%s11253_s10 + $0x50] sm:$0xff]  }
0x16f8   :  { %v8082_v57 = vpop.eup %8081 }
0x16f9   :  { %v3638_v38 = vmul.f32 %v8082_v57, %v3606_v41  ;;  %v7983_v57 = vld [vmem:[%s11253_s10 + $0x48] sm:$0xff]  }
0x16fb   :  { %v3648_v44 = vmul.f32 %v6989_v40, %v3638_v38  ;;  %v7984_v38 = vld [vmem:[%s11253_s10 + $0x40] sm:$0xff]  }
0x16fc   :  { %v8084_v37 = vpop.eup %8083 }
0x16fd   :  { %v8086_v48 = vpop.eup %8085  ;;  %v3639_v54 = vmul.f32 %v8084_v37, %v3607_v61  ;;  %v3658_v51 = vadd.f32 %v6990_v34, %v3648_v44  ;;  %v7977_v61 = vld [vmem:[%s11253_s10 + $0x78] sm:$0xff]  }
0x16fe   :  { %v3640_v63 = vmul.f32 %v8086_v48, %v3608_v52  ;;  %7850 = vmatprep.subr.bf16.mxu1 %v7977_v61  ;;  %v7978_v52 = vld [vmem:[%s11253_s10 + $0x70] sm:$0xff]  }
0x16ff   :  { %v3649_v49 = vmul.f32 %v6989_v40, %v3639_v54  ;;  %7851 = vmatpush3.bf16.msra.mxu1 %v7977_v61 }
0x1700   :  { %v8088_v55 = vpop.eup %8087  ;;  %v3650_v59 = vmul.f32 %v6989_v40, %v3640_v63  ;;  %7852 = vmatprep.subr.bf16.mxu1 %v7978_v52 }
0x1701   :  { %v3641_v43 = vmul.f32 %v8088_v55, %v3609_v36  ;;  %v3659_v32 = vadd.f32 %v6990_v34, %v3649_v49  ;;  %v7979_v36 = vld [vmem:[%s11253_s10 + $0x68] sm:$0xff]  }
0x1702   :  { %v3660_v50 = vadd.f32 %v6990_v34, %v3650_v59 }
0x1703   :  { %v3671_v41 = vpack.c.bf16 %v3659_v32, %v3658_v51  ;;  %v3651_v33 = vmul.f32 %v6989_v40, %v3641_v43  ;;  %7853 = vmatpush3.bf16.msra.mxu1 %v7978_v52  ;;  %v7000_v40 = vld [vmem:[%s11252_s9 + $0x1] ss:$0 sm:$0xff] }
0x1704   :  { %7854 = vmatprep.subr.bf16.mxu1 %v7979_v36 }
0x1705   :  { %7846 = vmatprep.mubr.msk.bf16.mxu0 %vm925_vm0, %v3671_v41  ;;  %v3661_v47 = vadd.f32 %v6990_v34, %v3651_v33 }
0x1707   :  { %v3672_v56 = vpack.c.bf16 %v3661_v47, %v3660_v50  ;;  %7855 = vmatpush3.bf16.msra.mxu1 %v7979_v36 }
0x1708   :  { %7856 = vmatprep.subr.bf16.mxu1 %v7980_v42 }
0x1709   :  { %7847 = vmatmul.mubr.msk.bf16.vlgmr.msra.gmra.mxu0 %vm925_vm0, %v3672_v56 }
0x170b   :  { %7857 = vmatpush3.bf16.msra.mxu1 %v7980_v42 }
0x170c   :  { %7858 = vmatprep.subr.bf16.mxu1 %v7981_v46 }
0x170f   :  { %7859 = vmatpush3.bf16.msra.mxu1 %v7981_v46 }
0x1710   :  { %7860 = vmatprep.subr.bf16.mxu1 %v7982_v53 }
0x1713   :  { %7861 = vmatpush3.bf16.msra.mxu1 %v7982_v53 }
0x1714   :  { %7862 = vmatprep.subr.bf16.mxu1 %v7983_v57 }
0x1717   :  { %7863 = vmatpush3.bf16.msra.mxu1 %v7983_v57 }
0x1718   :  { %7864 = vmatprep.subr.bf16.mxu1 %v7984_v38 }
0x171b   :  { %7865 = vmatpush3.bf16.msra.mxu1 %v7984_v38 }
0x17c9   :  { %v7848_v37 = vpop.f32.mrf.mxu0 }
0x17ca   :  { %v3754_v48 = vadd.f32 %v7848_v37, %v7000_v40 }
0x17cb   :  { %v3745_v54 = vpop.f32.mrf.mxu0 }
0x17cc   :  { %v3766_v44 = vmul.f32 0.044715, %v3754_v48  ;;  %v3746_v63 = vadd.f32 %v7000_v40, %v3745_v54 }
0x17cd   :  { %v7849_v34 = vpop.f32.mrf.mxu0 }
0x17ce   :  { %v3770_v49 = vmul.f32 %v3766_v44, %v3754_v48  ;;  %v3764_v55 = vmul.f32 0.044715, %v3746_v63  ;;  %v3757_v43 = vadd.f32 %v7849_v34, %v7000_v40 }
0x17cf   :  { %v3748_v51 = vpop.f32.mrf.mxu0 }
0x17d0   :  { %v3774_v32 = vmul.f32 %v3770_v49, %v3754_v48  ;;  %v3768_v59 = vmul.f32 %v3764_v55, %v3746_v63  ;;  %v3767_v41 = vmul.f32 0.044715, %v3757_v43  ;;  %v3749_v33 = vadd.f32 %v7000_v40, %v3748_v51 }
0x17d2   :  { %v3778_v50 = vadd.f32 %v3774_v32, %v3754_v48  ;;  %v3772_v47 = vmul.f32 %v3768_v59, %v3746_v63  ;;  %v3771_v56 = vmul.f32 %v3767_v41, %v3757_v43  ;;  %v3765_v61 = vmul.f32 0.044715, %v3749_v33 }
0x17d3   :  { %v3763_v59 = vmul.f32 0.5, %v3757_v43 }
0x17d4   :  { %v3775_v52 = vmul.f32 %v3771_v56, %v3757_v43  ;;  %v3769_v36 = vmul.f32 %v3765_v61, %v3749_v33  ;;  %v3776_v42 = vadd.f32 %v3772_v47, %v3746_v63  ;;  %v3782_v46 = vmul.f32 0.7978846, %v3778_v50 }
0x17d5   :  { %v3760_v47 = vmul.f32 0.5, %v3746_v63  ;;  %v3761_v50 = vmul.f32 0.5, %v3749_v33  ;;  %v3762_v61 = vmul.f32 0.5, %v3754_v48 }
0x17d6   :  { %v3779_v53 = vadd.f32 %v3775_v52, %v3757_v43  ;;  %v3773_v57 = vmul.f32 %v3769_v36, %v3749_v33  ;;  %v3780_v38 = vmul.f32 0.7978846, %v3776_v42 }
0x17d8   :  { %v3783_v37 = vmul.f32 0.7978846, %v3779_v53  ;;  %v3777_v54 = vadd.f32 %v3773_v57, %v3749_v33  ;;  %8089 = vtanh.f32 %v3780_v38  ;;  %v10524_v38 = vld [vmem:[%s11254_s11 + $0xe] ss:$0 sm:$0xff]  ;;  %v7031_v33 = vld [vmem:[%s11254_s11 + $0xb] ss:$0 sm:$0xff] }
0x17d9   :  { %8091 = vtanh.f32 %v3782_v46 }
0x17da   :  { %8093 = vtanh.f32 %v3783_v37  ;;  %v3781_v44 = vmul.f32 0.7978846, %v3777_v54  ;;  %v8142_v37 = vmov 0.0  }
0x17db   :  { %7870 = vmatprep.subr.bf16.mxu0 %v8142_v37  ;;  %7874 = vmatprep.mubr.msk.bf16.mxu0 %vm8143_vm6, %v8142_v37 }
0x17dc   :  { %8095 = vtanh.f32 %v3781_v44 }
0x17e5   :  { %v8090_v34 = vpop.eup %8089 }
0x17e6   :  { %v8092_v40 = vpop.eup %8091  ;;  %v3788_v55 = vadd.f32 1.0, %v8090_v34 }
0x17e7   :  { %v8094_v49 = vpop.eup %8093  ;;  %v3790_v41 = vadd.f32 1.0, %v8092_v40 }
0x17e8   :  { %v3791_v51 = vadd.f32 1.0, %v8094_v49  ;;  %v3792_v36 = vmul.f32 %v3788_v55, %v3760_v47 }
0x17e9   :  { %v8096_v32 = vpop.eup %8095  ;;  %v3794_v53 = vmul.f32 %v3790_v41, %v3762_v61 }
0x17ea   :  { %v3789_v56 = vadd.f32 1.0, %v8096_v32  ;;  %v3795_v52 = vmul.f32 %v3791_v51, %v3763_v59 }
0x17ec   :  { %v3793_v42 = vmul.f32 %v3789_v56, %v3761_v50  ;;  %v3814_v57 = vpack.c.bf16 %v3795_v52, %v3794_v53 }
0x17ee   :  { %v3813_v46 = vpack.c.bf16 %v3793_v42, %v3792_v36 }
0x17f0   :  { %7866 = vmatprep.mubr.bf16.mxu1 %v3813_v46 }
0x17f1   :  { %7867 = vmatmul.mubr.bf16.vlgmr.msra.gmra.mxu1 %v3814_v57 }
0x18b1   :  { %v7868_v63 = vpop.f32.mrf.mxu1 }
0x18b2   :  { %v3914_v48 = vadd.f32 %v7868_v63, %v10450_v35  ;;  %v3932_v35 = vld [vmem:[%s11246_s3] sm:$0x3f] }
0x18b3   :  { %v3897_v43 = vpop.f32.mrf.mxu1 }
0x18b4   :  { %v3924_v40 = vadd.f32 %v7031_v33, %v3914_v48  ;;  %v3912_v51 = vadd.f32 %v3897_v43, %v10448_v39 }
0x18b5   :  { %v7869_v54 = vpop.f32.mrf.mxu1 }
0x18b6   :  { %v3915_v44 = vadd.f32 %v7869_v54, %v10458_v45  ;;  %v3922_v47 = vadd.f32 %v7031_v33, %v3912_v51  ;;  %v3933_v45 = vpack.c.bf16 %v3932_v35, %v3932_v35  ;;  %v7062_v51 = vcombine.low %v8352_v24, %v8372_v28 }
0x18b7   :  { %v3900_v34 = vpop.f32.mrf.mxu1 }
0x18b8   :  { %v3925_v49 = vadd.f32 %v7031_v33, %v3915_v44  ;;  %v3913_v55 = vadd.f32 %v3900_v34, %v10456_v58  ;;  %v7037_v44 = vld [vmem:[%s11254_s11 + $0xd] ss:$0 sm:$0xff] }
0x18ba   :  { %v3935_v32 = vpack.c.bf16 %v3925_v49, %v3924_v40  ;;  %v3923_v59 = vadd.f32 %v7031_v33, %v3913_v55  ;;  %v7036_v33 = vld [vmem:[%s11254_s11 + $0xc] ss:$0 sm:$0xff]  ;;  %v7063_v49 = vcombine.high %v8352_v24, %v8372_v28  ;;  %v7065_v55 = vcombine.high %v8357_v25, %v8377_v29 }
0x18bc   :  { %v3940_v41 = vsel %vm1476_vm3, %v3935_v32, 0  ;;  %v3934_v50 = vpack.c.bf16 %v3923_v59, %v3922_v47  ;;  %v7064_v32 = vcombine.low %v8357_v25, %v8377_v29  ;;  %v11777_v59 = vmov 0  }
0x18bd   :  { %7871 = vmatpush3.bf16.msra.mxu0 %v3940_v41 }
0x18be   :  { %7872 = vmatprep.subr.bf16.mxu0 %v8142_v37 }
0x18c1   :  { %7873 = vmatpush3.bf16.msra.mxu0 %v3934_v50 }
0x18c4   :  { %7875 = vmatmul.mubr.msk.bf16.vlgmr.msra.gmra.mxu0 %vm1420_vm4, %v3933_v45 }
0x18c5   :  { %4283 = vmatprep.mubr.bf16.mxu0 %v11777_v59 }
0x1984   :  { %v3976_v56 = vpop.f32.mrf.mxu0 }
0x1985   :  { %v3982_v58 = vsel %vm1005_vm1, %v3976_v56, 0.0 }
0x1986   :  { %3983 = vadd.xlane.f32.xlu0 %v3982_v58  ;;  %v7876_v39 = vpop.f32.mrf.mxu0 }
0x1988   :  { %v3979_v61 = vpop.f32.mrf.mxu0 }
0x198a   :  { %v7877_v52 = vpop.f32.mrf.mxu0 }
0x1a0f   :  { %v3984_v36 = vpop.xlane.xlu0 %3983 }
0x1a10   :  { %v3985_v42 = vmul.f32 0.015625, %v3984_v36 }
0x1a12   :  { %v3986_v53 = vsub.f32 %v3976_v56, %v3985_v42 }
0x1a14   :  { %v3987_v46 = vmul.f32 %v3986_v53, %v3986_v53 }
0x1a16   :  { %v3988_v57 = vsel %vm1005_vm1, %v3987_v46, 0.0 }
0x1a17   :  { %3989 = vadd.xlane.f32.xlu1 %v3988_v57 }
0x1aa0   :  { %v3990_v37 = vpop.xlane.xlu1 %3989 }
0x1aa1   :  { %v3991_v63 = vmul.f32 0.015625, %v3990_v37 }
0x1aa3   :  { %v3992_v43 = vadd.f32 1e-06, %v3991_v63 }
0x1aa5   :  { %8097 = vrsqrt.f32 %v3992_v43 }
0x1ab2   :  { %v8098_v48 = vpop.eup %8097 }
0x1ab3   :  { %v3994_v54 = vmul.f32 %v8098_v48, %v3986_v53 }
0x1ab5   :  { %v4001_v34 = vmul.f32 %v7036_v33, %v3994_v54 }
0x1ab7   :  { %v4008_v40 = vadd.f32 %v7037_v44, %v4001_v34 }
0x1ab8   :  { %8135 = dma.done.wait [#allocation5], 4096 }
0x1ab9   :  { %8136 = vsyncadd [#allocation5], 4294963200  ;;  %v7055_v41 = vcombine.high %v8312_v16, %v8332_v20  ;;  %v7057_v47 = vcombine.high %v8317_v17, %v8337_v21  ;;  %4324 = vmatprep.mubr.bf16.mxu1 %v11777_v59  ;;  %4259 = vmatprep.subr.bf16.mxu0 %v7063_v49  ;;  %v7054_v24 = vcombine.low %v8312_v16, %v8332_v20 }
0x1aba   :  { %4300 = vmatprep.subr.bf16.mxu1 %v7065_v55  ;;  %4260 = vmatpush1.bf16.msra.mxu0 %v7062_v51  ;;  %v7056_v25 = vcombine.low %v8317_v17, %v8337_v21  ;;  %v7047_v28 = vcombine.high %v8272_v8, %v8292_v12  ;;  %v7049_v29 = vcombine.high %v8277_v9, %v8297_v13 }
0x1abb   :  { %4301 = vmatpush1.bf16.msra.mxu1 %v7064_v32  ;;  %4261 = vmatprep.subr.bf16.mxu0 %v7055_v41  ;;  %v7046_v35 = vcombine.low %v8272_v8, %v8292_v12  ;;  %v7048_v50 = vcombine.low %v8277_v9, %v8297_v13  ;;  %v7039_v16 = vcombine.high %v8232_v0, %v8252_v4 }
0x1abc   :  { %4302 = vmatprep.subr.bf16.mxu1 %v7057_v47  ;;  %v7041_v17 = vcombine.high %v8237_v1, %v8257_v5  ;;  %v7038_v20 = vcombine.low %v8232_v0, %v8252_v4  ;;  %v7040_v21 = vcombine.low %v8237_v1, %v8257_v5  ;;  %v7067_v8 = vcombine.high %v8362_v26, %v8382_v30 }
0x1abd   :  { %v7069_v9 = vcombine.high %v8367_v27, %v8387_v31  ;;  %v4045_v12 = vpack.c.bf16 %v4008_v40, %v4008_v40  ;;  %v7066_v13 = vcombine.low %v8362_v26, %v8382_v30  ;;  %v7068_v0 = vcombine.low %v8367_v27, %v8387_v31 }
0x1abe   :  { %4262 = vmatpush1.bf16.msra.mxu0 %v7054_v24  ;;  %v7059_v1 = vcombine.high %v8322_v18, %v8342_v22  ;;  %v7061_v4 = vcombine.high %v8327_v19, %v8347_v23  ;;  %v7058_v5 = vcombine.low %v8322_v18, %v8342_v22  ;;  %v7060_v26 = vcombine.low %v8327_v19, %v8347_v23 }
0x1abf   :  { %4303 = vmatpush1.bf16.msra.mxu1 %v7056_v25  ;;  %4263 = vmatprep.subr.bf16.mxu0 %v7047_v28  ;;  %v7051_v27 = vcombine.high %v8282_v10, %v8302_v14  ;;  %v7053_v30 = vcombine.high %v8287_v11, %v8307_v15  ;;  %v7050_v18 = vcombine.low %v8282_v10, %v8302_v14  ;;  %v4048_v10 = vlaneseq }
0x1ac0   :  { %4304 = vmatprep.subr.bf16.mxu1 %v7049_v29  ;;  %v7052_v19 = vcombine.low %v8287_v11, %v8307_v15  ;;  %v7043_v22 = vcombine.high %v8242_v2, %v8262_v6  ;;  %v7045_v23 = vcombine.high %v8247_v3, %v8267_v7  ;;  %v7042_v31 = vcombine.low %v8242_v2, %v8262_v6  ;;  %v4046_v2 = vld [vmem:[%s11255_s12] sm:$0xff] }
0x1ac1   :  { %v7044_v45 = vcombine.low %v8247_v3, %v8267_v7  ;;  %v10618_v11 = vshrl.u32 %v4048_v10, 7 }
0x1ac2   :  { %4264 = vmatpush1.bf16.msra.mxu0 %v7046_v35 }
0x1ac3   :  { %4305 = vmatpush1.bf16.msra.mxu1 %v7048_v50  ;;  %4265 = vmatprep.subr.bf16.mxu0 %v7039_v16  ;;  %v4050_v14 = vsub.s32 0, %v10618_v11  ;;  %v4058_v15 = vsub.s32 2, %v10618_v11  ;;  %v4054_v3 = vsub.s32 1, %v10618_v11  ;;  %v4062_v6 = vsub.s32 3, %v10618_v11 }
0x1ac4   :  { %4306 = vmatprep.subr.bf16.mxu1 %v7041_v17  ;;  %v4066_v54 = vsub.s32 4, %v10618_v11  ;;  %v4074_v44 = vsub.s32 6, %v10618_v11  ;;  %v4070_v34 = vsub.s32 5, %v10618_v11  ;;  %v4078_v40 = vsub.s32 7, %v10618_v11 }
0x1ac5   :  { %v4051_v7 = vrot.slane %v4046_v2, %v4050_v14  ;;  %v4059_v56 = vrot.slane %v4046_v2, %v4058_v15  ;;  %v4055_v58 = vrot.slane %v4046_v2, %v4054_v3  ;;  %v4063_v39 = vrot.slane %v4046_v2, %v4062_v6 }
0x1ac6   :  { %4266 = vmatpush1.bf16.msra.mxu0 %v7038_v20  ;;  %v4067_v49 = vrot.slane %v4046_v2, %v4066_v54  ;;  %v4075_v55 = vrot.slane %v4046_v2, %v4074_v44  ;;  %v4071_v51 = vrot.slane %v4046_v2, %v4070_v34  ;;  %v4079_v32 = vrot.slane %v4046_v2, %v4078_v40 }
0x1ac7   :  { %4307 = vmatpush1.bf16.msra.mxu1 %v7040_v21  ;;  %4341 = vmatprep.subr.bf16.mxu0 %v7067_v8  ;;  %v7104_v21 = vcombine.high %v8532_v60, %v8542_v62  ;;  %v11778_v8 = vld [vmem:[#allocation104_spill] sm:$0xff] }
0x1ac8   :  { %4382 = vmatprep.subr.bf16.mxu1 %v7069_v9  ;;  %v11779_v9 = vld [vmem:[#allocation102_spill] sm:$0xff] }
0x1ac9   :  { %7070 = vmatmul.mubr.msk.bf16.vlgmr.msra.gmra.mxu0 %vm925_vm0, %v4045_v12 }
0x1aca   :  { %7071 = vmatmul.mubr.msk.bf16.vlgmr.msra.gmra.mxu1 %vm925_vm0, %v4045_v12  ;;  %4342 = vmatpush1.bf16.msra.mxu0 %v7066_v13  ;;  %v7103_v13 = vcombine.low %v8532_v60, %v8542_v62 }
0x1acb   :  { %4383 = vmatpush1.bf16.msra.mxu1 %v7068_v0  ;;  %4343 = vmatprep.subr.bf16.mxu0 %v7059_v1  ;;  %v7167_v0 = vcombine.low %v11779_v9, %v11778_v8 }
0x1acc   :  { %4384 = vmatprep.subr.bf16.mxu1 %v7061_v4  ;;  %4365 = vmatprep.mubr.bf16.mxu0 %v11777_v59 }
0x1acd   :  { %4406 = vmatprep.mubr.bf16.mxu1 %v11777_v59 }
0x1ace   :  { %4344 = vmatpush1.bf16.msra.mxu0 %v7058_v5 }
0x1acf   :  { %4385 = vmatpush1.bf16.msra.mxu1 %v7060_v26  ;;  %4345 = vmatprep.subr.bf16.mxu0 %v7051_v27 }
0x1ad0   :  { %4386 = vmatprep.subr.bf16.mxu1 %v7053_v30 }
0x1ad2   :  { %4346 = vmatpush1.bf16.msra.mxu0 %v7050_v18 }
0x1ad3   :  { %4387 = vmatpush1.bf16.msra.mxu1 %v7052_v19  ;;  %4347 = vmatprep.subr.bf16.mxu0 %v7043_v22 }
0x1ad4   :  { %4388 = vmatprep.subr.bf16.mxu1 %v7045_v23 }
0x1ad6   :  { %4348 = vmatpush1.bf16.msra.mxu0 %v7042_v31 }
0x1ad7   :  { %4389 = vmatpush1.bf16.msra.mxu1 %v7044_v45 }
0x1ad9   :  { %7072 = vmatmul.mubr.msk.bf16.vlgmr.msra.gmra.mxu0 %vm925_vm0, %v4045_v12 }
0x1ada   :  { %7073 = vmatmul.mubr.msk.bf16.vlgmr.msra.gmra.mxu1 %vm925_vm0, %v4045_v12  ;;  %v7168_v12 = vcombine.high %v11779_v9, %v11778_v8 }
0x1b89   :  { %v4285_v61 = vpop.f32.mrf.mxu0 }
0x1b8a   :  { %v4326_v52 = vpop.f32.mrf.mxu1  ;;  %v10635_v36 = vadd.f32 %v4285_v61, %v4051_v7 }
0x1b8b   :  { %v10637_v42 = vadd.f32 %v4326_v52, %v4059_v56  ;;  %v4287_v53 = vpop.f32.mrf.mxu0 }
0x1b8c   :  { %v4328_v46 = vpop.f32.mrf.mxu1  ;;  %v10639_v57 = vadd.f32 %v4287_v53, %v4055_v58 }
0x1b8d   :  { %v10641_v37 = vadd.f32 %v4328_v46, %v4063_v39  ;;  %v4289_v63 = vpop.f32.mrf.mxu0 }
0x1b8e   :  { %v4330_v43 = vpop.f32.mrf.mxu1 }
0x1b8f   :  { %v4290_v48 = vpop.f32.mrf.mxu0 }
0x1b90   :  { %v4331_v33 = vpop.f32.mrf.mxu1 }
0x1b99   :  { %v4367_v59 = vpop.f32.mrf.mxu0 }
0x1b9a   :  { %v4408_v41 = vpop.f32.mrf.mxu1  ;;  %v10647_v47 = vadd.f32 %v4367_v59, %v4067_v49 }
0x1b9b   :  { %v10649_v24 = vadd.f32 %v4408_v41, %v4075_v55  ;;  %v4369_v25 = vpop.f32.mrf.mxu0 }
0x1b9c   :  { %v4410_v28 = vpop.f32.mrf.mxu1  ;;  %v10651_v29 = vadd.f32 %v4369_v25, %v4071_v51 }
0x1b9d   :  { %v10653_v35 = vadd.f32 %v4410_v28, %v4079_v32  ;;  %v4371_v50 = vpop.f32.mrf.mxu0 }
0x1b9e   :  { %v4412_v16 = vpop.f32.mrf.mxu1 }
0x1b9f   :  { %v4372_v17 = vpop.f32.mrf.mxu0 }
0x1ba0   :  { %v4413_v20 = vpop.f32.mrf.mxu1 }
0x1ba1   :  { %8137 = dma.done.wait [#allocation5 + $0x1], 32768 }
0x1ba2   :  { %8138 = vsyncadd [#allocation5 + $0x1], 4294934528  ;;  %v11780_v1 = vld [vmem:[#allocation38_spill] sm:$0xff]  ;;  %v11781_v4 = vld [vmem:[#allocation36_spill] sm:$0xff]  ;;  %5986 = vmatprep.subr.bf16.mxu0 %v7104_v21  ;;  %6027 = vmatprep.subr.bf16.mxu1 %v7168_v12  ;;  %v10701_v25 = vpack.c.bf16 %v10639_v57, %v10639_v57  ;;  %v10705_v28 = vpack.c.bf16 %v10641_v37, %v10641_v37 }
0x1ba3   :  { %v7100_v5 = vcombine.high %v11781_v4, %v11780_v1  ;;  %v11782_v26 = vld [vmem:[#allocation100_spill] sm:$0xff]  ;;  %v11783_v27 = vld [vmem:[#allocation98_spill] sm:$0xff]  ;;  %5987 = vmatpush1.bf16.msra.mxu0 %v7103_v13  ;;  %6028 = vmatpush1.bf16.msra.mxu1 %v7167_v0  ;;  %v7099_v18 = vcombine.low %v11781_v4, %v11780_v1 }
0x1ba4   :  { %v7164_v30 = vcombine.high %v11783_v27, %v11782_v26  ;;  %v7163_v60 = vcombine.low %v11783_v27, %v11782_v26  ;;  %v11784_v62 = vld [vmem:[#allocation34_spill] sm:$0xff]  ;;  %v11785_v19 = vld [vmem:[#allocation32_spill] sm:$0xff]  ;;  %6018 = vmatprep.mubr.bf16.mxu0 %v10701_v25  ;;  %6059 = vmatprep.mubr.bf16.mxu1 %v10705_v28 }
0x1ba5   :  { %5988 = vmatprep.subr.bf16.mxu0 %v7100_v5  ;;  %v7096_v22 = vcombine.high %v11785_v19, %v11784_v62  ;;  %v11786_v23 = vld [vmem:[#allocation96_spill] sm:$0xff]  ;;  %v11787_v31 = vld [vmem:[#allocation94_spill] sm:$0xff]  ;;  %v7095_v10 = vcombine.low %v11785_v19, %v11784_v62 }
0x1ba6   :  { %6029 = vmatprep.subr.bf16.mxu1 %v7164_v30  ;;  %v7160_v45 = vcombine.high %v11787_v31, %v11786_v23  ;;  %v7159_v2 = vcombine.low %v11787_v31, %v11786_v23  ;;  %v11788_v7 = vld [vmem:[#allocation30_spill] sm:$0xff]  ;;  %v11789_v56 = vld [vmem:[#allocation28_spill] sm:$0xff] }
0x1ba7   :  { %5989 = vmatpush1.bf16.msra.mxu0 %v7099_v18  ;;  %6030 = vmatpush1.bf16.msra.mxu1 %v7163_v60  ;;  %v7092_v58 = vcombine.high %v11789_v56, %v11788_v7  ;;  %v11790_v39 = vld [vmem:[#allocation92_spill] sm:$0xff]  ;;  %v11791_v61 = vld [vmem:[#allocation90_spill] sm:$0xff]  ;;  %v7091_v53 = vcombine.low %v11789_v56, %v11788_v7 }
0x1ba8   :  { %5990 = vmatprep.subr.bf16.mxu0 %v7096_v22  ;;  %6031 = vmatprep.subr.bf16.mxu1 %v7160_v45  ;;  %v7156_v52 = vcombine.high %v11791_v61, %v11790_v39  ;;  %v7155_v46 = vcombine.low %v11791_v61, %v11790_v39  ;;  %v11792_v63 = vld [vmem:[#allocation26_spill] sm:$0xff]  ;;  %v11793_v43 = vld [vmem:[#allocation24_spill] sm:$0xff] }
0x1ba9   :  { %v7088_v48 = vcombine.high %v11793_v43, %v11792_v63  ;;  %v11794_v33 = vld [vmem:[#allocation88_spill] sm:$0xff]  ;;  %v11795_v54 = vld [vmem:[#allocation86_spill] sm:$0xff]  ;;  %v7087_v34 = vcombine.low %v11793_v43, %v11792_v63 }
0x1baa   :  { %v7152_v44 = vcombine.high %v11795_v54, %v11794_v33  ;;  %v7151_v40 = vcombine.low %v11795_v54, %v11794_v33  ;;  %v11796_v49 = vld [vmem:[#allocation22_spill] sm:$0xff]  ;;  %v11797_v55 = vld [vmem:[#allocation20_spill] sm:$0xff] }
0x1bab   :  { %5991 = vmatpush1.bf16.msra.mxu0 %v7095_v10  ;;  %6032 = vmatpush1.bf16.msra.mxu1 %v7159_v2  ;;  %v7084_v51 = vcombine.high %v11797_v55, %v11796_v49  ;;  %v11798_v32 = vld [vmem:[#allocation84_spill] sm:$0xff]  ;;  %v11799_v59 = vld [vmem:[#allocation82_spill] sm:$0xff]  ;;  %v7083_v50 = vcombine.low %v11797_v55, %v11796_v49 }
0x1bac   :  { %5992 = vmatprep.subr.bf16.mxu0 %v7092_v58  ;;  %6033 = vmatprep.subr.bf16.mxu1 %v7156_v52  ;;  %v7148_v41 = vcombine.high %v11799_v59, %v11798_v32  ;;  %v7147_v16 = vcombine.low %v11799_v59, %v11798_v32  ;;  %v11800_v17 = vld [vmem:[#allocation18_spill] sm:$0xff]  ;;  %v11801_v20 = vld [vmem:[#allocation16_spill] sm:$0xff] }
0x1bad   :  { %v7080_v21 = vcombine.high %v11801_v20, %v11800_v17  ;;  %v11802_v8 = vld [vmem:[#allocation80_spill] sm:$0xff]  ;;  %v11803_v57 = vld [vmem:[#allocation78_spill] sm:$0xff]  ;;  %v7079_v37 = vcombine.low %v11801_v20, %v11800_v17 }
0x1bae   :  { %v7144_v9 = vcombine.high %v11803_v57, %v11802_v8  ;;  %v7143_v12 = vcombine.low %v11803_v57, %v11802_v8  ;;  %v11804_v13 = vld [vmem:[#allocation14_spill] sm:$0xff]  ;;  %v11805_v0 = vld [vmem:[#allocation12_spill] sm:$0xff] }
0x1baf   :  { %5993 = vmatpush1.bf16.msra.mxu0 %v7091_v53  ;;  %6034 = vmatpush1.bf16.msra.mxu1 %v7155_v46  ;;  %v7076_v1 = vcombine.high %v11805_v0, %v11804_v13  ;;  %v11806_v4 = vld [vmem:[#allocation76_spill] sm:$0xff]  ;;  %v11807_v5 = vld [vmem:[#allocation74_spill] sm:$0xff]  ;;  %v7075_v27 = vcombine.low %v11805_v0, %v11804_v13 }
0x1bb0   :  { %5994 = vmatprep.subr.bf16.mxu0 %v7088_v48  ;;  %6035 = vmatprep.subr.bf16.mxu1 %v7152_v44  ;;  %v7140_v26 = vcombine.high %v11807_v5, %v11806_v4  ;;  %v7139_v30 = vcombine.low %v11807_v5, %v11806_v4  ;;  %v11808_v18 = vld [vmem:[#allocation72_spill] sm:$0xff]  ;;  %v11809_v60 = vld [vmem:[#allocation70_spill] sm:$0xff] }
0x1bb1   :  { %v7136_v62 = vcombine.high %v11809_v60, %v11808_v18  ;;  %v11810_v19 = vld [vmem:[#allocation136_spill] sm:$0xff]  ;;  %v11811_v22 = vld [vmem:[#allocation134_spill] sm:$0xff]  ;;  %v7135_v31 = vcombine.low %v11809_v60, %v11808_v18 }
0x1bb2   :  { %v7200_v23 = vcombine.high %v11811_v22, %v11810_v19  ;;  %v7199_v45 = vcombine.low %v11811_v22, %v11810_v19  ;;  %v11812_v10 = vld [vmem:[#allocation68_spill] sm:$0xff]  ;;  %v11813_v2 = vld [vmem:[#allocation66_spill] sm:$0xff] }
0x1bb3   :  { %5995 = vmatpush1.bf16.msra.mxu0 %v7087_v34  ;;  %6036 = vmatpush1.bf16.msra.mxu1 %v7151_v40  ;;  %v7132_v7 = vcombine.high %v11813_v2, %v11812_v10  ;;  %v11814_v56 = vld [vmem:[#allocation132_spill] sm:$0xff]  ;;  %v11815_v58 = vld [vmem:[#allocation130_spill] sm:$0xff]  ;;  %v7131_v61 = vcombine.low %v11813_v2, %v11812_v10 }
0x1bb4   :  { %5996 = vmatprep.subr.bf16.mxu0 %v7084_v51  ;;  %6037 = vmatprep.subr.bf16.mxu1 %v7148_v41  ;;  %v7196_v39 = vcombine.high %v11815_v58, %v11814_v56  ;;  %v7195_v52 = vcombine.low %v11815_v58, %v11814_v56  ;;  %v11816_v53 = vld [vmem:[#allocation64_spill] sm:$0xff]  ;;  %v11817_v46 = vld [vmem:[#allocation62_spill] sm:$0xff] }
0x1bb5   :  { %v7128_v63 = vcombine.high %v11817_v46, %v11816_v53  ;;  %v11818_v43 = vld [vmem:[#allocation128_spill] sm:$0xff]  ;;  %v11819_v48 = vld [vmem:[#allocation126_spill] sm:$0xff]  ;;  %v7127_v54 = vcombine.low %v11817_v46, %v11816_v53 }
0x1bb6   :  { %v7192_v33 = vcombine.high %v11819_v48, %v11818_v43  ;;  %v7191_v44 = vcombine.low %v11819_v48, %v11818_v43  ;;  %v11820_v34 = vld [vmem:[#allocation60_spill] sm:$0xff]  ;;  %v11821_v40 = vld [vmem:[#allocation58_spill] sm:$0xff]  ;;  %v10799_v48 = vpack.c.bf16 %v10635_v36, %v10635_v36 }
0x1bb7   :  { %5997 = vmatpush1.bf16.msra.mxu0 %v7083_v50  ;;  %6038 = vmatpush1.bf16.msra.mxu1 %v7147_v16  ;;  %v7124_v49 = vcombine.high %v11821_v40, %v11820_v34  ;;  %v11822_v55 = vld [vmem:[#allocation124_spill] sm:$0xff]  ;;  %v11823_v51 = vld [vmem:[#allocation122_spill] sm:$0xff]  ;;  %v7123_v59 = vcombine.low %v11821_v40, %v11820_v34 }
0x1bb8   :  { %5998 = vmatprep.subr.bf16.mxu0 %v7080_v21  ;;  %6039 = vmatprep.subr.bf16.mxu1 %v7144_v9  ;;  %v7188_v32 = vcombine.high %v11823_v51, %v11822_v55  ;;  %v7187_v41 = vcombine.low %v11823_v51, %v11822_v55  ;;  %v11824_v50 = vld [vmem:[#allocation56_spill] sm:$0xff]  ;;  %v11825_v16 = vld [vmem:[#allocation54_spill] sm:$0xff] }
0x1bb9   :  { %v7120_v17 = vcombine.high %v11825_v16, %v11824_v50  ;;  %v11826_v20 = vld [vmem:[#allocation120_spill] sm:$0xff]  ;;  %v11827_v21 = vld [vmem:[#allocation118_spill] sm:$0xff]  ;;  %v7119_v57 = vcombine.low %v11825_v16, %v11824_v50 }
0x1bba   :  { %v7184_v8 = vcombine.high %v11827_v21, %v11826_v20  ;;  %v7183_v9 = vcombine.low %v11827_v21, %v11826_v20  ;;  %v11830_v0 = vld [vmem:[#allocation116_spill] sm:$0xff]  ;;  %v11845_v40 = vld [vmem:[#allocation162_spill] sm:$0xff] }
0x1bbb   :  { %5999 = vmatpush1.bf16.msra.mxu0 %v7079_v37  ;;  %6040 = vmatpush1.bf16.msra.mxu1 %v7143_v12  ;;  %v11828_v37 = vld [vmem:[#allocation52_spill] sm:$0xff]  ;;  %v11829_v12 = vld [vmem:[#allocation50_spill] sm:$0xff] }
0x1bbc   :  { %6000 = vmatprep.subr.bf16.mxu0 %v7076_v1  ;;  %6041 = vmatprep.subr.bf16.mxu1 %v7140_v26  ;;  %v7116_v13 = vcombine.high %v11829_v12, %v11828_v37  ;;  %v11831_v1 = vld [vmem:[#allocation114_spill] sm:$0xff]  ;;  %v7115_v5 = vcombine.low %v11829_v12, %v11828_v37  ;;  %v11834_v60 = vld [vmem:[#allocation112_spill] sm:$0xff] }
0x1bbd   :  { %v7180_v4 = vcombine.high %v11831_v1, %v11830_v0  ;;  %v7179_v26 = vcombine.low %v11831_v1, %v11830_v0  ;;  %v11838_v2 = vld [vmem:[#allocation108_spill] sm:$0xff]  ;;  %v11847_v36 = vld [vmem:[#allocation226_spill] sm:$0xff] }
0x1bbe   :  { %v11842_v46 = vld [vmem:[#allocation232_spill] sm:$0xff]  ;;  %v11849_v50 = vld [vmem:[#allocation158_spill] sm:$0xff] }
0x1bbf   :  { %6001 = vmatpush1.bf16.msra.mxu0 %v7075_v27  ;;  %6042 = vmatpush1.bf16.msra.mxu1 %v7139_v30  ;;  %v11832_v27 = vld [vmem:[#allocation48_spill] sm:$0xff]  ;;  %v11833_v30 = vld [vmem:[#allocation46_spill] sm:$0xff] }
0x1bc0   :  { %6002 = vmatprep.subr.bf16.mxu0 %v7136_v62  ;;  %6043 = vmatprep.subr.bf16.mxu1 %v7200_v23  ;;  %v7112_v18 = vcombine.high %v11833_v30, %v11832_v27  ;;  %v11835_v62 = vld [vmem:[#allocation110_spill] sm:$0xff]  ;;  %v7111_v22 = vcombine.low %v11833_v30, %v11832_v27  ;;  %v11844_v34 = vld [vmem:[#allocation164_spill] sm:$0xff] }
0x1bc1   :  { %v7176_v19 = vcombine.high %v11835_v62, %v11834_v60  ;;  %v7175_v23 = vcombine.low %v11835_v62, %v11834_v60  ;;  %v11846_v55 = vld [vmem:[#allocation228_spill] sm:$0xff] }
0x1bc2   :  { %v7292_v51 = vcombine.high %v11847_v36, %v11846_v55  ;;  %v11854_v12 = vld [vmem:[#allocation220_spill] sm:$0xff] }
0x1bc3   :  { %6003 = vmatpush2.bf16.msra.mxu0 %v7135_v31  ;;  %6044 = vmatpush2.bf16.msra.mxu1 %v7199_v45  ;;  %v11836_v31 = vld [vmem:[#allocation44_spill] sm:$0xff]  ;;  %v11837_v45 = vld [vmem:[#allocation42_spill] sm:$0xff] }
0x1bc4   :  { %6004 = vmatprep.subr.bf16.mxu0 %v7132_v7  ;;  %6045 = vmatprep.subr.bf16.mxu1 %v7196_v39  ;;  %v7108_v10 = vcombine.high %v11837_v45, %v11836_v31  ;;  %v11839_v7 = vld [vmem:[#allocation106_spill] sm:$0xff]  ;;  %v7107_v58 = vcombine.low %v11837_v45, %v11836_v31  ;;  %v11858_v30 = vld [vmem:[#allocation216_spill] sm:$0xff] }
0x1bc5   :  { %v7172_v56 = vcombine.high %v11839_v7, %v11838_v2  ;;  %v7171_v39 = vcombine.low %v11839_v7, %v11838_v2  ;;  %v11862_v45 = vld [vmem:[#allocation212_spill] sm:$0xff] }
0x1bc7   :  { %6005 = vmatpush2.bf16.msra.mxu0 %v7131_v61  ;;  %6046 = vmatpush2.bf16.msra.mxu1 %v7195_v52  ;;  %v11840_v61 = vld [vmem:[#allocation168_spill] sm:$0xff]  ;;  %v11841_v52 = vld [vmem:[#allocation166_spill] sm:$0xff] }
0x1bc8   :  { %6006 = vmatprep.subr.bf16.mxu0 %v7128_v63  ;;  %6047 = vmatprep.subr.bf16.mxu1 %v7192_v33  ;;  %v7232_v53 = vcombine.high %v11841_v52, %v11840_v61  ;;  %v11843_v63 = vld [vmem:[#allocation230_spill] sm:$0xff]  ;;  %v10803_v33 = vpack.c.bf16 %v10637_v42, %v10637_v42  ;;  %v10815_v42 = vpack.c.bf16 %v10651_v29, %v10651_v29  ;;  %v11848_v29 = vld [vmem:[#allocation160_spill] sm:$0xff] }
0x1bc9   :  { %v7296_v43 = vcombine.high %v11843_v63, %v11842_v46  ;;  %v7224_v16 = vcombine.high %v11849_v50, %v11848_v29  ;;  %v7223_v21 = vcombine.low %v11849_v50, %v11848_v29  ;;  %v11874_v50 = vld [vmem:[#allocation264_spill] sm:$0xff] }
0x1bcb   :  { %6007 = vmatpush2.bf16.msra.mxu0 %v7127_v54  ;;  %6048 = vmatpush2.bf16.msra.mxu1 %v7191_v44  ;;  %v7231_v54 = vcombine.low %v11841_v52, %v11840_v61  ;;  %v7295_v44 = vcombine.low %v11843_v63, %v11842_v46  ;;  %v11866_v52 = vld [vmem:[#allocation208_spill] sm:$0xff] }
0x1bcc   :  { %6008 = vmatprep.subr.bf16.mxu0 %v7124_v49  ;;  %6049 = vmatprep.subr.bf16.mxu1 %v7188_v32  ;;  %v7228_v49 = vcombine.high %v11845_v40, %v11844_v34  ;;  %v10819_v32 = vpack.c.bf16 %v10653_v35, %v10653_v35  ;;  %v11851_v35 = vld [vmem:[#allocation222_spill] sm:$0xff] }
0x1bcf   :  { %6009 = vmatpush2.bf16.msra.mxu0 %v7123_v59  ;;  %6050 = vmatpush2.bf16.msra.mxu1 %v7187_v41  ;;  %v7227_v59 = vcombine.low %v11845_v40, %v11844_v34  ;;  %v7291_v41 = vcombine.low %v11847_v36, %v11846_v55  ;;  %v11870_v40 = vld [vmem:[#allocation204_spill] sm:$0xff] }
0x1bd0   :  { %6010 = vmatprep.subr.bf16.mxu0 %v7120_v17  ;;  %6051 = vmatprep.subr.bf16.mxu1 %v7184_v8  ;;  %v11850_v17 = vld [vmem:[#allocation224_spill] sm:$0xff] }
0x1bd1   :  { %v7288_v20 = vcombine.high %v11851_v35, %v11850_v17  ;;  %v7287_v8 = vcombine.low %v11851_v35, %v11850_v17 }
0x1bd3   :  { %6011 = vmatpush2.bf16.msra.mxu0 %v7119_v57  ;;  %6052 = vmatpush2.bf16.msra.mxu1 %v7183_v9  ;;  %v11852_v57 = vld [vmem:[#allocation156_spill] sm:$0xff]  ;;  %v11853_v9 = vld [vmem:[#allocation154_spill] sm:$0xff] }
0x1bd4   :  { %6012 = vmatprep.subr.bf16.mxu0 %v7116_v13  ;;  %6053 = vmatprep.subr.bf16.mxu1 %v7180_v4  ;;  %v7220_v37 = vcombine.high %v11853_v9, %v11852_v57  ;;  %v11855_v13 = vld [vmem:[#allocation218_spill] sm:$0xff]  ;;  %v7219_v1 = vcombine.low %v11853_v9, %v11852_v57  ;;  %v11878_v9 = vld [vmem:[#allocation260_spill] sm:$0xff] }
0x1bd5   :  { %v7284_v0 = vcombine.high %v11855_v13, %v11854_v12  ;;  %v7283_v4 = vcombine.low %v11855_v13, %v11854_v12 }
0x1bd7   :  { %6013 = vmatpush2.bf16.msra.mxu0 %v7115_v5  ;;  %6054 = vmatpush2.bf16.msra.mxu1 %v7179_v26  ;;  %v11856_v5 = vld [vmem:[#allocation152_spill] sm:$0xff]  ;;  %v11857_v26 = vld [vmem:[#allocation150_spill] sm:$0xff] }
0x1bd8   :  { %6014 = vmatprep.subr.bf16.mxu0 %v7112_v18  ;;  %6055 = vmatprep.subr.bf16.mxu1 %v7176_v19  ;;  %v7216_v27 = vcombine.high %v11857_v26, %v11856_v5  ;;  %v11859_v18 = vld [vmem:[#allocation214_spill] sm:$0xff]  ;;  %v7215_v62 = vcombine.low %v11857_v26, %v11856_v5  ;;  %v11882_v26 = vld [vmem:[#allocation256_spill] sm:$0xff] }
0x1bd9   :  { %v7280_v60 = vcombine.high %v11859_v18, %v11858_v30  ;;  %v7279_v19 = vcombine.low %v11859_v18, %v11858_v30 }
0x1bdb   :  { %6015 = vmatpush2.bf16.msra.mxu0 %v7111_v22  ;;  %6056 = vmatpush2.bf16.msra.mxu1 %v7175_v23  ;;  %v11860_v22 = vld [vmem:[#allocation148_spill] sm:$0xff]  ;;  %v11861_v23 = vld [vmem:[#allocation146_spill] sm:$0xff] }
0x1bdc   :  { %6016 = vmatprep.subr.bf16.mxu0 %v7108_v10  ;;  %6057 = vmatprep.subr.bf16.mxu1 %v7172_v56  ;;  %v7212_v31 = vcombine.high %v11861_v23, %v11860_v22  ;;  %v11863_v10 = vld [vmem:[#allocation210_spill] sm:$0xff]  ;;  %v7211_v7 = vcombine.low %v11861_v23, %v11860_v22  ;;  %v11886_v23 = vld [vmem:[#allocation252_spill] sm:$0xff] }
0x1bdd   :  { %v7276_v2 = vcombine.high %v11863_v10, %v11862_v45  ;;  %v7275_v56 = vcombine.low %v11863_v10, %v11862_v45 }
0x1bdf   :  { %6017 = vmatpush2.bf16.msra.mxu0 %v7107_v58  ;;  %6058 = vmatpush2.bf16.msra.mxu1 %v7171_v39  ;;  %v11864_v58 = vld [vmem:[#allocation144_spill] sm:$0xff]  ;;  %v11865_v39 = vld [vmem:[#allocation142_spill] sm:$0xff] }
0x1be0   :  { %6068 = vmatprep.subr.bf16.mxu0 %v7232_v53  ;;  %6109 = vmatprep.subr.bf16.mxu1 %v7296_v43  ;;  %v7208_v61 = vcombine.high %v11865_v39, %v11864_v58  ;;  %v11867_v53 = vld [vmem:[#allocation206_spill] sm:$0xff]  ;;  %v7207_v63 = vcombine.low %v11865_v39, %v11864_v58  ;;  %v11890_v39 = vld [vmem:[#allocation248_spill] sm:$0xff] }
0x1be1   :  { %v7272_v46 = vcombine.high %v11867_v53, %v11866_v52  ;;  %v7271_v43 = vcombine.low %v11867_v53, %v11866_v52 }
0x1be2   :  { %6019 = vmatmul.mubr.bf16.vlgmr.msra.gmra.mxu0 %v10799_v48  ;;  %6060 = vmatmul.mubr.bf16.vlgmr.msra.gmra.mxu1 %v10803_v33 }
0x1be3   :  { %6069 = vmatpush1.bf16.msra.mxu0 %v7231_v54  ;;  %6110 = vmatpush1.bf16.msra.mxu1 %v7295_v44  ;;  %v11868_v54 = vld [vmem:[#allocation140_spill] sm:$0xff]  ;;  %v11869_v44 = vld [vmem:[#allocation138_spill] sm:$0xff] }
0x1be4   :  { %6070 = vmatprep.subr.bf16.mxu0 %v7228_v49  ;;  %6111 = vmatprep.subr.bf16.mxu1 %v7292_v51  ;;  %v7204_v34 = vcombine.high %v11869_v44, %v11868_v54  ;;  %v11871_v49 = vld [vmem:[#allocation202_spill] sm:$0xff]  ;;  %v7203_v36 = vcombine.low %v11869_v44, %v11868_v54  ;;  %v11894_v44 = vld [vmem:[#allocation244_spill] sm:$0xff] }
0x1be5   :  { %6100 = vmatprep.mubr.bf16.mxu0 %v10815_v42  ;;  %6141 = vmatprep.mubr.bf16.mxu1 %v10819_v32  ;;  %v7268_v55 = vcombine.high %v11871_v49, %v11870_v40  ;;  %v7267_v51 = vcombine.low %v11871_v49, %v11870_v40 }
0x1be7   :  { %6071 = vmatpush1.bf16.msra.mxu0 %v7227_v59  ;;  %6112 = vmatpush1.bf16.msra.mxu1 %v7291_v41  ;;  %v11872_v59 = vld [vmem:[#allocation200_spill] sm:$0xff]  ;;  %v11873_v41 = vld [vmem:[#allocation198_spill] sm:$0xff] }
0x1be8   :  { %6072 = vmatprep.subr.bf16.mxu0 %v7224_v16  ;;  %6113 = vmatprep.subr.bf16.mxu1 %v7288_v20  ;;  %v7264_v29 = vcombine.high %v11873_v41, %v11872_v59  ;;  %v11875_v16 = vld [vmem:[#allocation262_spill] sm:$0xff]  ;;  %v7263_v35 = vcombine.low %v11873_v41, %v11872_v59  ;;  %v11898_v41 = vld [vmem:[#allocation240_spill] sm:$0xff] }
0x1be9   :  { %v7328_v17 = vcombine.high %v11875_v16, %v11874_v50  ;;  %v7327_v20 = vcombine.low %v11875_v16, %v11874_v50 }
0x1beb   :  { %6073 = vmatpush1.bf16.msra.mxu0 %v7223_v21  ;;  %6114 = vmatpush1.bf16.msra.mxu1 %v7287_v8  ;;  %v11876_v21 = vld [vmem:[#allocation196_spill] sm:$0xff]  ;;  %v11877_v8 = vld [vmem:[#allocation194_spill] sm:$0xff] }
0x1bec   :  { %6074 = vmatprep.subr.bf16.mxu0 %v7220_v37  ;;  %6115 = vmatprep.subr.bf16.mxu1 %v7284_v0  ;;  %v7260_v57 = vcombine.high %v11877_v8, %v11876_v21  ;;  %v11879_v37 = vld [vmem:[#allocation258_spill] sm:$0xff]  ;;  %v7259_v13 = vcombine.low %v11877_v8, %v11876_v21  ;;  %v11902_v8 = vld [vmem:[#allocation236_spill] sm:$0xff] }
0x1bed   :  { %v7324_v12 = vcombine.high %v11879_v37, %v11878_v9  ;;  %v7323_v0 = vcombine.low %v11879_v37, %v11878_v9 }
0x1bef   :  { %6075 = vmatpush1.bf16.msra.mxu0 %v7219_v1  ;;  %6116 = vmatpush1.bf16.msra.mxu1 %v7283_v4  ;;  %v11880_v1 = vld [vmem:[#allocation192_spill] sm:$0xff]  ;;  %v11881_v4 = vld [vmem:[#allocation190_spill] sm:$0xff] }
0x1bf0   :  { %6076 = vmatprep.subr.bf16.mxu0 %v7216_v27  ;;  %6117 = vmatprep.subr.bf16.mxu1 %v7280_v60  ;;  %v7256_v5 = vcombine.high %v11881_v4, %v11880_v1  ;;  %v11883_v27 = vld [vmem:[#allocation254_spill] sm:$0xff]  ;;  %v7255_v18 = vcombine.low %v11881_v4, %v11880_v1  ;;  %v11906_v4 = vld [vmem:[#allocation105_spill] sm:$0xff] }
0x1bf1   :  { %v7320_v30 = vcombine.high %v11883_v27, %v11882_v26  ;;  %v7319_v60 = vcombine.low %v11883_v27, %v11882_v26  ;;  %v10947_v27 = vpack.c.bf16 %v10647_v47, %v10647_v47  ;;  %v11911_v47 = vld [vmem:[#allocation99_spill] sm:$0xff] }
0x1bf3   :  { %6077 = vmatpush1.bf16.msra.mxu0 %v7215_v62  ;;  %6118 = vmatpush1.bf16.msra.mxu1 %v7279_v19  ;;  %v11884_v62 = vld [vmem:[#allocation188_spill] sm:$0xff]  ;;  %v11885_v19 = vld [vmem:[#allocation186_spill] sm:$0xff] }
0x1bf4   :  { %6078 = vmatprep.subr.bf16.mxu0 %v7212_v31  ;;  %6119 = vmatprep.subr.bf16.mxu1 %v7276_v2  ;;  %v7252_v22 = vcombine.high %v11885_v19, %v11884_v62  ;;  %v11887_v31 = vld [vmem:[#allocation250_spill] sm:$0xff]  ;;  %v7251_v10 = vcombine.low %v11885_v19, %v11884_v62  ;;  %v11908_v62 = vld [vmem:[#allocation39_spill] sm:$0xff]  ;;  %v11909_v19 = vld [vmem:[#allocation37_spill] sm:$0xff] }
0x1bf5   :  { %v7316_v45 = vcombine.high %v11887_v31, %v11886_v23  ;;  %v7315_v2 = vcombine.low %v11887_v31, %v11886_v23  ;;  %v11910_v23 = vld [vmem:[#allocation101_spill] sm:$0xff] }
0x1bf6   :  { %v7166_v31 = vcombine.high %v11911_v47, %v11910_v23 }
0x1bf7   :  { %6079 = vmatpush1.bf16.msra.mxu0 %v7211_v7  ;;  %6120 = vmatpush1.bf16.msra.mxu1 %v7275_v56  ;;  %v11888_v7 = vld [vmem:[#allocation184_spill] sm:$0xff]  ;;  %v11889_v56 = vld [vmem:[#allocation182_spill] sm:$0xff] }
0x1bf8   :  { %6080 = vmatprep.subr.bf16.mxu0 %v7208_v61  ;;  %6121 = vmatprep.subr.bf16.mxu1 %v7272_v46  ;;  %v7248_v58 = vcombine.high %v11889_v56, %v11888_v7  ;;  %v11891_v61 = vld [vmem:[#allocation246_spill] sm:$0xff]  ;;  %v7247_v53 = vcombine.low %v11889_v56, %v11888_v7  ;;  %v11914_v56 = vld [vmem:[#allocation97_spill] sm:$0xff] }
0x1bf9   :  { %v7312_v52 = vcombine.high %v11891_v61, %v11890_v39  ;;  %v7311_v46 = vcombine.low %v11891_v61, %v11890_v39 }
0x1bfb   :  { %6081 = vmatpush1.bf16.msra.mxu0 %v7207_v63  ;;  %6122 = vmatpush1.bf16.msra.mxu1 %v7271_v43  ;;  %v11892_v63 = vld [vmem:[#allocation180_spill] sm:$0xff]  ;;  %v11893_v43 = vld [vmem:[#allocation178_spill] sm:$0xff] }
0x1bfc   :  { %6082 = vmatprep.subr.bf16.mxu0 %v7204_v34  ;;  %6123 = vmatprep.subr.bf16.mxu1 %v7268_v55  ;;  %v7244_v54 = vcombine.high %v11893_v43, %v11892_v63  ;;  %v11895_v34 = vld [vmem:[#allocation242_spill] sm:$0xff]  ;;  %v7243_v49 = vcombine.low %v11893_v43, %v11892_v63  ;;  %v11918_v43 = vld [vmem:[#allocation93_spill] sm:$0xff] }
0x1bfd   :  { %v7308_v40 = vcombine.high %v11895_v34, %v11894_v44  ;;  %v7307_v55 = vcombine.low %v11895_v34, %v11894_v44  ;;  %v11920_v34 = vld [vmem:[#allocation27_spill] sm:$0xff] }
0x1bff   :  { %6083 = vmatpush1.bf16.msra.mxu0 %v7203_v36  ;;  %6124 = vmatpush1.bf16.msra.mxu1 %v7267_v51  ;;  %v11896_v36 = vld [vmem:[#allocation176_spill] sm:$0xff]  ;;  %v11897_v51 = vld [vmem:[#allocation174_spill] sm:$0xff] }
0x1c00   :  { %6084 = vmatprep.subr.bf16.mxu0 %v7264_v29  ;;  %6125 = vmatprep.subr.bf16.mxu1 %v7328_v17  ;;  %v7240_v59 = vcombine.high %v11897_v51, %v11896_v36  ;;  %v11899_v29 = vld [vmem:[#allocation238_spill] sm:$0xff]  ;;  %v7239_v16 = vcombine.low %v11897_v51, %v11896_v36  ;;  %v11923_v36 = vld [vmem:[#allocation87_spill] sm:$0xff] }
0x1c01   :  { %v7304_v50 = vcombine.high %v11899_v29, %v11898_v41  ;;  %v7303_v17 = vcombine.low %v11899_v29, %v11898_v41  ;;  %v11924_v29 = vld [vmem:[#allocation23_spill] sm:$0xff] }
0x1c03   :  { %6085 = vmatpush2.bf16.msra.mxu0 %v7263_v35  ;;  %6126 = vmatpush2.bf16.msra.mxu1 %v7327_v20  ;;  %v11900_v35 = vld [vmem:[#allocation172_spill] sm:$0xff]  ;;  %v11901_v20 = vld [vmem:[#allocation170_spill] sm:$0xff] }
0x1c04   :  { %6086 = vmatprep.subr.bf16.mxu0 %v7260_v57  ;;  %6127 = vmatprep.subr.bf16.mxu1 %v7324_v12  ;;  %v7236_v21 = vcombine.high %v11901_v20, %v11900_v35  ;;  %v11903_v57 = vld [vmem:[#allocation234_spill] sm:$0xff]  ;;  %v7235_v37 = vcombine.low %v11901_v20, %v11900_v35  ;;  %v11927_v35 = vld [vmem:[#allocation83_spill] sm:$0xff] }
0x1c05   :  { %v7300_v9 = vcombine.high %v11903_v57, %v11902_v8  ;;  %v7299_v12 = vcombine.low %v11903_v57, %v11902_v8  ;;  %v11928_v57 = vld [vmem:[#allocation19_spill] sm:$0xff] }
0x1c07   :  { %6087 = vmatpush2.bf16.msra.mxu0 %v7259_v13  ;;  %6128 = vmatpush2.bf16.msra.mxu1 %v7323_v0  ;;  %v11904_v13 = vld [vmem:[#allocation41_spill] sm:$0xff]  ;;  %v11905_v0 = vld [vmem:[#allocation40_spill] sm:$0xff] }
0x1c08   :  { %6088 = vmatprep.subr.bf16.mxu0 %v7256_v5  ;;  %6129 = vmatprep.subr.bf16.mxu1 %v7320_v30  ;;  %v7106_v1 = vcombine.high %v11905_v0, %v11904_v13  ;;  %v11907_v5 = vld [vmem:[#allocation103_spill] sm:$0xff]  ;;  %v10951_v30 = vpack.c.bf16 %v10649_v24, %v10649_v24  ;;  %v7101_v24 = vcombine.low %v11909_v19, %v11908_v62 }
0x1c09   :  { %v7170_v26 = vcombine.high %v11907_v5, %v11906_v4 }
0x1c0b   :  { %6089 = vmatpush2.bf16.msra.mxu0 %v7255_v18  ;;  %6130 = vmatpush2.bf16.msra.mxu1 %v7319_v60  ;;  %v7105_v18 = vcombine.low %v11905_v0, %v11904_v13  ;;  %v7169_v60 = vcombine.low %v11907_v5, %v11906_v4  ;;  %v11931_v13 = vld [vmem:[#allocation79_spill] sm:$0xff] }
0x1c0c   :  { %6090 = vmatprep.subr.bf16.mxu0 %v7252_v22  ;;  %6131 = vmatprep.subr.bf16.mxu1 %v7316_v45  ;;  %v7102_v22 = vcombine.high %v11909_v19, %v11908_v62  ;;  %v7165_v45 = vcombine.low %v11911_v47, %v11910_v23  ;;  %v11932_v5 = vld [vmem:[#allocation15_spill] sm:$0xff]  ;;  %v11936_v47 = vld [vmem:[#allocation73_spill] sm:$0xff] }
0x1c0d   :  { %v11935_v62 = vld [vmem:[#allocation75_spill] sm:$0xff] }
0x1c0f   :  { %6091 = vmatpush2.bf16.msra.mxu0 %v7251_v10  ;;  %6132 = vmatpush2.bf16.msra.mxu1 %v7315_v2  ;;  %v11912_v10 = vld [vmem:[#allocation35_spill] sm:$0xff]  ;;  %v11913_v2 = vld [vmem:[#allocation33_spill] sm:$0xff] }
0x1c10   :  { %6092 = vmatprep.subr.bf16.mxu0 %v7248_v58  ;;  %6133 = vmatprep.subr.bf16.mxu1 %v7312_v52  ;;  %v7098_v7 = vcombine.high %v11913_v2, %v11912_v10  ;;  %v11915_v58 = vld [vmem:[#allocation95_spill] sm:$0xff]  ;;  %v7097_v61 = vcombine.low %v11913_v2, %v11912_v10 }
0x1c11   :  { %v7162_v39 = vcombine.high %v11915_v58, %v11914_v56  ;;  %v7161_v52 = vcombine.low %v11915_v58, %v11914_v56  ;;  %v11939_v10 = vld [vmem:[#allocation135_spill] sm:$0xff]  ;;  %v11940_v58 = vld [vmem:[#allocation69_spill] sm:$0xff] }
0x1c13   :  { %6093 = vmatpush2.bf16.msra.mxu0 %v7247_v53  ;;  %6134 = vmatpush2.bf16.msra.mxu1 %v7311_v46  ;;  %v11916_v53 = vld [vmem:[#allocation31_spill] sm:$0xff]  ;;  %v11917_v46 = vld [vmem:[#allocation29_spill] sm:$0xff] }
0x1c14   :  { %6094 = vmatprep.subr.bf16.mxu0 %v7244_v54  ;;  %6135 = vmatprep.subr.bf16.mxu1 %v7308_v40  ;;  %v7094_v63 = vcombine.high %v11917_v46, %v11916_v53  ;;  %v11919_v54 = vld [vmem:[#allocation91_spill] sm:$0xff]  ;;  %v11921_v40 = vld [vmem:[#allocation25_spill] sm:$0xff] }
0x1c15   :  { %v7158_v44 = vcombine.high %v11919_v54, %v11918_v43 }
0x1c17   :  { %6095 = vmatpush2.bf16.msra.mxu0 %v7243_v49  ;;  %6136 = vmatpush2.bf16.msra.mxu1 %v7307_v55  ;;  %v7090_v49 = vcombine.high %v11921_v40, %v11920_v34  ;;  %v11922_v55 = vld [vmem:[#allocation89_spill] sm:$0xff] }
0x1c18   :  { %6096 = vmatprep.subr.bf16.mxu0 %v7240_v59  ;;  %6137 = vmatprep.subr.bf16.mxu1 %v7304_v50  ;;  %v7154_v51 = vcombine.high %v11923_v36, %v11922_v55  ;;  %v7089_v59 = vcombine.low %v11921_v40, %v11920_v34  ;;  %v7153_v41 = vcombine.low %v11923_v36, %v11922_v55  ;;  %v11925_v50 = vld [vmem:[#allocation21_spill] sm:$0xff]  ;;  %v11947_v34 = vld [vmem:[#allocation127_spill] sm:$0xff] }
0x1c19   :  { %v11948_v36 = vld [vmem:[#allocation61_spill] sm:$0xff] }
0x1c1b   :  { %6097 = vmatpush2.bf16.msra.mxu0 %v7239_v16  ;;  %6138 = vmatpush2.bf16.msra.mxu1 %v7303_v17  ;;  %v7086_v16 = vcombine.high %v11925_v50, %v11924_v29  ;;  %v11926_v17 = vld [vmem:[#allocation85_spill] sm:$0xff] }
0x1c1c   :  { %6098 = vmatprep.subr.bf16.mxu0 %v7236_v21  ;;  %6139 = vmatprep.subr.bf16.mxu1 %v7300_v9  ;;  %v7150_v20 = vcombine.high %v11927_v35, %v11926_v17  ;;  %v7085_v21 = vcombine.low %v11925_v50, %v11924_v29  ;;  %v7149_v8 = vcombine.low %v11927_v35, %v11926_v17  ;;  %v11929_v9 = vld [vmem:[#allocation17_spill] sm:$0xff]  ;;  %v11951_v29 = vld [vmem:[#allocation123_spill] sm:$0xff] }
0x1c1d   :  { %v11952_v35 = vld [vmem:[#allocation57_spill] sm:$0xff] }
0x1c1f   :  { %6099 = vmatpush2.bf16.msra.mxu0 %v7235_v37  ;;  %6140 = vmatpush2.bf16.msra.mxu1 %v7299_v12  ;;  %v7082_v37 = vcombine.high %v11929_v9, %v11928_v57  ;;  %v11930_v12 = vld [vmem:[#allocation81_spill] sm:$0xff] }
0x1c20   :  { %6150 = vmatprep.subr.bf16.mxu0 %v7106_v1  ;;  %6191 = vmatprep.subr.bf16.mxu1 %v7170_v26  ;;  %v7146_v0 = vcombine.high %v11931_v13, %v11930_v12  ;;  %v7081_v1 = vcombine.low %v11929_v9, %v11928_v57  ;;  %v7145_v4 = vcombine.low %v11931_v13, %v11930_v12  ;;  %v11933_v26 = vld [vmem:[#allocation13_spill] sm:$0xff]  ;;  %v11955_v57 = vld [vmem:[#allocation119_spill] sm:$0xff] }
0x1c21   :  { %v11956_v13 = vld [vmem:[#allocation53_spill] sm:$0xff] }
0x1c22   :  { %6101 = vmatmul.mubr.bf16.vlgmr.msra.gmra.mxu0 %v10947_v27  ;;  %6142 = vmatmul.mubr.bf16.vlgmr.msra.gmra.mxu1 %v10951_v30 }
0x1c23   :  { %6151 = vmatpush1.bf16.msra.mxu0 %v7105_v18  ;;  %6192 = vmatpush1.bf16.msra.mxu1 %v7169_v60  ;;  %v7078_v18 = vcombine.high %v11933_v26, %v11932_v5  ;;  %v11934_v60 = vld [vmem:[#allocation77_spill] sm:$0xff] }
0x1c24   :  { %6152 = vmatprep.subr.bf16.mxu0 %v7102_v22  ;;  %6193 = vmatprep.subr.bf16.mxu1 %v7166_v31  ;;  %v7142_v19 = vcombine.high %v11935_v62, %v11934_v60  ;;  %v7077_v22 = vcombine.low %v11933_v26, %v11932_v5  ;;  %v7141_v23 = vcombine.low %v11935_v62, %v11934_v60  ;;  %v11937_v31 = vld [vmem:[#allocation71_spill] sm:$0xff]  ;;  %v11960_v62 = vld [vmem:[#allocation49_spill] sm:$0xff] }
0x1c25   :  { %6182 = vmatprep.mubr.bf16.mxu0 %v10701_v25  ;;  %6223 = vmatprep.mubr.bf16.mxu1 %v10705_v28  ;;  %v7093_v25 = vcombine.low %v11917_v46, %v11916_v53  ;;  %v7157_v28 = vcombine.low %v11919_v54, %v11918_v43  ;;  %v11943_v53 = vld [vmem:[#allocation131_spill] sm:$0xff]  ;;  %v11944_v54 = vld [vmem:[#allocation65_spill] sm:$0xff] }
0x1c26   :  { %v11959_v5 = vld [vmem:[#allocation115_spill] sm:$0xff] }
0x1c27   :  { %6153 = vmatpush1.bf16.msra.mxu0 %v7101_v24  ;;  %6194 = vmatpush1.bf16.msra.mxu1 %v7165_v45  ;;  %v7138_v24 = vcombine.high %v11937_v31, %v11936_v47  ;;  %v11938_v45 = vld [vmem:[#allocation137_spill] sm:$0xff] }
0x1c28   :  { %6154 = vmatprep.subr.bf16.mxu0 %v7098_v7  ;;  %6195 = vmatprep.subr.bf16.mxu1 %v7162_v39  ;;  %v7202_v2 = vcombine.high %v11939_v10, %v11938_v45  ;;  %v7137_v7 = vcombine.low %v11937_v31, %v11936_v47  ;;  %v7201_v56 = vcombine.low %v11939_v10, %v11938_v45  ;;  %v11941_v39 = vld [vmem:[#allocation67_spill] sm:$0xff]  ;;  %v11964_v10 = vld [vmem:[#allocation45_spill] sm:$0xff] }
0x1c29   :  { %v11963_v47 = vld [vmem:[#allocation111_spill] sm:$0xff] }
0x1c2b   :  { %6155 = vmatpush1.bf16.msra.mxu0 %v7097_v61  ;;  %6196 = vmatpush1.bf16.msra.mxu1 %v7161_v52  ;;  %v7134_v61 = vcombine.high %v11941_v39, %v11940_v58  ;;  %v11942_v52 = vld [vmem:[#allocation133_spill] sm:$0xff] }
0x1c2c   :  { %6156 = vmatprep.subr.bf16.mxu0 %v7094_v63  ;;  %6197 = vmatprep.subr.bf16.mxu1 %v7158_v44  ;;  %v7198_v46 = vcombine.high %v11943_v53, %v11942_v52  ;;  %v7133_v63 = vcombine.low %v11941_v39, %v11940_v58  ;;  %v7197_v43 = vcombine.low %v11943_v53, %v11942_v52  ;;  %v11945_v44 = vld [vmem:[#allocation63_spill] sm:$0xff]  ;;  %v11968_v53 = vld [vmem:[#allocation169_spill] sm:$0xff] }
0x1c2d   :  { %v11967_v58 = vld [vmem:[#allocation107_spill] sm:$0xff] }
0x1c2f   :  { %6157 = vmatpush1.bf16.msra.mxu0 %v7093_v25  ;;  %6198 = vmatpush1.bf16.msra.mxu1 %v7157_v28  ;;  %v7130_v25 = vcombine.high %v11945_v44, %v11944_v54  ;;  %v11946_v28 = vld [vmem:[#allocation129_spill] sm:$0xff] }
0x1c30   :  { %6158 = vmatprep.subr.bf16.mxu0 %v7090_v49  ;;  %6199 = vmatprep.subr.bf16.mxu1 %v7154_v51  ;;  %v7194_v40 = vcombine.high %v11947_v34, %v11946_v28  ;;  %v7129_v49 = vcombine.low %v11945_v44, %v11944_v54  ;;  %v7193_v55 = vcombine.low %v11947_v34, %v11946_v28  ;;  %v11949_v51 = vld [vmem:[#allocation59_spill] sm:$0xff]  ;;  %v11972_v34 = vld [vmem:[#allocation165_spill] sm:$0xff] }
0x1c31   :  { %v11971_v54 = vld [vmem:[#allocation231_spill] sm:$0xff] }
0x1c33   :  { %6159 = vmatpush1.bf16.msra.mxu0 %v7089_v59  ;;  %6200 = vmatpush1.bf16.msra.mxu1 %v7153_v41  ;;  %v7126_v59 = vcombine.high %v11949_v51, %v11948_v36  ;;  %v11950_v41 = vld [vmem:[#allocation125_spill] sm:$0xff] }
0x1c34   :  { %6160 = vmatprep.subr.bf16.mxu0 %v7086_v16  ;;  %6201 = vmatprep.subr.bf16.mxu1 %v7150_v20  ;;  %v7190_v50 = vcombine.high %v11951_v29, %v11950_v41  ;;  %v7125_v16 = vcombine.low %v11949_v51, %v11948_v36  ;;  %v7189_v17 = vcombine.low %v11951_v29, %v11950_v41  ;;  %v11953_v20 = vld [vmem:[#allocation55_spill] sm:$0xff]  ;;  %v11976_v29 = vld [vmem:[#allocation161_spill] sm:$0xff] }
0x1c35   :  { %v11975_v36 = vld [vmem:[#allocation227_spill] sm:$0xff] }
0x1c37   :  { %6161 = vmatpush1.bf16.msra.mxu0 %v7085_v21  ;;  %6202 = vmatpush1.bf16.msra.mxu1 %v7149_v8  ;;  %v7122_v21 = vcombine.high %v11953_v20, %v11952_v35  ;;  %v11954_v8 = vld [vmem:[#allocation121_spill] sm:$0xff] }
0x1c38   :  { %6162 = vmatprep.subr.bf16.mxu0 %v7082_v37  ;;  %6203 = vmatprep.subr.bf16.mxu1 %v7146_v0  ;;  %v7186_v9 = vcombine.high %v11955_v57, %v11954_v8  ;;  %v7121_v37 = vcombine.low %v11953_v20, %v11952_v35  ;;  %v7185_v12 = vcombine.low %v11955_v57, %v11954_v8  ;;  %v11957_v0 = vld [vmem:[#allocation51_spill] sm:$0xff] }
0x1c39   :  { %v11979_v35 = vld [vmem:[#allocation223_spill] sm:$0xff] }
0x1c3a   :  { %v11981_v8 = vld [vmem:[#allocation155_spill] sm:$0xff] }
0x1c3b   :  { %6163 = vmatpush1.bf16.msra.mxu0 %v7081_v1  ;;  %6204 = vmatpush1.bf16.msra.mxu1 %v7145_v4  ;;  %v7118_v1 = vcombine.high %v11957_v0, %v11956_v13  ;;  %v11958_v4 = vld [vmem:[#allocation117_spill] sm:$0xff] }
0x1c3c   :  { %6164 = vmatprep.subr.bf16.mxu0 %v7078_v18  ;;  %6205 = vmatprep.subr.bf16.mxu1 %v7142_v19  ;;  %v7182_v26 = vcombine.high %v11959_v5, %v11958_v4  ;;  %v7117_v18 = vcombine.low %v11957_v0, %v11956_v13  ;;  %v7181_v60 = vcombine.low %v11959_v5, %v11958_v4  ;;  %v11961_v19 = vld [vmem:[#allocation47_spill] sm:$0xff]  ;;  %v11984_v13 = vld [vmem:[#allocation153_spill] sm:$0xff] }
0x1c3d   :  { %v11985_v0 = vld [vmem:[#allocation151_spill] sm:$0xff]  ;;  %v11986_v4 = vld [vmem:[#allocation217_spill] sm:$0xff] }
0x1c3e   :  { %v11987_v5 = vld [vmem:[#allocation215_spill] sm:$0xff] }
0x1c3f   :  { %6165 = vmatpush1.bf16.msra.mxu0 %v7077_v22  ;;  %6206 = vmatpush1.bf16.msra.mxu1 %v7141_v23  ;;  %v7114_v22 = vcombine.high %v11961_v19, %v11960_v62  ;;  %v11962_v23 = vld [vmem:[#allocation113_spill] sm:$0xff] }
0x1c40   :  { %6166 = vmatprep.subr.bf16.mxu0 %v7138_v24  ;;  %6207 = vmatprep.subr.bf16.mxu1 %v7202_v2  ;;  %v7178_v31 = vcombine.high %v11963_v47, %v11962_v23  ;;  %v7113_v24 = vcombine.low %v11961_v19, %v11960_v62  ;;  %v7177_v45 = vcombine.low %v11963_v47, %v11962_v23  ;;  %v11965_v2 = vld [vmem:[#allocation43_spill] sm:$0xff]  ;;  %v11988_v62 = vld [vmem:[#allocation149_spill] sm:$0xff] }
0x1c41   :  { %v11989_v19 = vld [vmem:[#allocation147_spill] sm:$0xff]  ;;  %v11990_v23 = vld [vmem:[#allocation213_spill] sm:$0xff] }
0x1c42   :  { %v11991_v47 = vld [vmem:[#allocation211_spill] sm:$0xff] }
0x1c43   :  { %6167 = vmatpush2.bf16.msra.mxu0 %v7137_v7  ;;  %6208 = vmatpush2.bf16.msra.mxu1 %v7201_v56  ;;  %v7110_v7 = vcombine.high %v11965_v2, %v11964_v10  ;;  %v11966_v56 = vld [vmem:[#allocation109_spill] sm:$0xff] }
0x1c44   :  { %6168 = vmatprep.subr.bf16.mxu0 %v7134_v61  ;;  %6209 = vmatprep.subr.bf16.mxu1 %v7198_v46  ;;  %v7174_v39 = vcombine.high %v11967_v58, %v11966_v56  ;;  %v7109_v61 = vcombine.low %v11965_v2, %v11964_v10  ;;  %v7173_v52 = vcombine.low %v11967_v58, %v11966_v56  ;;  %v11969_v46 = vld [vmem:[#allocation167_spill] sm:$0xff]  ;;  %v11992_v10 = vld [vmem:[#allocation145_spill] sm:$0xff] }
0x1c45   :  { %v11993_v2 = vld [vmem:[#allocation143_spill] sm:$0xff]  ;;  %v11994_v56 = vld [vmem:[#allocation209_spill] sm:$0xff] }
0x1c46   :  { %v11995_v58 = vld [vmem:[#allocation207_spill] sm:$0xff] }
0x1c47   :  { %6169 = vmatpush2.bf16.msra.mxu0 %v7133_v63  ;;  %6210 = vmatpush2.bf16.msra.mxu1 %v7197_v43  ;;  %v7234_v63 = vcombine.high %v11969_v46, %v11968_v53  ;;  %v11970_v43 = vld [vmem:[#allocation233_spill] sm:$0xff] }
0x1c48   :  { %6170 = vmatprep.subr.bf16.mxu0 %v7130_v25  ;;  %6211 = vmatprep.subr.bf16.mxu1 %v7194_v40  ;;  %v7298_v44 = vcombine.high %v11971_v54, %v11970_v43  ;;  %v7233_v25 = vcombine.low %v11969_v46, %v11968_v53  ;;  %v7297_v28 = vcombine.low %v11971_v54, %v11970_v43  ;;  %v11973_v40 = vld [vmem:[#allocation163_spill] sm:$0xff]  ;;  %v11996_v53 = vld [vmem:[#allocation141_spill] sm:$0xff] }
0x1c49   :  { %v11997_v46 = vld [vmem:[#allocation139_spill] sm:$0xff]  ;;  %v11998_v43 = vld [vmem:[#allocation205_spill] sm:$0xff] }
0x1c4a   :  { %v11999_v54 = vld [vmem:[#allocation203_spill] sm:$0xff] }
0x1c4b   :  { %6171 = vmatpush2.bf16.msra.mxu0 %v7129_v49  ;;  %6212 = vmatpush2.bf16.msra.mxu1 %v7193_v55  ;;  %v7230_v49 = vcombine.high %v11973_v40, %v11972_v34  ;;  %v11974_v55 = vld [vmem:[#allocation229_spill] sm:$0xff] }
0x1c4c   :  { %6172 = vmatprep.subr.bf16.mxu0 %v7126_v59  ;;  %6213 = vmatprep.subr.bf16.mxu1 %v7190_v50  ;;  %v7294_v51 = vcombine.high %v11975_v36, %v11974_v55  ;;  %v7229_v59 = vcombine.low %v11973_v40, %v11972_v34  ;;  %v7293_v41 = vcombine.low %v11975_v36, %v11974_v55  ;;  %v11977_v50 = vld [vmem:[#allocation159_spill] sm:$0xff]  ;;  %v12000_v34 = vld [vmem:[#allocation201_spill] sm:$0xff] }
0x1c4d   :  { %v12001_v40 = vld [vmem:[#allocation199_spill] sm:$0xff]  ;;  %v12002_v55 = vld [vmem:[#allocation265_spill] sm:$0xff] }
0x1c4e   :  { %v12003_v36 = vld [vmem:[#allocation263_spill] sm:$0xff] }
0x1c4f   :  { %6173 = vmatpush2.bf16.msra.mxu0 %v7125_v16  ;;  %6214 = vmatpush2.bf16.msra.mxu1 %v7189_v17  ;;  %v7226_v16 = vcombine.high %v11977_v50, %v11976_v29  ;;  %v11978_v17 = vld [vmem:[#allocation225_spill] sm:$0xff] }
0x1c50   :  { %6174 = vmatprep.subr.bf16.mxu0 %v7122_v21  ;;  %6215 = vmatprep.subr.bf16.mxu1 %v7186_v9  ;;  %v7290_v20 = vcombine.high %v11979_v35, %v11978_v17  ;;  %v11980_v21 = vld [vmem:[#allocation157_spill] sm:$0xff] }
0x1c51   :  { %v7222_v57 = vcombine.high %v11981_v8, %v11980_v21  ;;  %v11982_v9 = vld [vmem:[#allocation221_spill] sm:$0xff] }
0x1c53   :  { %6175 = vmatpush2.bf16.msra.mxu0 %v7121_v37  ;;  %6216 = vmatpush2.bf16.msra.mxu1 %v7185_v12  ;;  %v11983_v37 = vld [vmem:[#allocation219_spill] sm:$0xff] }
0x1c54   :  { %6176 = vmatprep.subr.bf16.mxu0 %v7118_v1  ;;  %6217 = vmatprep.subr.bf16.mxu1 %v7182_v26  ;;  %v7286_v12 = vcombine.high %v11983_v37, %v11982_v9  ;;  %v7218_v1 = vcombine.high %v11985_v0, %v11984_v13  ;;  %v7282_v26 = vcombine.high %v11987_v5, %v11986_v4 }
0x1c57   :  { %6177 = vmatpush2.bf16.msra.mxu0 %v7117_v18  ;;  %6218 = vmatpush2.bf16.msra.mxu1 %v7181_v60  ;;  %v7217_v18 = vcombine.low %v11985_v0, %v11984_v13  ;;  %v7281_v60 = vcombine.low %v11987_v5, %v11986_v4  ;;  %v12012_v13 = vld [vmem:[#allocation189_spill] sm:$0xff]  ;;  %v12013_v0 = vld [vmem:[#allocation187_spill] sm:$0xff] }
0x1c58   :  { %6178 = vmatprep.subr.bf16.mxu0 %v7114_v22  ;;  %6219 = vmatprep.subr.bf16.mxu1 %v7178_v31  ;;  %v7214_v22 = vcombine.high %v11989_v19, %v11988_v62  ;;  %v7278_v31 = vcombine.high %v11991_v47, %v11990_v23  ;;  %v12014_v4 = vld [vmem:[#allocation253_spill] sm:$0xff]  ;;  %v12015_v5 = vld [vmem:[#allocation251_spill] sm:$0xff] }
0x1c5b   :  { %6179 = vmatpush2.bf16.msra.mxu0 %v7113_v24  ;;  %6220 = vmatpush2.bf16.msra.mxu1 %v7177_v45  ;;  %v7213_v24 = vcombine.low %v11989_v19, %v11988_v62  ;;  %v7277_v45 = vcombine.low %v11991_v47, %v11990_v23  ;;  %v12016_v62 = vld [vmem:[#allocation185_spill] sm:$0xff]  ;;  %v12017_v19 = vld [vmem:[#allocation183_spill] sm:$0xff] }
0x1c5c   :  { %6180 = vmatprep.subr.bf16.mxu0 %v7110_v7  ;;  %6221 = vmatprep.subr.bf16.mxu1 %v7174_v39  ;;  %v7210_v7 = vcombine.high %v11993_v2, %v11992_v10  ;;  %v7274_v39 = vcombine.high %v11995_v58, %v11994_v56  ;;  %v12018_v23 = vld [vmem:[#allocation249_spill] sm:$0xff]  ;;  %v12019_v47 = vld [vmem:[#allocation247_spill] sm:$0xff] }
0x1c5f   :  { %6181 = vmatpush2.bf16.msra.mxu0 %v7109_v61  ;;  %6222 = vmatpush2.bf16.msra.mxu1 %v7173_v52  ;;  %v7209_v61 = vcombine.low %v11993_v2, %v11992_v10  ;;  %v7273_v52 = vcombine.low %v11995_v58, %v11994_v56  ;;  %v12020_v10 = vld [vmem:[#allocation181_spill] sm:$0xff]  ;;  %v12021_v2 = vld [vmem:[#allocation179_spill] sm:$0xff] }
0x1c60   :  { %6232 = vmatprep.subr.bf16.mxu0 %v7234_v63  ;;  %6273 = vmatprep.subr.bf16.mxu1 %v7298_v44  ;;  %v7206_v63 = vcombine.high %v11997_v46, %v11996_v53  ;;  %v7270_v44 = vcombine.high %v11999_v54, %v11998_v43  ;;  %v12022_v56 = vld [vmem:[#allocation245_spill] sm:$0xff]  ;;  %v12023_v58 = vld [vmem:[#allocation243_spill] sm:$0xff] }
0x1c62   :  { %6183 = vmatmul.mubr.bf16.vlgmr.msra.gmra.mxu0 %v10799_v48  ;;  %6224 = vmatmul.mubr.bf16.vlgmr.msra.gmra.mxu1 %v10803_v33  ;;  %v7225_v48 = vcombine.low %v11977_v50, %v11976_v29  ;;  %v7289_v33 = vcombine.low %v11979_v35, %v11978_v17  ;;  %v12004_v29 = vld [vmem:[#allocation197_spill] sm:$0xff]  ;;  %v12005_v50 = vld [vmem:[#allocation195_spill] sm:$0xff] }
0x1c63   :  { %6233 = vmatpush1.bf16.msra.mxu0 %v7233_v25  ;;  %6274 = vmatpush1.bf16.msra.mxu1 %v7297_v28  ;;  %v7205_v25 = vcombine.low %v11997_v46, %v11996_v53  ;;  %v7269_v28 = vcombine.low %v11999_v54, %v11998_v43  ;;  %v12006_v17 = vld [vmem:[#allocation261_spill] sm:$0xff]  ;;  %v12007_v35 = vld [vmem:[#allocation259_spill] sm:$0xff] }
0x1c64   :  { %6234 = vmatprep.subr.bf16.mxu0 %v7230_v49  ;;  %6275 = vmatprep.subr.bf16.mxu1 %v7294_v51  ;;  %v7266_v49 = vcombine.high %v12001_v40, %v12000_v34  ;;  %v7330_v51 = vcombine.high %v12003_v36, %v12002_v55  ;;  %v12024_v53 = vld [vmem:[#allocation177_spill] sm:$0xff]  ;;  %v12025_v46 = vld [vmem:[#allocation175_spill] sm:$0xff] }
0x1c65   :  { %6264 = vmatprep.mubr.bf16.mxu0 %v10815_v42  ;;  %6305 = vmatprep.mubr.bf16.mxu1 %v10819_v32  ;;  %v7221_v42 = vcombine.low %v11981_v8, %v11980_v21  ;;  %v7285_v32 = vcombine.low %v11983_v37, %v11982_v9  ;;  %v12008_v21 = vld [vmem:[#allocation193_spill] sm:$0xff]  ;;  %v12009_v8 = vld [vmem:[#allocation191_spill] sm:$0xff] }
0x1c66   :  { %v12010_v9 = vld [vmem:[#allocation257_spill] sm:$0xff]  ;;  %v12011_v37 = vld [vmem:[#allocation255_spill] sm:$0xff] }
0x1c67   :  { %6235 = vmatpush1.bf16.msra.mxu0 %v7229_v59  ;;  %6276 = vmatpush1.bf16.msra.mxu1 %v7293_v41  ;;  %v7265_v59 = vcombine.low %v12001_v40, %v12000_v34  ;;  %v7329_v41 = vcombine.low %v12003_v36, %v12002_v55  ;;  %v12026_v43 = vld [vmem:[#allocation241_spill] sm:$0xff]  ;;  %v12027_v54 = vld [vmem:[#allocation239_spill] sm:$0xff] }
0x1c68   :  { %6236 = vmatprep.subr.bf16.mxu0 %v7226_v16  ;;  %6277 = vmatprep.subr.bf16.mxu1 %v7290_v20  ;;  %v7262_v16 = vcombine.high %v12005_v50, %v12004_v29  ;;  %v7326_v20 = vcombine.high %v12007_v35, %v12006_v17  ;;  %v12028_v34 = vld [vmem:[#allocation173_spill] sm:$0xff]  ;;  %v12029_v40 = vld [vmem:[#allocation171_spill] sm:$0xff] }
0x1c69   :  { %v12030_v55 = vld [vmem:[#allocation237_spill] sm:$0xff]  ;;  %v12031_v36 = vld [vmem:[#allocation235_spill] sm:$0xff] }
0x1c6b   :  { %6237 = vmatpush1.bf16.msra.mxu0 %v7225_v48  ;;  %6278 = vmatpush1.bf16.msra.mxu1 %v7289_v33  ;;  %v7261_v48 = vcombine.low %v12005_v50, %v12004_v29  ;;  %v7325_v33 = vcombine.low %v12007_v35, %v12006_v17  ;;  %v7074_v29 = vld [vmem:[%s11255_s12 + $0x8] sm:$0xff] }
0x1c6c   :  { %6238 = vmatprep.subr.bf16.mxu0 %v7222_v57  ;;  %6279 = vmatprep.subr.bf16.mxu1 %v7286_v12  ;;  %v7258_v57 = vcombine.high %v12009_v8, %v12008_v21  ;;  %v7322_v12 = vcombine.high %v12011_v37, %v12010_v9  ;;  %v4689_v50 = vrot.slane %v7074_v29, %v4050_v14 }
0x1c6f   :  { %6239 = vmatpush1.bf16.msra.mxu0 %v7221_v42  ;;  %6280 = vmatpush1.bf16.msra.mxu1 %v7285_v32  ;;  %v7257_v42 = vcombine.low %v12009_v8, %v12008_v21  ;;  %v7321_v32 = vcombine.low %v12011_v37, %v12010_v9 }
0x1c70   :  { %6240 = vmatprep.subr.bf16.mxu0 %v7218_v1  ;;  %6281 = vmatprep.subr.bf16.mxu1 %v7282_v26  ;;  %v7254_v1 = vcombine.high %v12013_v0, %v12012_v13  ;;  %v7318_v26 = vcombine.high %v12015_v5, %v12014_v4 }
0x1c73   :  { %6241 = vmatpush1.bf16.msra.mxu0 %v7217_v18  ;;  %6282 = vmatpush1.bf16.msra.mxu1 %v7281_v60  ;;  %v7253_v18 = vcombine.low %v12013_v0, %v12012_v13  ;;  %v7317_v60 = vcombine.low %v12015_v5, %v12014_v4 }
0x1c74   :  { %6242 = vmatprep.subr.bf16.mxu0 %v7214_v22  ;;  %6283 = vmatprep.subr.bf16.mxu1 %v7278_v31  ;;  %v7250_v22 = vcombine.high %v12017_v19, %v12016_v62  ;;  %v7314_v31 = vcombine.high %v12019_v47, %v12018_v23 }
0x1c77   :  { %6243 = vmatpush1.bf16.msra.mxu0 %v7213_v24  ;;  %6284 = vmatpush1.bf16.msra.mxu1 %v7277_v45  ;;  %v7249_v24 = vcombine.low %v12017_v19, %v12016_v62  ;;  %v7313_v45 = vcombine.low %v12019_v47, %v12018_v23 }
0x1c78   :  { %6244 = vmatprep.subr.bf16.mxu0 %v7210_v7  ;;  %6285 = vmatprep.subr.bf16.mxu1 %v7274_v39  ;;  %v7246_v7 = vcombine.high %v12021_v2, %v12020_v10  ;;  %v7310_v39 = vcombine.high %v12023_v58, %v12022_v56 }
0x1c7b   :  { %6245 = vmatpush1.bf16.msra.mxu0 %v7209_v61  ;;  %6286 = vmatpush1.bf16.msra.mxu1 %v7273_v52  ;;  %v7245_v61 = vcombine.low %v12021_v2, %v12020_v10  ;;  %v7309_v52 = vcombine.low %v12023_v58, %v12022_v56  ;;  %v4697_v2 = vrot.slane %v7074_v29, %v4058_v15 }
0x1c7c   :  { %6246 = vmatprep.subr.bf16.mxu0 %v7206_v63  ;;  %6287 = vmatprep.subr.bf16.mxu1 %v7270_v44  ;;  %v7242_v63 = vcombine.high %v12025_v46, %v12024_v53  ;;  %v7306_v44 = vcombine.high %v12027_v54, %v12026_v43 }
0x1c7f   :  { %6247 = vmatpush1.bf16.msra.mxu0 %v7205_v25  ;;  %6288 = vmatpush1.bf16.msra.mxu1 %v7269_v28  ;;  %v7241_v25 = vcombine.low %v12025_v46, %v12024_v53  ;;  %v7305_v28 = vcombine.low %v12027_v54, %v12026_v43 }
0x1c80   :  { %6248 = vmatprep.subr.bf16.mxu0 %v7266_v49  ;;  %6289 = vmatprep.subr.bf16.mxu1 %v7330_v51  ;;  %v7238_v49 = vcombine.high %v12029_v40, %v12028_v34  ;;  %v7302_v51 = vcombine.high %v12031_v36, %v12030_v55 }
0x1c83   :  { %6249 = vmatpush2.bf16.msra.mxu0 %v7265_v59  ;;  %6290 = vmatpush2.bf16.msra.mxu1 %v7329_v41  ;;  %v7237_v59 = vcombine.low %v12029_v40, %v12028_v34  ;;  %v7301_v41 = vcombine.low %v12031_v36, %v12030_v55 }
0x1c84   :  { %6250 = vmatprep.subr.bf16.mxu0 %v7262_v16  ;;  %6291 = vmatprep.subr.bf16.mxu1 %v7326_v20  ;;  %v4693_v16 = vrot.slane %v7074_v29, %v4054_v3 }
0x1c87   :  { %6251 = vmatpush2.bf16.msra.mxu0 %v7261_v48  ;;  %6292 = vmatpush2.bf16.msra.mxu1 %v7325_v33 }
0x1c88   :  { %6252 = vmatprep.subr.bf16.mxu0 %v7258_v57  ;;  %6293 = vmatprep.subr.bf16.mxu1 %v7322_v12 }
0x1c8b   :  { %6253 = vmatpush2.bf16.msra.mxu0 %v7257_v42  ;;  %6294 = vmatpush2.bf16.msra.mxu1 %v7321_v32 }
0x1c8c   :  { %6254 = vmatprep.subr.bf16.mxu0 %v7254_v1  ;;  %6295 = vmatprep.subr.bf16.mxu1 %v7318_v26 }
0x1c8f   :  { %6255 = vmatpush2.bf16.msra.mxu0 %v7253_v18  ;;  %6296 = vmatpush2.bf16.msra.mxu1 %v7317_v60 }
0x1c90   :  { %6256 = vmatprep.subr.bf16.mxu0 %v7250_v22  ;;  %6297 = vmatprep.subr.bf16.mxu1 %v7314_v31 }
0x1c93   :  { %6257 = vmatpush2.bf16.msra.mxu0 %v7249_v24  ;;  %6298 = vmatpush2.bf16.msra.mxu1 %v7313_v45 }
0x1c94   :  { %6258 = vmatprep.subr.bf16.mxu0 %v7246_v7  ;;  %6299 = vmatprep.subr.bf16.mxu1 %v7310_v39  ;;  %v4701_v7 = vrot.slane %v7074_v29, %v4062_v6 }
0x1c97   :  { %6259 = vmatpush2.bf16.msra.mxu0 %v7245_v61  ;;  %6300 = vmatpush2.bf16.msra.mxu1 %v7309_v52 }
0x1c98   :  { %6260 = vmatprep.subr.bf16.mxu0 %v7242_v63  ;;  %6301 = vmatprep.subr.bf16.mxu1 %v7306_v44 }
0x1c9b   :  { %6261 = vmatpush2.bf16.msra.mxu0 %v7241_v25  ;;  %6302 = vmatpush2.bf16.msra.mxu1 %v7305_v28 }
0x1c9c   :  { %6262 = vmatprep.subr.bf16.mxu0 %v7238_v49  ;;  %6303 = vmatprep.subr.bf16.mxu1 %v7302_v51 }
0x1c9f   :  { %6263 = vmatpush2.bf16.msra.mxu0 %v7237_v59  ;;  %6304 = vmatpush2.bf16.msra.mxu1 %v7301_v41 }
0x1ca2   :  { %v6020_v17 = vpop.f32.mrf.mxu0  ;;  %v6061_v35 = vpop.f32.mrf.mxu1  ;;  %6265 = vmatmul.mubr.bf16.vlgmr.msra.gmra.mxu0 %v10947_v27  ;;  %6306 = vmatmul.mubr.bf16.vlgmr.msra.gmra.mxu1 %v10951_v30 }
0x1ca3   :  { %v6021_v20 = vadd.f32 %v6020_v17, %v4689_v50 }
0x1ca4   :  { %v6022_v48 = vpop.f32.mrf.mxu0  ;;  %v6063_v33 = vpop.f32.mrf.mxu1 }
0x1ca5   :  { %v6062_v21 = vadd.f32 %v6061_v35, %v6021_v20  ;;  %v6023_v8 = vadd.f32 %v6022_v48, %v4693_v16 }
0x1ca6   :  { %v6024_v57 = vpop.f32.mrf.mxu0  ;;  %v6065_v9 = vpop.f32.mrf.mxu1 }
0x1ca7   :  { %v6064_v37 = vadd.f32 %v6063_v33, %v6023_v8 }
0x1ca8   :  { %v6025_v12 = vpop.f32.mrf.mxu0  ;;  %v6066_v42 = vpop.f32.mrf.mxu1 }
0x1ce2   :  { %v6102_v14 = vpop.f32.mrf.mxu0  ;;  %v6143_v32 = vpop.f32.mrf.mxu1 }
0x1ce3   :  { %v6103_v13 = vadd.f32 %v6102_v14, %v6062_v21 }
0x1ce4   :  { %v6104_v3 = vpop.f32.mrf.mxu0  ;;  %v6145_v0 = vpop.f32.mrf.mxu1 }
0x1ce5   :  { %v11222_v1 = vadd.f32 %v6143_v32, %v6103_v13  ;;  %v6105_v27 = vadd.f32 %v6104_v3, %v6064_v37 }
0x1ce6   :  { %v6106_v4 = vpop.f32.mrf.mxu0  ;;  %v6147_v30 = vpop.f32.mrf.mxu1 }
0x1ce7   :  { %v6314_v5 = vmax.f32 %v11222_v1, 0.0  ;;  %v6146_v26 = vadd.f32 %v6145_v0, %v6105_v27 }
0x1ce8   :  { %v6107_v18 = vpop.f32.mrf.mxu0  ;;  %v6148_v60 = vpop.f32.mrf.mxu1 }
0x1ce9   :  { %v6315_v62 = vmax.f32 %v6146_v26, 0.0 }
0x1d22   :  { %v6184_v19 = vpop.f32.mrf.mxu0  ;;  %v6225_v22 = vpop.f32.mrf.mxu1 }
0x1d23   :  { %v6185_v56 = vadd.f32 %v6184_v19, %v4697_v2 }
0x1d24   :  { %v6186_v23 = vpop.f32.mrf.mxu0  ;;  %v6227_v47 = vpop.f32.mrf.mxu1 }
0x1d25   :  { %v6187_v58 = vadd.f32 %v6186_v23, %v4701_v7  ;;  %v6226_v39 = vadd.f32 %v6225_v22, %v6185_v56 }
0x1d26   :  { %v6188_v31 = vpop.f32.mrf.mxu0  ;;  %v6229_v24 = vpop.f32.mrf.mxu1 }
0x1d27   :  { %v6228_v53 = vadd.f32 %v6227_v47, %v6187_v58 }
0x1d28   :  { %v6189_v45 = vpop.f32.mrf.mxu0  ;;  %v6230_v10 = vpop.f32.mrf.mxu1 }
0x1d62   :  { %v6266_v61 = vpop.f32.mrf.mxu0  ;;  %v6307_v52 = vpop.f32.mrf.mxu1 }
0x1d63   :  { %v6267_v46 = vadd.f32 %v6266_v61, %v6226_v39 }
0x1d64   :  { %v6268_v63 = vpop.f32.mrf.mxu0  ;;  %v6309_v43 = vpop.f32.mrf.mxu1 }
0x1d65   :  { %v11229_v54 = vadd.f32 %v6307_v52, %v6267_v46  ;;  %v6269_v44 = vadd.f32 %v6268_v63, %v6228_v53 }
0x1d66   :  { %v6270_v25 = vpop.f32.mrf.mxu0  ;;  %v6311_v28 = vpop.f32.mrf.mxu1 }
0x1d67   :  { %v6316_v34 = vmax.f32 %v11229_v54, 0.0  ;;  %v6310_v15 = vadd.f32 %v6309_v43, %v6269_v44 }
0x1d68   :  { %v6271_v40 = vpop.f32.mrf.mxu0  ;;  %v6312_v11 = vpop.f32.mrf.mxu1 }
0x1d69   :  { %v6317_v6 = vmax.f32 %v6310_v15, 0.0 }
0x1d6a   :  { %8139 = dma.done.wait [#allocation5 + $0x2], 4096 }
0x1d6b   :  { %8140 = vsyncadd [#allocation5 + $0x2], 4294963200  ;;  %v6387_v49 = vpack.c.bf16 %v6315_v62, %v6315_v62  ;;  %v6389_v55 = vpack.c.bf16 %v6317_v6, %v6317_v6  ;;  %v8103_v36 = vld [vmem:[#allocation4 + $0x78] sm:$0xff]   ;;  %v8107_v29 = vld [vmem:[#allocation4 + $0x70] sm:$0xff]   ;;  %v6386_v22 = vpack.c.bf16 %v6314_v5, %v6314_v5  ;;  %v6388_v23 = vpack.c.bf16 %v6316_v34, %v6316_v34 }
0x1d6c   :  { %v8104_v51 = vld [vmem:[#allocation4 + $0xf8] sm:$0xff]   ;;  %7522 = vmatprep.subr.bf16.mxu0 %v8103_v36  ;;  %v8108_v50 = vld [vmem:[#allocation4 + $0xf0] sm:$0xff]   ;;  %v8111_v35 = vld [vmem:[#allocation4 + $0x68] sm:$0xff]  }
0x1d6d   :  { %6620 = vmatprep.mubr.bf16.mxu0 %v6387_v49  ;;  %6660 = vmatprep.mubr.bf16.mxu1 %v6389_v55  ;;  %v8105_v59 = vld [vmem:[#allocation4 + $0x38] sm:$0xff]   ;;  %v8109_v16 = vld [vmem:[#allocation4 + $0x30] sm:$0xff]   ;;  %v8112_v20 = vld [vmem:[#allocation4 + $0xe8] sm:$0xff]  }
0x1d6e   :  { %7544 = vmatprep.subr.bf16.mxu1 %v8104_v51  ;;  %v8106_v41 = vld [vmem:[#allocation4 + $0xb8] sm:$0xff]   ;;  %7523 = vmatpush3.bf16.msra.mxu0 %v8105_v59  ;;  %v8110_v17 = vld [vmem:[#allocation4 + $0xb0] sm:$0xff]   ;;  %v8113_v48 = vld [vmem:[#allocation4 + $0x28] sm:$0xff]  }
0x1d6f   :  { %7545 = vmatpush3.bf16.msra.mxu1 %v8106_v41  ;;  %7524 = vmatprep.subr.bf16.mxu0 %v8107_v29  ;;  %v8114_v33 = vld [vmem:[#allocation4 + $0xa8] sm:$0xff]   ;;  %v8115_v21 = vld [vmem:[#allocation4 + $0x60] sm:$0xff]   ;;  %v8119_v37 = vld [vmem:[#allocation4 + $0x58] sm:$0xff]  }
0x1d70   :  { %7546 = vmatprep.subr.bf16.mxu1 %v8108_v50  ;;  %v8116_v8 = vld [vmem:[#allocation4 + $0xe0] sm:$0xff]   ;;  %v8120_v12 = vld [vmem:[#allocation4 + $0xd8] sm:$0xff]   ;;  %v8123_v32 = vld [vmem:[#allocation4 + $0x50] sm:$0xff]  }
0x1d71   :  { %v8117_v57 = vld [vmem:[#allocation4 + $0x20] sm:$0xff]   ;;  %v8121_v42 = vld [vmem:[#allocation4 + $0x18] sm:$0xff]   ;;  %v8124_v13 = vld [vmem:[#allocation4 + $0xd0] sm:$0xff]  }
0x1d72   :  { %7525 = vmatpush3.bf16.msra.mxu0 %v8109_v16  ;;  %v8118_v9 = vld [vmem:[#allocation4 + $0xa0] sm:$0xff]   ;;  %v8122_v14 = vld [vmem:[#allocation4 + $0x98] sm:$0xff]   ;;  %v8125_v3 = vld [vmem:[#allocation4 + $0x10] sm:$0xff]  }
0x1d73   :  { %7547 = vmatpush3.bf16.msra.mxu1 %v8110_v17  ;;  %7526 = vmatprep.subr.bf16.mxu0 %v8111_v35  ;;  %v8126_v0 = vld [vmem:[#allocation4 + $0x90] sm:$0xff]   ;;  %v8127_v27 = vld [vmem:[#allocation4 + $0x48] sm:$0xff]   ;;  %v8131_v18 = vld [vmem:[#allocation4 + $0x40] sm:$0xff]  }
0x1d74   :  { %7548 = vmatprep.subr.bf16.mxu1 %v8112_v20  ;;  %v8128_v4 = vld [vmem:[#allocation4 + $0xc8] sm:$0xff]   ;;  %v8132_v60 = vld [vmem:[#allocation4 + $0xc0] sm:$0xff]  }
0x1d75   :  { %v8129_v30 = vld [vmem:[#allocation4 + $0x8] sm:$0xff]   ;;  %v8133_v62 = vld [vmem:[#allocation4] sm:$0xff]  }
0x1d76   :  { %7527 = vmatpush3.bf16.msra.mxu0 %v8113_v48  ;;  %v8130_v26 = vld [vmem:[#allocation4 + $0x88] sm:$0xff]   ;;  %v8134_v19 = vld [vmem:[#allocation4 + $0x80] sm:$0xff]  }
0x1d77   :  { %7549 = vmatpush3.bf16.msra.mxu1 %v8114_v33  ;;  %7528 = vmatprep.subr.bf16.mxu0 %v8115_v21 }
0x1d78   :  { %7550 = vmatprep.subr.bf16.mxu1 %v8116_v8 }
0x1d7a   :  { %7529 = vmatpush3.bf16.msra.mxu0 %v8117_v57 }
0x1d7b   :  { %7551 = vmatpush3.bf16.msra.mxu1 %v8118_v9  ;;  %7530 = vmatprep.subr.bf16.mxu0 %v8119_v37 }
0x1d7c   :  { %7552 = vmatprep.subr.bf16.mxu1 %v8120_v12 }
0x1d7e   :  { %7531 = vmatpush3.bf16.msra.mxu0 %v8121_v42 }
0x1d7f   :  { %7553 = vmatpush3.bf16.msra.mxu1 %v8122_v14  ;;  %7532 = vmatprep.subr.bf16.mxu0 %v8123_v32 }
0x1d80   :  { %7554 = vmatprep.subr.bf16.mxu1 %v8124_v13 }
0x1d82   :  { %7533 = vmatpush3.bf16.msra.mxu0 %v8125_v3 }
0x1d83   :  { %7555 = vmatpush3.bf16.msra.mxu1 %v8126_v0  ;;  %7534 = vmatprep.subr.bf16.mxu0 %v8127_v27 }
0x1d84   :  { %7556 = vmatprep.subr.bf16.mxu1 %v8128_v4 }
0x1d86   :  { %7535 = vmatpush3.bf16.msra.mxu0 %v8129_v30 }
0x1d87   :  { %7557 = vmatpush3.bf16.msra.mxu1 %v8130_v26  ;;  %7536 = vmatprep.subr.bf16.mxu0 %v8131_v18 }
0x1d88   :  { %7558 = vmatprep.subr.bf16.mxu1 %v8132_v60 }
0x1d8a   :  { %7537 = vmatpush3.bf16.msra.mxu0 %v8133_v62 }
0x1d8b   :  { %7559 = vmatpush3.bf16.msra.mxu1 %v8134_v19 }
0x1d8d   :  { %6621 = vmatmul.mubr.bf16.vlgmr.msra.gmra.mxu0 %v6386_v22 }
0x1d8e   :  { %6661 = vmatmul.mubr.bf16.vlgmr.msra.gmra.mxu1 %v6388_v23 }
0x1e4d   :  { %v7538_v47 = vpop.f32.mrf.mxu0 }
0x1e4e   :  { %v7560_v31 = vpop.f32.mrf.mxu1 }
0x1e4f   :  { %v7539_v24 = vpop.f32.mrf.mxu0 }
0x1e50   :  { %v7540_v45 = vadd.f32 %v7539_v24, %v7538_v47  ;;  %v7561_v10 = vpop.f32.mrf.mxu1 }
0x1e51   :  { %v7541_v2 = vpop.f32.mrf.mxu0  ;;  %v7562_v56 = vadd.f32 %v7561_v10, %v7560_v31 }
0x1e52   :  { %v6623_v7 = vadd.f32 %v7540_v45, %v10524_v38  ;;  %v7563_v1 = vpop.f32.mrf.mxu1 }
0x1e53   :  { %v7542_v58 = vpop.f32.mrf.mxu0 }
0x1e54   :  { %v6663_v5 = vadd.f32 %v7562_v56, %v6623_v7  ;;  %v7564_v39 = vpop.f32.mrf.mxu1 }
0x1e56   :  { %6668 = vst.msk [vmem:[%s11259_s16] sm:$0x3f] %vm1005_vm1, %v6663_v5 }
0x1e57   :  { %6673 = vsyncmov [#allocation5] }
0x1e5a   :  { %s6674_s19 = vpop.sfrf %6673 }
0x1e5b   :  { %p7364_p0 = scmp.ne.s32.totalorder %s6674_s19, 0 }
0x1e5d   :  { %6678 = shalt.err (%p7364_p0)  }
0x1e5e   :  { %6680 = vsyncmov [#allocation5 + $0x1] }
0x1e61   :  { %s6681_s20 = vpop.sfrf %6680 }
0x1e62   :  { %p7365_p1 = scmp.ne.s32.totalorder %s6681_s20, 0 }
0x1e64   :  { %6685 = shalt.err (%p7365_p1)  }
0x1e65   :  { %6687 = vsyncmov [#allocation5 + $0x2] }
0x1e68   :  { %s6688_s2 = vpop.sfrf %6687 }
0x1e69   :  { %p7366_p2 = scmp.ne.s32.totalorder %s6688_s2, 0 }
0x1e6b   :  { %6692 = shalt.err (%p7366_p2)  }

</bundles_post_ra>
